<compile_context>
chip_gen: v7x
topology: tpu7x:2x2x1
jax: 0.10.0
libtpu: 0.0.40
codegen_flags: <defaults>
</compile_context>

<pallas_src>
import jax
import jax.numpy as jnp
from jax import lax
from jax.experimental import pallas as pl
from jax.experimental.pallas import tpu as pltpu

PRIMITIVES = ("none", "skip_connect", "nor_conv_1x1", "nor_conv_3x3", "avg_pool_3x3")
_BN_EPS = 1e-5
_VMEM_LIMIT = 32 * 1024 * 1024


def _candidate_ops(x_tile, wbig_ref, xpad_s):
    """x_tile: (H, W, C) f32 image tile.  wbig_ref: (9C, 2C) bf16 fused conv weights
    (cols [0:C] = 3x3 conv, cols [C:2C] = 1x1 conv embedded at the centre tap).
    Returns conv_cat (H*W, 2C) f32 raw conv outputs and pool_raw (H*W, C) f32
    (sum of the 9 avg-pool taps, i.e. 9 * avg_pool)."""
    H, W, C = x_tile.shape

    # Build the zero-padded tile (pad=1) in VMEM scratch -> no padded HBM copy of x.
    xpad_s[...] = jnp.zeros_like(xpad_s)
    xpad_s[pl.ds(1, H), pl.ds(1, W), :] = x_tile
    xpad = xpad_s[...]                                        # (H+2, W+2, C)

    # avg_pool_3x3 numerator, separable: 3 row adds + 3 col adds (instead of 9 shifted adds).
    rows = xpad[0:H, :, :] + xpad[1:H + 1, :, :] + xpad[2:H + 2, :, :]     # (H, W+2, C)
    pool_raw = (rows[:, 0:W, :] + rows[:, 1:W + 1, :]
                + rows[:, 2:W + 2, :]).reshape(H * W, C)                   # (H, W, C)

    # relu(zero_pad(x)) == zero_pad(relu(x)); build a single lane-dense im2col patch matrix
    # and do ONE bf16 MXU matmul that produces conv3 and conv1 together (K = 9C, N = 2C).
    xpr = jnp.maximum(xpad, 0.0).astype(jnp.bfloat16)
    taps = [xpr[dy:dy + H, dx:dx + W, :].reshape(H * W, C)
            for dy in range(3) for dx in range(3)]
    patch = jnp.concatenate(taps, axis=-1)                                 # (H*W, 9C) bf16
    conv_cat = jnp.dot(patch, wbig_ref[...], preferred_element_type=jnp.float32)
    return conv_cat, pool_raw


def _stats_kernel(x_ref, wbig_ref, stats_ref, xpad_s):
    """Pass A: accumulate per-channel sum / sumsq of conv3_raw, conv1_raw, pool_raw
    into the resident (8, C) stats block across the (sequential) batch grid axis."""
    C = x_ref.shape[-1]
    conv_cat, pool_raw = _candidate_ops(x_ref[0], wbig_ref, xpad_s)
    c3 = conv_cat[:, :C]
    c1 = conv_cat[:, C:]
    part = jnp.concatenate(
        [jnp.sum(c3, axis=0)[None, :], jnp.sum(c3 * c3, axis=0)[None, :],
         jnp.sum(c1, axis=0)[None, :], jnp.sum(c1 * c1, axis=0)[None, :],
         jnp.sum(pool_raw, axis=0)[None, :], jnp.sum(pool_raw * pool_raw, axis=0)[None, :],
         jnp.zeros((2, C), jnp.float32)],
        axis=0)                                                            # (8, C)

    @pl.when(pl.program_id(0) == 0)
    def _():
        stats_ref[...] = jnp.zeros_like(stats_ref)

    stats_ref[...] += part


def _combine_kernel(x_ref, wbig_ref, coef_ref, out_ref, xpad_s):
    """Pass B: recompute the candidate ops and apply the BN-folded weighted combine:
       out = a3*conv3_raw + a1*conv1_raw + ap*pool_raw + w_skip*x + bias   (per channel)."""
    _, H, W, C = x_ref.shape
    x_tile = x_ref[0]
    conv_cat, pool_raw = _candidate_ops(x_tile, wbig_ref, xpad_s)
    c3 = conv_cat[:, :C]
    c1 = conv_cat[:, C:]
    x_flat = x_tile.reshape(H * W, C)
    out = (coef_ref[0:1, :] * c3
           + coef_ref[1:2, :] * c1
           + coef_ref[2:3, :] * pool_raw
           + coef_ref[3:4, :] * x_flat
           + coef_ref[4:5, :])
    out_ref[...] = out.reshape(1, H, W, C).astype(out_ref.dtype)


def mixed_op(x_nchw, weights, w1_oihw, w3_oihw, *, eval=False, gene=None):
    """x_nchw: (N, C, H, W) f32 (PyTorch layout at the API boundary).  Returns NCHW."""
    N, C, H, W = x_nchw.shape
    C_out = w1_oihw.shape[0]
    assert C_out == C, "MixedOp assumes C_in == C_out"

    # ---- layout glue (no padded HBM copy: padding happens inside the kernel) ----
    x = jnp.transpose(x_nchw, (0, 2, 3, 1)).astype(jnp.float32)            # NHWC
    w1 = jnp.transpose(w1_oihw[:, :, 0, 0], (1, 0)).astype(jnp.float32)    # (Ci, Co)
    w3 = jnp.transpose(w3_oihw, (2, 3, 1, 0)).reshape(9 * C, C_out).astype(jnp.float32)
    # fused RHS: cols [0:C] = 3x3 conv, cols [C:2C] = 1x1 conv at the centre tap (dy=dx=1)
    wbig = jnp.zeros((9 * C, 2 * C_out), jnp.float32)
    wbig = wbig.at[:, :C_out].set(w3)
    wbig = wbig.at[4 * C:5 * C, C_out:].set(w1)
    wbig = wbig.astype(jnp.bfloat16)

    w_eff = weights.astype(jnp.float32)
    if eval:
        # sum(w * op(x) * gene) == sum((w * gene) * op(x)) -- gene is a per-op scalar
        w_eff = w_eff * jnp.asarray(gene, jnp.float32)

    x_spec = pl.BlockSpec((1, H, W, C), lambda n: (n, 0, 0, 0))
    wbig_spec = pl.BlockSpec((9 * C, 2 * C_out), lambda n: (0, 0))
    scratch = [pltpu.VMEM((H + 2, W + 2, C), jnp.float32)]

    # ---- pass A: global (per-channel) BN statistics over the whole batch ----
    stats = pl.pallas_call(
        _stats_kernel,
        out_shape=jax.ShapeDtypeStruct((8, C_out), jnp.float32),
        grid=(N,),
        in_specs=[x_spec, wbig_spec],
        out_specs=pl.BlockSpec((8, C_out), lambda n: (0, 0)),
        scratch_shapes=scratch,
        compiler_params=pltpu.CompilerParams(
            dimension_semantics=("arbitrary",),        # reduction over the batch axis
            vmem_limit_bytes=_VMEM_LIMIT),
    )(x, wbig)

    # ---- fold BN (affine=False, batch stats) + arch weights into per-channel scale/bias ----
    M = jnp.float32(N * H * W)
    mean3 = stats[0] / M
    var3 = stats[1] / M - mean3 * mean3                # one-pass variance
    mean1 = stats[2] / M
    var1 = stats[3] / M - mean1 * mean1
    meanp = stats[4] / (M * 9.0)                       # stats were on pool_raw = 9 * pool
    varp = stats[5] / (M * 81.0) - meanp * meanp
    s3 = lax.rsqrt(var3 + _BN_EPS)
    s1 = lax.rsqrt(var1 + _BN_EPS)
    sp = lax.rsqrt(varp + _BN_EPS)

    a3 = w_eff[3] * s3                                 # scale for conv3_raw
    a1 = w_eff[2] * s1                                 # scale for conv1_raw
    ap = w_eff[4] * sp                                 # scale for pool (=pool_raw/9)
    bias = -(a3 * mean3 + a1 * mean1 + ap * meanp)     # per-channel shift
    coef = jnp.stack(
        [a3, a1, ap / 9.0, jnp.broadcast_to(w_eff[1], (C_out,)), bias], axis=0)  # (5, C)
    # op 0 ('none' / Zero) contributes w[0]*0 and is skipped by construction.

    # ---- pass B: recompute ops + single fused weighted combine (megacore-parallel) ----
    out_nhwc = pl.pallas_call(
        _combine_kernel,
        out_shape=jax.ShapeDtypeStruct((N, H, W, C_out), jnp.float32),
        grid=(N,),
        in_specs=[x_spec, wbig_spec, pl.BlockSpec((5, C_out), lambda n: (0, 0))],
        out_specs=pl.BlockSpec((1, H, W, C_out), lambda n: (n, 0, 0, 0)),
        scratch_shapes=scratch,
        compiler_params=pltpu.CompilerParams(
            dimension_semantics=("parallel",),         # independent per-batch tiles
            vmem_limit_bytes=_VMEM_LIMIT),
    )(x, wbig, coef)
    return jnp.transpose(out_nhwc, (0, 3, 1, 2))       # back to NCHW


def _reference(x_nchw, weights, w1_oihw, w3_oihw, eval=False, gene=None):
    # pure-JAX f32 reference of the same semantics (for correctness check)
    x = jnp.transpose(x_nchw, (0, 2, 3, 1)).astype(jnp.float32)
    N, H, W, C = x.shape

    def bn(y):
        m = jnp.mean(y, axis=(0, 1, 2), keepdims=True)
        v = jnp.mean((y - m) ** 2, axis=(0, 1, 2), keepdims=True)
        return (y - m) / jnp.sqrt(v + _BN_EPS)

    dn = ("NHWC", "HWIO", "NHWC")
    w1 = jnp.transpose(w1_oihw, (2, 3, 1, 0)).astype(jnp.float32)
    w3 = jnp.transpose(w3_oihw, (2, 3, 1, 0)).astype(jnp.float32)
    relu = jnp.maximum(x, 0.0)
    conv1 = bn(lax.conv_general_dilated(relu, w1, (1, 1), "SAME", dimension_numbers=dn))
    conv3 = bn(lax.conv_general_dilated(relu, w3, (1, 1), "SAME", dimension_numbers=dn))
    xpad = jnp.pad(x, ((0, 0), (1, 1), (1, 1), (0, 0)))
    pool = sum(xpad[:, dy:dy + H, dx:dx + W, :] for dy in range(3) for dx in range(3)) / 9.0
    pool = bn(pool)
    ops = [jnp.zeros_like(x), x, conv1, conv3, pool]
    w = weights.astype(jnp.float32)
    if eval:
        w = w * jnp.asarray(gene, jnp.float32)
    out = sum(wi * o for wi, o in zip(w, ops))
    return jnp.transpose(out, (0, 3, 1, 2))


if __name__ == "__main__":
    key = jax.random.PRNGKey(0)
    k1, k2, k3, k4 = jax.random.split(key, 4)
    N, C, H, W = 2, 32, 16, 16

    x = jax.random.normal(k1, (N, C, H, W), jnp.float32)
    alphas = jax.nn.softmax(jax.random.normal(k2, (len(PRIMITIVES),), jnp.float32))
    # conv weights in PyTorch (C_out, C_in, kH, kW) layout
    w1 = jax.random.normal(k3, (C, C, 1, 1), jnp.float32) * (1.0 / jnp.sqrt(C))
    w3 = jax.random.normal(k4, (C, C, 3, 3), jnp.float32) * (1.0 / jnp.sqrt(9 * C))

    # search path: sum(w * op(x))    (bf16 MXU matmuls -> slightly looser tolerance)
    out = jax.block_until_ready(mixed_op(x, alphas, w1, w3))
    ref = _reference(x, alphas, w1, w3)
    assert out.shape == (N, C, H, W)
    err = float(jnp.max(jnp.abs(out - ref)))
    assert jnp.allclose(out, ref, atol=5e-2, rtol=5e-2), err

    # eval path: sum(w * op(x) * gene)
    gene = jnp.array([0.0, 1.0, 0.0, 1.0, 1.0], jnp.float32)
    out_eval = jax.block_until_ready(mixed_op(x, alphas, w1, w3, eval=True, gene=gene))
    ref_eval = _reference(x, alphas, w1, w3, eval=True, gene=gene)
    err_eval = float(jnp.max(jnp.abs(out_eval - ref_eval)))
    assert jnp.allclose(out_eval, ref_eval, atol=5e-2, rtol=5e-2), err_eval

    print("KERNEL_OK")
</pallas_src>

<mosaic_0001>
module attributes {stable_mosaic.version = 11 : i64} {
  func.func @_stats_kernel(%arg0: i32, %arg1: memref<1x16x16x32xf32, #tpu.memory_space<vmem>>, %arg2: memref<288x64xbf16, #tpu.memory_space<vmem>>, %arg3: memref<8x32xf32, #tpu.memory_space<vmem>>, %arg4: memref<18x18x32xf32, #tpu.memory_space<vmem>>) attributes {dimension_semantics = [#tpu.dimension_semantics<arbitrary>], iteration_bounds = array<i64: 2>, scalar_prefetch = 0 : i64, scratch_operands = 1 : i64, tpu.core_type = #tpu.core_type<tc>, window_params = [{transform_indices = @transform_0, window_bounds = array<i64: 1, 16, 16, 32>}, {pipeline_mode = #tpu.pipeline_mode<synchronous>, transform_indices = @transform_1, window_bounds = array<i64: 288, 64>}, {pipeline_mode = #tpu.pipeline_mode<synchronous>, transform_indices = @transform_2, window_bounds = array<i64: 8, 32>}]} {
    %c0 = arith.constant 0 : index
    %c0_0 = arith.constant 0 : index
    %c0_1 = arith.constant 0 : index
    %c0_2 = arith.constant 0 : index
    %0 = vector.load %arg1[%c0, %c0_0, %c0_1, %c0_2] : memref<1x16x16x32xf32, #tpu.memory_space<vmem>>, vector<1x16x16x32xf32>
    %1 = vector.shape_cast %0 : vector<1x16x16x32xf32> to vector<16x16x32xf32>
    %cst = arith.constant 0.000000e+00 : f32
    %2 = vector.broadcast %cst : f32 to vector<18x18x32xf32>
    %c0_3 = arith.constant 0 : index
    %c0_4 = arith.constant 0 : index
    %c0_5 = arith.constant 0 : index
    %3 = vector.load %arg4[%c0_3, %c0_4, %c0_5] : memref<18x18x32xf32, #tpu.memory_space<vmem>>, vector<18x18x32xf32>
    tpu.vector_store %arg4[%c0_3, %c0_4, %c0_5], %2 {strides = array<i32>} : memref<18x18x32xf32, #tpu.memory_space<vmem>>, vector<18x18x32xf32>,
    %c1 = arith.constant 1 : index
    %c1_6 = arith.constant 1 : index
    %c0_7 = arith.constant 0 : index
    %4 = vector.load %arg4[%c1, %c1_6, %c0_7] : memref<18x18x32xf32, #tpu.memory_space<vmem>>, vector<16x16x32xf32>
    tpu.vector_store %arg4[%c1, %c1_6, %c0_7], %1 {strides = array<i32>} : memref<18x18x32xf32, #tpu.memory_space<vmem>>, vector<16x16x32xf32>,
    %c0_8 = arith.constant 0 : index
    %c0_9 = arith.constant 0 : index
    %c0_10 = arith.constant 0 : index
    %5 = vector.load %arg4[%c0_8, %c0_9, %c0_10] : memref<18x18x32xf32, #tpu.memory_space<vmem>>, vector<18x18x32xf32>
    %6 = vector.extract_strided_slice %5 {offsets = [0, 0, 0], sizes = [16, 18, 32], strides = [1, 1, 1]} : vector<18x18x32xf32> to vector<16x18x32xf32>
    %7 = vector.extract_strided_slice %5 {offsets = [1, 0, 0], sizes = [16, 18, 32], strides = [1, 1, 1]} : vector<18x18x32xf32> to vector<16x18x32xf32>
    %8 = arith.addf %6, %7 : vector<16x18x32xf32>
    %9 = vector.extract_strided_slice %5 {offsets = [2, 0, 0], sizes = [16, 18, 32], strides = [1, 1, 1]} : vector<18x18x32xf32> to vector<16x18x32xf32>
    %10 = arith.addf %8, %9 : vector<16x18x32xf32>
    %11 = vector.extract_strided_slice %10 {offsets = [0, 0, 0], sizes = [16, 16, 32], strides = [1, 1, 1]} : vector<16x18x32xf32> to vector<16x16x32xf32>
    %12 = vector.extract_strided_slice %10 {offsets = [0, 1, 0], sizes = [16, 16, 32], strides = [1, 1, 1]} : vector<16x18x32xf32> to vector<16x16x32xf32>
    %13 = arith.addf %11, %12 : vector<16x16x32xf32>
    %14 = vector.extract_strided_slice %10 {offsets = [0, 2, 0], sizes = [16, 16, 32], strides = [1, 1, 1]} : vector<16x18x32xf32> to vector<16x16x32xf32>
    %15 = arith.addf %13, %14 : vector<16x16x32xf32>
    %16 = vector.shape_cast %15 : vector<16x16x32xf32> to vector<256x32xf32>
    %cst_11 = arith.constant 0.000000e+00 : f32
    %17 = vector.broadcast %cst_11 : f32 to vector<18x18x32xf32>
    %18 = arith.maximumf %5, %17 : vector<18x18x32xf32>
    %19 = arith.truncf %18 : vector<18x18x32xf32> to vector<18x18x32xbf16>
    %20 = vector.extract_strided_slice %19 {offsets = [0, 0, 0], sizes = [16, 16, 32], strides = [1, 1, 1]} : vector<18x18x32xbf16> to vector<16x16x32xbf16>
    %21 = vector.shape_cast %20 : vector<16x16x32xbf16> to vector<256x32xbf16>
    %22 = vector.extract_strided_slice %19 {offsets = [0, 1, 0], sizes = [16, 16, 32], strides = [1, 1, 1]} : vector<18x18x32xbf16> to vector<16x16x32xbf16>
    %23 = vector.shape_cast %22 : vector<16x16x32xbf16> to vector<256x32xbf16>
    %24 = vector.extract_strided_slice %19 {offsets = [0, 2, 0], sizes = [16, 16, 32], strides = [1, 1, 1]} : vector<18x18x32xbf16> to vector<16x16x32xbf16>
    %25 = vector.shape_cast %24 : vector<16x16x32xbf16> to vector<256x32xbf16>
    %26 = vector.extract_strided_slice %19 {offsets = [1, 0, 0], sizes = [16, 16, 32], strides = [1, 1, 1]} : vector<18x18x32xbf16> to vector<16x16x32xbf16>
    %27 = vector.shape_cast %26 : vector<16x16x32xbf16> to vector<256x32xbf16>
    %28 = vector.extract_strided_slice %19 {offsets = [1, 1, 0], sizes = [16, 16, 32], strides = [1, 1, 1]} : vector<18x18x32xbf16> to vector<16x16x32xbf16>
    %29 = vector.shape_cast %28 : vector<16x16x32xbf16> to vector<256x32xbf16>
    %30 = vector.extract_strided_slice %19 {offsets = [1, 2, 0], sizes = [16, 16, 32], strides = [1, 1, 1]} : vector<18x18x32xbf16> to vector<16x16x32xbf16>
    %31 = vector.shape_cast %30 : vector<16x16x32xbf16> to vector<256x32xbf16>
    %32 = vector.extract_strided_slice %19 {offsets = [2, 0, 0], sizes = [16, 16, 32], strides = [1, 1, 1]} : vector<18x18x32xbf16> to vector<16x16x32xbf16>
    %33 = vector.shape_cast %32 : vector<16x16x32xbf16> to vector<256x32xbf16>
    %34 = vector.extract_strided_slice %19 {offsets = [2, 1, 0], sizes = [16, 16, 32], strides = [1, 1, 1]} : vector<18x18x32xbf16> to vector<16x16x32xbf16>
    %35 = vector.shape_cast %34 : vector<16x16x32xbf16> to vector<256x32xbf16>
    %36 = vector.extract_strided_slice %19 {offsets = [2, 2, 0], sizes = [16, 16, 32], strides = [1, 1, 1]} : vector<18x18x32xbf16> to vector<16x16x32xbf16>
    %37 = vector.shape_cast %36 : vector<16x16x32xbf16> to vector<256x32xbf16>
    %38 = tpu.concatenate %21, %23, %25, %27, %29, %31, %33, %35, %37 in 1 : vector<256x32xbf16>, vector<256x32xbf16>, vector<256x32xbf16>, vector<256x32xbf16>, vector<256x32xbf16>, vector<256x32xbf16>, vector<256x32xbf16>, vector<256x32xbf16>, vector<256x32xbf16> -> vector<256x288xbf16>
    %c0_12 = arith.constant 0 : index
    %c0_13 = arith.constant 0 : index
    %39 = vector.load %arg2[%c0_12, %c0_13] : memref<288x64xbf16, #tpu.memory_space<vmem>>, vector<288x64xbf16>
    %cst_14 = arith.constant dense<0.000000e+00> : vector<256x64xf32>
    %40 = tpu.matmul %38, %39, %cst_14 {dimension_numbers = #tpu.dot_dimension_numbers<[1], [0], [0], [1], [0, 0, 1, 1], [], []>} : vector<256x288xbf16>, vector<288x64xbf16>, vector<256x64xf32> -> vector<256x64xf32>
    %41 = vector.extract_strided_slice %40 {offsets = [0, 0], sizes = [256, 32], strides = [1, 1]} : vector<256x64xf32> to vector<256x32xf32>
    %42 = vector.extract_strided_slice %40 {offsets = [0, 32], sizes = [256, 32], strides = [1, 1]} : vector<256x64xf32> to vector<256x32xf32>
    %cst_15 = arith.constant dense<0.000000e+00> : vector<32xf32>
    %43 = vector.multi_reduction <add>, %41, %cst_15 [0] : vector<256x32xf32> to vector<32xf32>
    %44 = vector.shape_cast %43 : vector<32xf32> to vector<1x32xf32>
    %45 = arith.mulf %41, %41 : vector<256x32xf32>
    %cst_16 = arith.constant dense<0.000000e+00> : vector<32xf32>
    %46 = vector.multi_reduction <add>, %45, %cst_16 [0] : vector<256x32xf32> to vector<32xf32>
    %47 = vector.shape_cast %46 : vector<32xf32> to vector<1x32xf32>
    %cst_17 = arith.constant dense<0.000000e+00> : vector<32xf32>
    %48 = vector.multi_reduction <add>, %42, %cst_17 [0] : vector<256x32xf32> to vector<32xf32>
    %49 = vector.shape_cast %48 : vector<32xf32> to vector<1x32xf32>
    %50 = arith.mulf %42, %42 : vector<256x32xf32>
    %cst_18 = arith.constant dense<0.000000e+00> : vector<32xf32>
    %51 = vector.multi_reduction <add>, %50, %cst_18 [0] : vector<256x32xf32> to vector<32xf32>
    %52 = vector.shape_cast %51 : vector<32xf32> to vector<1x32xf32>
    %cst_19 = arith.constant dense<0.000000e+00> : vector<32xf32>
    %53 = vector.multi_reduction <add>, %16, %cst_19 [0] : vector<256x32xf32> to vector<32xf32>
    %54 = vector.shape_cast %53 : vector<32xf32> to vector<1x32xf32>
    %55 = arith.mulf %16, %16 : vector<256x32xf32>
    %cst_20 = arith.constant dense<0.000000e+00> : vector<32xf32>
    %56 = vector.multi_reduction <add>, %55, %cst_20 [0] : vector<256x32xf32> to vector<32xf32>
    %57 = vector.shape_cast %56 : vector<32xf32> to vector<1x32xf32>
    %cst_21 = arith.constant 0.000000e+00 : f32
    %58 = vector.broadcast %cst_21 : f32 to vector<2x32xf32>
    %59 = tpu.concatenate %44, %47, %49, %52, %54, %57, %58 in 0 : vector<1x32xf32>, vector<1x32xf32>, vector<1x32xf32>, vector<1x32xf32>, vector<1x32xf32>, vector<1x32xf32>, vector<2x32xf32> -> vector<8x32xf32>
    %c0_i32 = arith.constant 0 : i32
    %60 = arith.cmpi eq, %arg0, %c0_i32 : i32
    %61 = arith.extui %60 : i1 to i32
    %c0_i32_22 = arith.constant 0 : i32
    %62 = arith.cmpi ne, %61, %c0_i32_22 : i32
    scf.if %62 {
      %cst_27 = arith.constant 0.000000e+00 : f32
      %66 = vector.broadcast %cst_27 : f32 to vector<8x32xf32>
      %c0_28 = arith.constant 0 : index
      %c0_29 = arith.constant 0 : index
      %67 = vector.load %arg3[%c0_28, %c0_29] : memref<8x32xf32, #tpu.memory_space<vmem>>, vector<8x32xf32>
      tpu.vector_store %arg3[%c0_28, %c0_29], %66 {strides = array<i32>} : memref<8x32xf32, #tpu.memory_space<vmem>>, vector<8x32xf32>,
    } else {
    }
    %c0_23 = arith.constant 0 : index
    %c0_24 = arith.constant 0 : index
    %63 = vector.load %arg3[%c0_23, %c0_24] : memref<8x32xf32, #tpu.memory_space<vmem>>, vector<8x32xf32>
    %64 = arith.addf %63, %59 : vector<8x32xf32>
    %c0_25 = arith.constant 0 : index
    %c0_26 = arith.constant 0 : index
    %65 = vector.load %arg3[%c0_25, %c0_26] : memref<8x32xf32, #tpu.memory_space<vmem>>, vector<8x32xf32>
    tpu.vector_store %arg3[%c0_25, %c0_26], %64 {strides = array<i32>} : memref<8x32xf32, #tpu.memory_space<vmem>>, vector<8x32xf32>,
    return
  }
  func.func @transform_0(%arg0: i32) -> (i32, i32, i32, i32) {
    %c0_i32 = arith.constant 0 : i32
    %c0_i32_0 = arith.constant 0 : i32
    %c0_i32_1 = arith.constant 0 : i32
    %c0_i32_2 = arith.constant 0 : i32
    return %arg0, %c0_i32, %c0_i32_0, %c0_i32_1 : i32, i32, i32, i32
  }
  func.func @transform_1(%arg0: i32) -> (i32, i32) {
    %c0_i32 = arith.constant 0 : i32
    %c0_i32_0 = arith.constant 0 : i32
    %c0_i32_1 = arith.constant 0 : i32
    return %c0_i32, %c0_i32_0 : i32, i32
  }
  func.func @transform_2(%arg0: i32) -> (i32, i32) {
    %c0_i32 = arith.constant 0 : i32
    %c0_i32_0 = arith.constant 0 : i32
    %c0_i32_1 = arith.constant 0 : i32
    return %c0_i32, %c0_i32_0 : i32, i32
  }
}

</mosaic_0001>

<bundles_post_ra>
// kernel: tpu_custom_call.1
= control target key start
LH: loop header
LB: loop body
LE: loop exit
PB: predicated region body
PF: predicated region fallthrough
CT: control target
= control target key end

     0   :  { %7 = vsyncpa [#allocation4], 0  ;;  %s4920_s0 = inlined_call_operand.hbm [shape: f32[2,16,16,32], index: 0, kind: input, shape index: {}]   ;;  %s4921_s1 = inlined_call_operand.vmem [shape: bf16[288,64], index: 1, kind: input, shape index: {}]   ;;  %s4922_s2 = inlined_call_operand.hbm [shape: f32[8,32], index: 2, kind: output, shape index: {}]  }
   0x1   :  { %9 = vsyncpa [#allocation4 + $0x1], 0 }
   0x2   :  { %10 = vsyncpa [#allocation5], 0  ;;  %s3096_s9 = smov 0   ;;  %s3098_s10 = smov 0  }
   0x3   :  { %s3100_s11 = smov 0   ;;  %s3102_s12 = smov 0  }
   0x4 LB: > { %s3115_s13 = sadd.s32 4294967295, %s3070_s12   ;;  %s3118_s14 = sadd.s32 1, %s3070_s12   ;;  %s3070_s12 = sphi %s3102_s12, %s5037_s12   ;;  %s3066_s11 = sphi %s3100_s11, %s5036_s11   ;;  %s3062_s10 = sphi %s3098_s10, %s5035_s10   ;;  %s3058_s9 = sphi %s3096_s9, %s5034_s9  }
   0x5   : > { %s20_s15 = ssub.s32 %s3070_s12, %s3118_s14  ;;  %s23_s16 = sadd.s32 1, %s3066_s11 }
   0x6   : > { %p21_p0 = scmp.eq.s32.totalorder %s20_s15, 0  ;;  %p30_p1 = scmp.ne.s32.totalorder %s3066_s11, %s3062_s10 }
   0x7   : > { %p31_p2 = scmp.eq.s32.totalorder %s3070_s12, 0  ;;  %p36_p3 = scmp.ne.s32.totalorder %s3062_s10, %s3058_s9 }
   0x8   : > { %s3128_s17 = scalar_select %p21_p0, %s3066_s11, %s23_s16  }
   0x9   : > { %p32_p4 = por %p31_p2, %p30_p1  ;;  %p37_p5 = scmp.eq.s32.totalorder %s3115_s13, 0 }
   0xa   : > { %p2909_p6 = scmp.lt.s32.totalorder %s3070_s12, 2  ;;  %s105_s19 = sand.u32 1, %s3066_s11  }
   0xb   : > { %p3132_p7 = por %p37_p5, %p36_p3  ;;  %s2672_s20 = sshll.u32 %s105_s19, 8 }
   0xc   : > { %s2716_s21 = sshll.u32 %s3070_s12, 12  ;;  %s109_s25 = scalar_lea.vmem [#allocation3], %s2672_s20 }
   0xd   : > { %s3141_s24 = scalar_lea.hbm %s4920_s0, %s2716_s21  ;;  %s116_s26 = sshll.u32 %s109_s25, 4  ;;  %s3143_s26 = int_to_ptr.vmem [resolvable:$true] %s116_s26 }
   0xe   : > { %p3145_p8 = pnand %p2909_p6, %p32_p4  ;;  %s3150_s28 = scalar_lea.sflag [#allocation4], %s105_s19 }
   0xf   : > { %s2976_s29 = scalar_lea.hbm %s3141_s24, 4096  ;;  %s2981_s4 = scalar_lea.hbm %s4920_s0, 8192 }
  0x10   : > { %p2977_p10 = scmp.ne.s32.totalorder %s3141_s24, %s2976_s29  ;;  %p2978_p11 = pneg %p3145_p8 }
  0x11   : > { %p2982_p0 = scmp.lt.u32.totalorder %s3141_s24, %s4920_s0  ;;  %p2983_p1 = scmp.lt.u32.totalorder %s2981_s4, %s2976_s29 }
  0x12   : > { %p2979_p12 = pnand %p2978_p11, %p2977_p10  ;;  %p2985_p3 = scmp.lt.u32.totalorder %s2976_s29, %s3141_s24 }
  0x13   : > { %p2984_p2 = por %p2983_p1, %p2982_p0 }
  0x14   : > { %p2980_p13 = pneg %p2979_p12 }
  0x15   : > { %p2986_p4 = por %p2985_p3, %p2984_p2 }
  0x17   : > { %p2987_p5 = pnand %p2986_p4, %p2980_p13 }
  0x19   : > { %2990 = shalt.err (!%p2987_p5)
}
  0x1a   : > { %s2991_s7 = scalar_lea.vmem %s3143_s26, 4096  ;;  %s3072_s8 = smov [#allocation3]  }
  0x1b   : > { %p2992_p6 = scmp.ne.s32.totalorder %s3143_s26, %s2991_s7  ;;  %s2996_s9 = sshll.u32 %s3072_s8, 4  ;;  %s2997_s9 = int_to_ptr.vmem [resolvable:$false] %s2996_s9 }
  0x1c   : > { %s2998_s15 = scalar_lea.vmem %s2997_s9, 8192  ;;  %p2999_p9 = scmp.lt.s32.totalorder %s3143_s26, %s2997_s9 }
  0x1d   : > { %p2994_p10 = pnand %p2992_p6, %p2978_p11  ;;  %p3000_p0 = scmp.lt.s32.totalorder %s2998_s15, %s2991_s7 }
  0x1f   : > { %p2995_p12 = pneg %p2994_p10  ;;  %p3001_p1 = por %p3000_p0, %p2999_p9 }
  0x21   : > { %p3002_p2 = pnand %p3001_p1, %p2995_p12 }
  0x23   : > { %3005 = shalt.err (!%p3002_p2)
}
  0x24   : > { %s3073_s16 = smov 128   ;;  %s3074_s19 = smov 8  }
  0x25   : > { %2908 = dma.hbm_to_vmem [thread:$0]  (!%p3145_p8), %s3141_s24, 4096, %s3143_s26, %s3150_s28, %s3073_s16, %s3073_s16, %s3074_s19  }
  0x26   : > { %p124_p11 = scmp.lt.s32.totalorder %s3070_s12, 3  ;;  %p4960_p13 = scmp.ge.s32.totalorder %s3070_s12, 1 }
  0x28   : > { %p125_p3 = pnand %p4960_p13, %p124_p11 }
  0x2a   : > { %128 = sbr.rel (%p125_p3) target bundleno = 803 (0x323), region = 28 }
  0x31   : > { %s130_s20 = sand.u32 1, %s3062_s10  }
  0x32   : > { %s2676_s21 = sshll.u32 %s130_s20, 8  ;;  %s131_s22 = scalar_lea.sflag [#allocation4], %s130_s20 }
  0x33   : > { %s3182_s23 = scalar_lea.vmem [#allocation3], %s2676_s21 }
  0x34   : > { %3049 = dma.done.wait (%p3132_p7), %s131_s22, 4096  }
  0x35   : > { %3051 = vsyncadd (%p3132_p7), %s131_s22, 4294963200  ;;  %vm183_vm0 = vcmask 261120   ;;  %vm186_vm1 = vcmask 254976   ;;  %v3075_v0 = vmov 0.0   ;;  %v152_v1 = vld [vmem:[%s3182_s23 + $0x8] sm:$0xff]  ;;  %v154_v2 = vld [vmem:[%s3182_s23 + $0x18] sm:$0xff] }
  0x36   : > { %184 = vst.msk [vmem:[#allocation2] sm:$0xff] %vm183_vm0, %v3075_v0  ;;  %185 = vst.msk [vmem:[#allocation2 + $0x8] sm:$0xff] %vm183_vm0, %v3075_v0  ;;  %v153_v3 = vld [vmem:[%s3182_s23 + $0x10] sm:$0xff]  ;;  %v155_v10 = vld [vmem:[%s3182_s23 + $0x20] sm:$0xff]  ;;  %vm470_vm2 = vcmask 1046528   ;;  %vm615_vm4 = vcmask 1045504  }
  0x37   : > { %187 = vst.msk [vmem:[#allocation2 + $0x10] sm:$0x3] %vm186_vm1, %v3075_v0  ;;  %190 = vst.msk [vmem:[#allocation2 + $0x28] sm:$0x3] %vm186_vm1, %v3075_v0  ;;  %v156_v11 = vld [vmem:[%s3182_s23 + $0x28] sm:$0xff]  ;;  %v151_v12 = vld [vmem:[%s3182_s23] sm:$0xff] }
  0x38   : > { %189 = vst.msk [vmem:[#allocation2 + $0x20] sm:$0xff] %vm183_vm0, %v3075_v0  ;;  %192 = vst.msk [vmem:[#allocation2 + $0x38] sm:$0xff] %vm183_vm0, %v3075_v0  ;;  %v175_v13 = vld [vmem:[%s3182_s23 + $0xc0] sm:$0xff]  ;;  %v176_v14 = vld [vmem:[%s3182_s23 + $0xc8] sm:$0xff]  ;;  %vm850_vm3 = vsmask.f32 7424 }
  0x39   : > { %193 = vst.msk [vmem:[#allocation2 + $0x40] sm:$0x3] %vm186_vm1, %v3075_v0  ;;  %196 = vst.msk [vmem:[#allocation2 + $0x58] sm:$0x3] %vm186_vm1, %v3075_v0  ;;  %v173_v15 = vld [vmem:[%s3182_s23 + $0xb0] sm:$0xff]  ;;  %v174_v18 = vld [vmem:[%s3182_s23 + $0xb8] sm:$0xff] }
  0x3a   : > { %188 = vst.msk [vmem:[#allocation2 + $0x18] sm:$0xff] %vm183_vm0, %v3075_v0  ;;  %191 = vst.msk [vmem:[#allocation2 + $0x30] sm:$0xff] %vm183_vm0, %v3075_v0  ;;  %v177_v19 = vld [vmem:[%s3182_s23 + $0xd0] sm:$0xff]  ;;  %v178_v20 = vld [vmem:[%s3182_s23 + $0xd8] sm:$0xff]  ;;  %s3076_s12 = smov 64   ;;  %s3077_s18 = smov 32  }
  0x3b   : > { %194 = vst.msk [vmem:[#allocation2 + $0x48] sm:$0xff] %vm183_vm0, %v3075_v0  ;;  %195 = vst.msk [vmem:[#allocation2 + $0x50] sm:$0xff] %vm183_vm0, %v3075_v0  ;;  %v157_v21 = vld [vmem:[%s3182_s23 + $0x30] sm:$0xff]  ;;  %v158_v22 = vld [vmem:[%s3182_s23 + $0x38] sm:$0xff]  ;;  %s3078_s24 = smov 96   ;;  %vm1382_vm5 = vcmask 523264  }
  0x3c   : > { %197 = vst.msk [vmem:[#allocation2 + $0x60] sm:$0xff] %vm183_vm0, %v3075_v0  ;;  %198 = vst.msk [vmem:[#allocation2 + $0x68] sm:$0xff] %vm183_vm0, %v3075_v0  ;;  %v179_v23 = vld [vmem:[%s3182_s23 + $0xe0] sm:$0xff]  ;;  %v180_v28 = vld [vmem:[%s3182_s23 + $0xe8] sm:$0xff]  ;;  %vm1415_vm6 = vcmask 785408   ;;  %vm2276_vm7 = vcmask 523520  }
  0x3d   : > { %199 = vst.msk [vmem:[#allocation2 + $0x70] sm:$0x3] %vm186_vm1, %v3075_v0  ;;  %202 = vst.msk [vmem:[#allocation2 + $0x88] sm:$0x3] %vm186_vm1, %v3075_v0  ;;  %v3245_v4 = vld [vmem:[#allocation2] sm:$0xff]  ;;  %v3247_v5 = vld [vmem:[#allocation2 + $0x8] sm:$0xff] }
  0x3e   : > { %200 = vst.msk [vmem:[#allocation2 + $0x78] sm:$0xff] %vm183_vm0, %v3075_v0  ;;  %201 = vst.msk [vmem:[#allocation2 + $0x80] sm:$0xff] %vm183_vm0, %v3075_v0  ;;  %v274_v6 = vld [vmem:[#allocation2 + $0x10] sm:$0x3]  ;;  %v760_v7 = vmax.f32 %v3245_v4, 0.0  ;;  %v761_v8 = vmax.f32 %v3247_v5, 0.0 }
  0x3f   : > { %203 = vst.msk [vmem:[#allocation2 + $0x90] sm:$0xff] %vm183_vm0, %v3075_v0  ;;  %204 = vst.msk [vmem:[#allocation2 + $0x98] sm:$0xff] %vm183_vm0, %v3075_v0  ;;  %v762_v9 = vmax.f32 %v274_v6, 0.0  ;;  %v159_v29 = vld [vmem:[%s3182_s23 + $0x40] sm:$0xff]  ;;  %v160_v31 = vld [vmem:[%s3182_s23 + $0x48] sm:$0xff]  ;;  %vm2593_vm8 = vcmask 1040384  }
  0x40   : > { %205 = vst.msk [vmem:[#allocation2 + $0xa0] sm:$0x3] %vm186_vm1, %v3075_v0  ;;  %208 = vst.msk [vmem:[#allocation2 + $0xb8] sm:$0x3] %vm186_vm1, %v3075_v0  ;;  %v3263_v16 = vpack.c.bf16 %v761_v8, %v760_v7  ;;  %v181_v32 = vld [vmem:[%s3182_s23 + $0xf0] sm:$0xff]  ;;  %v182_v33 = vld [vmem:[%s3182_s23 + $0xf8] sm:$0xff] }
  0x41   : > { %206 = vst.msk [vmem:[#allocation2 + $0xa8] sm:$0xff] %vm183_vm0, %v3075_v0  ;;  %207 = vst.msk [vmem:[#allocation2 + $0xb0] sm:$0xff] %vm183_vm0, %v3075_v0  ;;  %v815_v17 = vpack.c.bf16 %v762_v9, %v762_v9  ;;  %v161_v44 = vld [vmem:[%s3182_s23 + $0x50] sm:$0xff]  ;;  %v162_v45 = vld [vmem:[%s3182_s23 + $0x58] sm:$0xff]  ;;  %vm2595_vm9 = vcmask 1041408   ;;  %vm2597_vm10 = vcmask 1042432  }
  0x42   : > { %209 = vst.msk [vmem:[#allocation2 + $0xc0] sm:$0xff] %vm183_vm0, %v3075_v0  ;;  %210 = vst.msk [vmem:[#allocation2 + $0xc8] sm:$0xff] %vm183_vm0, %v3075_v0  ;;  %v1076_v24 = vrot.slane %v3263_v16, 1  ;;  %v852_v26 = vshrl.u32 %v3263_v16, 16  ;;  %v854_v27 = vshll.u32 %v3263_v16, 16  ;;  %vm2599_vm11 = vcmask 1043456  }
  0x43   : > { %211 = vst.msk [vmem:[#allocation2 + $0xd0] sm:$0x3] %vm186_vm1, %v3075_v0  ;;  %214 = vst.msk [vmem:[#allocation2 + $0xe8] sm:$0x3] %vm186_vm1, %v3075_v0  ;;  %v1077_v25 = vrot.slane %v815_v17, 1  ;;  %v859_v30 = vshll.u32 %v815_v17, 16 }
  0x44   : > { %212 = vst.msk [vmem:[#allocation2 + $0xd8] sm:$0xff] %vm183_vm0, %v3075_v0  ;;  %213 = vst.msk [vmem:[#allocation2 + $0xe0] sm:$0xff] %vm183_vm0, %v3075_v0  ;;  %v856_v37 = vrot.slane %v854_v27, 1  ;;  %vm2601_vm12 = vcmask 1044480   ;;  %p2711_p7 = scmp.ne.s32.totalorder %s3115_s13, 0 }
  0x45   : > { %215 = vst.msk [vmem:[#allocation2 + $0xf0] sm:$0xff] %vm183_vm0, %v3075_v0  ;;  %216 = vst.msk [vmem:[#allocation2 + $0xf8] sm:$0xff] %vm183_vm0, %v3075_v0  ;;  %v1078_v34 = vsel %vm470_vm2, %v1076_v24, %v1077_v25  ;;  %v861_v41 = vrot.slane %v859_v30, 1 }
  0x46   : > { %217 = vst.msk [vmem:[#allocation2 + $0x100] sm:$0x3] %vm186_vm1, %v3075_v0  ;;  %220 = vst.msk [vmem:[#allocation2 + $0x118] sm:$0x3] %vm186_vm1, %v3075_v0  ;;  %1190 = vrot.lane.b32.xlu1 %v1078_v34, %s3076_s12  ;;  %v857_v46 = vor.u32 %v856_v37, %v852_v26 }
  0x47   : > { %218 = vst.msk [vmem:[#allocation2 + $0x108] sm:$0xff] %vm183_vm0, %v3075_v0  ;;  %219 = vst.msk [vmem:[#allocation2 + $0x110] sm:$0xff] %vm183_vm0, %v3075_v0 }
  0x48   : > { %221 = vst.msk [vmem:[#allocation2 + $0x120] sm:$0xff] %vm183_vm0, %v3075_v0  ;;  %222 = vst.msk [vmem:[#allocation2 + $0x128] sm:$0xff] %vm183_vm0, %v3075_v0  ;;  %v862_v58 = vsel %vm850_vm3, %v857_v46, %v861_v41 }
  0x49   : > { %223 = vst.msk [vmem:[#allocation2 + $0x130] sm:$0x3] %vm186_vm1, %v3075_v0  ;;  %226 = vst.msk [vmem:[#allocation2 + $0x148] sm:$0x3] %vm186_vm1, %v3075_v0  ;;  %1158 = vrot.lane.b32.xlu0 %v862_v58, %s3077_s18  ;;  %v2955_v58 = vld [vmem:[%s4921_s1 + $0x8] sm:$0xff]  }
  0x4a   : > { %224 = vst.msk [vmem:[#allocation2 + $0x138] sm:$0xff] %vm183_vm0, %v3075_v0  ;;  %225 = vst.msk [vmem:[#allocation2 + $0x140] sm:$0xff] %vm183_vm0, %v3075_v0 }
  0x4b   : > { %227 = vst.msk [vmem:[#allocation2 + $0x150] sm:$0xff] %vm183_vm0, %v3075_v0  ;;  %228 = vst.msk [vmem:[#allocation2 + $0x158] sm:$0xff] %vm183_vm0, %v3075_v0 }
  0x4c   : > { %229 = vst.msk [vmem:[#allocation2 + $0x160] sm:$0x3] %vm186_vm1, %v3075_v0  ;;  %232 = vst.msk [vmem:[#allocation2 + $0x178] sm:$0x3] %vm186_vm1, %v3075_v0 }
  0x4d   : > { %230 = vst.msk [vmem:[#allocation2 + $0x168] sm:$0xff] %vm183_vm0, %v3075_v0  ;;  %231 = vst.msk [vmem:[#allocation2 + $0x170] sm:$0xff] %vm183_vm0, %v3075_v0 }
  0x4e   : > { %233 = vst.msk [vmem:[#allocation2 + $0x180] sm:$0xff] %vm183_vm0, %v3075_v0  ;;  %234 = vst.msk [vmem:[#allocation2 + $0x188] sm:$0xff] %vm183_vm0, %v3075_v0 }
  0x4f   : > { %235 = vst.msk [vmem:[#allocation2 + $0x190] sm:$0x3] %vm186_vm1, %v3075_v0  ;;  %238 = vst.msk [vmem:[#allocation2 + $0x1a8] sm:$0x3] %vm186_vm1, %v3075_v0 }
  0x50   : > { %236 = vst.msk [vmem:[#allocation2 + $0x198] sm:$0xff] %vm183_vm0, %v3075_v0  ;;  %237 = vst.msk [vmem:[#allocation2 + $0x1a0] sm:$0xff] %vm183_vm0, %v3075_v0 }
  0x51   : > { %241 = vst.msk [vmem:[#allocation2 + $0x21] sm:$0xff] %vm183_vm0, %v152_v1  ;;  %243 = vst.msk [vmem:[#allocation2 + $0x39] sm:$0xff] %vm183_vm0, %v154_v2 }
  0x52   : > { %242 = vst.msk [vmem:[#allocation2 + $0x31] sm:$0xff] %vm183_vm0, %v153_v3  ;;  %244 = vst.msk [vmem:[#allocation2 + $0x49] sm:$0xff] %vm183_vm0, %v155_v10 }
  0x53   : > { %245 = vst.msk [vmem:[#allocation2 + $0x51] sm:$0xff] %vm183_vm0, %v156_v11  ;;  %240 = vst.msk [vmem:[#allocation2 + $0x19] sm:$0xff] %vm183_vm0, %v151_v12 }
  0x54   : > { %264 = vst.msk [vmem:[#allocation2 + $0x139] sm:$0xff] %vm183_vm0, %v175_v13  ;;  %265 = vst.msk [vmem:[#allocation2 + $0x141] sm:$0xff] %vm183_vm0, %v176_v14 }
  0x55   : > { %262 = vst.msk [vmem:[#allocation2 + $0x121] sm:$0xff] %vm183_vm0, %v173_v15  ;;  %263 = vst.msk [vmem:[#allocation2 + $0x129] sm:$0xff] %vm183_vm0, %v174_v18 }
  0x56   : > { %266 = vst.msk [vmem:[#allocation2 + $0x151] sm:$0xff] %vm183_vm0, %v177_v19  ;;  %267 = vst.msk [vmem:[#allocation2 + $0x159] sm:$0xff] %vm183_vm0, %v178_v20 }
  0x57   : > { %246 = vst.msk [vmem:[#allocation2 + $0x61] sm:$0xff] %vm183_vm0, %v157_v21  ;;  %247 = vst.msk [vmem:[#allocation2 + $0x69] sm:$0xff] %vm183_vm0, %v158_v22 }
  0x58   : > { %268 = vst.msk [vmem:[#allocation2 + $0x169] sm:$0xff] %vm183_vm0, %v179_v23  ;;  %269 = vst.msk [vmem:[#allocation2 + $0x171] sm:$0xff] %vm183_vm0, %v180_v28  ;;  %v277_v35 = vld [vmem:[#allocation2 + $0x28] sm:$0x3]  ;;  %v3291_v36 = vld [vmem:[#allocation2 + $0x40] sm:$0x3] }
  0x59   : > { %248 = vst.msk [vmem:[#allocation2 + $0x79] sm:$0xff] %vm183_vm0, %v159_v29  ;;  %v278_v38 = vld [vmem:[#allocation2 + $0x30] sm:$0xff]  ;;  %249 = vst.msk [vmem:[#allocation2 + $0x81] sm:$0xff] %vm183_vm0, %v160_v31  ;;  %v328_v39 = vadd.f32 %v277_v35, %v274_v6  ;;  %v3298_v40 = vadd.f32 %v3291_v36, %v277_v35  ;;  %v279_v42 = vld [vmem:[#allocation2 + $0x38] sm:$0xff]  ;;  %v765_v50 = vmax.f32 %v277_v35, 0.0  ;;  %v768_v51 = vmax.f32 %v3291_v36, 0.0 }
  0x5a   : > { %270 = vst.msk [vmem:[#allocation2 + $0x181] sm:$0xff] %vm183_vm0, %v181_v32  ;;  %271 = vst.msk [vmem:[#allocation2 + $0x189] sm:$0xff] %vm183_vm0, %v182_v33  ;;  %v766_v43 = vmax.f32 %v278_v38, 0.0  ;;  %v767_v47 = vmax.f32 %v279_v42, 0.0  ;;  %v3302_v48 = vld [vmem:[#allocation2 + $0x48] sm:$0xff]  ;;  %v3304_v49 = vld [vmem:[#allocation2 + $0x50] sm:$0xff] }
  0x5b   : > { %250 = vst.msk [vmem:[#allocation2 + $0x91] sm:$0xff] %vm183_vm0, %v161_v44  ;;  %251 = vst.msk [vmem:[#allocation2 + $0x99] sm:$0xff] %vm183_vm0, %v162_v45  ;;  %v376_v52 = vadd.f32 %v328_v39, %v3291_v36  ;;  %v769_v53 = vmax.f32 %v3302_v48, 0.0  ;;  %v770_v54 = vmax.f32 %v3304_v49, 0.0  ;;  %v3313_v55 = vadd.f32 %v3302_v48, %v278_v38  ;;  %v275_v56 = vld [vmem:[#allocation2 + $0x18] sm:$0xff]  ;;  %v276_v57 = vld [vmem:[#allocation2 + $0x20] sm:$0xff] }
  0x5c   : > { %v3316_v59 = vpack.c.bf16 %v767_v47, %v766_v43  ;;  %v3319_v60 = vadd.f32 %v3304_v49, %v279_v42  ;;  %v327_v61 = vadd.f32 %v276_v57, %v3247_v5  ;;  %v330_v1 = vadd.f32 %v279_v42, %v276_v57  ;;  %v3348_v27 = vld [vmem:[#allocation2 + $0x138] sm:$0xff]  ;;  %v3354_v32 = vld [vmem:[#allocation2 + $0x140] sm:$0xff] }
  0x5d   : > { %v474_v62 = vrot.slane %v376_v52, 1  ;;  %v619_v63 = vrot.slane %v376_v52, 2  ;;  %v3323_v0 = vpack.c.bf16 %v770_v54, %v769_v53  ;;  %v763_v3 = vmax.f32 %v275_v56, 0.0  ;;  %v2952_v44 = vld [vmem:[%s4921_s1 + $0x40] sm:$0xff]   ;;  %v2954_v52 = vld [vmem:[%s4921_s1 + $0x48] sm:$0xff]  }
  0x5e   : > { %1286 = vrot.lane.b32.xlu1 %v3316_v59, %s3076_s12  ;;  %v375_v2 = vadd.f32 %v327_v61, %v279_v42  ;;  %v764_v6 = vmax.f32 %v276_v57, 0.0  ;;  %v326_v7 = vadd.f32 %v275_v56, %v3245_v4  ;;  %v3329_v8 = vadd.f32 %v330_v1, %v3304_v49  ;;  %2717 = vmatprep.subr.bf16.mxu0 %v2952_v44 }
  0x5f   : > { %v329_v5 = vadd.f32 %v278_v38, %v275_v56  ;;  %v3331_v9 = vpack.c.bf16 %v765_v50, %v765_v50  ;;  %v3333_v10 = vpack.c.bf16 %v768_v51, %v768_v51  ;;  %1288 = vrot.lane.b32.xlu0 %v3323_v0, %s3076_s12  ;;  %v1082_v30 = vrot.slane %v3316_v59, 1  ;;  %v2953_v51 = vld [vmem:[%s4921_s1] sm:$0xff]   ;;  %2883 = vmatprep.subr.bf16.mxu1 %v2952_v44 }
  0x60   : > { %v472_v11 = vrot.slane %v375_v2, 1  ;;  %v617_v12 = vrot.slane %v375_v2, 2  ;;  %v3335_v13 = vpack.c.bf16 %v764_v6, %v763_v3  ;;  %v374_v14 = vadd.f32 %v326_v7, %v278_v38  ;;  %v3362_v38 = vld [vmem:[#allocation2 + $0x148] sm:$0x3]  ;;  %2718 = vmatpush3.bf16.msra.mxu0 %v2953_v51  ;;  %2891 = vmatpush3.bf16.msra.mxu1 %v2953_v51 }
  0x61   : > { %v477_v15 = vrot.slane %v3329_v8, 1  ;;  %v622_v4 = vrot.slane %v3329_v8, 2  ;;  %v377_v17 = vadd.f32 %v329_v5, %v3302_v48  ;;  %v1080_v18 = vrot.slane %v3331_v9, 1  ;;  %v3397_v5 = vld [vmem:[#allocation2 + $0x120] sm:$0xff]  ;;  %2719 = vmatprep.subr.bf16.mxu0 %v2954_v52  ;;  %2884 = vmatprep.subr.bf16.mxu1 %v2954_v52 }
  0x62   : > { %v475_v19 = vsel %vm470_vm2, %v472_v11, %v474_v62  ;;  %v620_v20 = vsel %vm615_vm4, %v617_v12, %v619_v63  ;;  %1222 = vrot.lane.b32.xlu1 %v3335_v13, %s3078_s24  ;;  %v471_v21 = vrot.slane %v374_v14, 1  ;;  %v616_v22 = vrot.slane %v374_v14, 2 }
  0x63   : > { %v584_v23 = vadd.f32 %v475_v19, %v375_v2  ;;  %v476_v24 = vrot.slane %v377_v17, 1  ;;  %v621_v25 = vrot.slane %v377_v17, 2  ;;  %v1079_v26 = vrot.slane %v3335_v13, 1 }
  0x64   : > { %v473_v28 = vsel %vm470_vm2, %v471_v21, %v472_v11  ;;  %v618_v29 = vsel %vm615_vm4, %v616_v22, %v617_v12  ;;  %v1083_v31 = vrot.slane %v3333_v10, 1  ;;  %v799_v43 = vmax.f32 %v3348_v27, 0.0  ;;  %v163_v11 = vld [vmem:[%s3182_s23 + $0x60] sm:$0xff]  ;;  %v164_v12 = vld [vmem:[%s3182_s23 + $0x68] sm:$0xff]  ;;  %2720 = vmatpush3.bf16.msra.mxu0 %v2955_v58  ;;  %2892 = vmatpush3.bf16.msra.mxu1 %v2955_v58 }
  0x65   : > { %v729_v33 = vadd.f32 %v620_v20, %v584_v23  ;;  %v478_v34 = vsel %vm470_vm2, %v476_v24, %v477_v15  ;;  %v583_v35 = vadd.f32 %v473_v28, %v374_v14  ;;  %v623_v37 = vsel %vm615_vm4, %v621_v25, %v622_v4  ;;  %v3406_v20 = vld [vmem:[#allocation2 + $0x130] sm:$0x3]  ;;  %252 = vst.msk [vmem:[#allocation2 + $0xa9] sm:$0xff] %vm183_vm0, %v163_v11  ;;  %v3414_v25 = vld [vmem:[#allocation2 + $0x128] sm:$0xff] }
  0x66   : > { %v585_v39 = vadd.f32 %v478_v34, %v377_v17  ;;  %1224 = vrot.lane.b32.xlu1 %v3316_v59, %s3078_s24  ;;  %v1081_v41 = vsel %vm470_vm2, %v1079_v26, %v1080_v18  ;;  %v3368_v42 = vsel %vm470_vm2, %v1082_v30, %v1083_v31  ;;  %v800_v50 = vmax.f32 %v3354_v32, 0.0  ;;  %253 = vst.msk [vmem:[#allocation2 + $0xb1] sm:$0xff] %vm183_vm0, %v164_v12  ;;  %v3416_v26 = vld [vmem:[#allocation2 + $0x58] sm:$0x3] }
  0x67   : > { %4961 = vst [vmem:[#allocation9_spill] sm:$0xff] %v3368_v42  ;;  %v2416_v45 = vsel %vm183_vm0, %v729_v33, 0.0  ;;  %v2485_v46 = vmul.f32 %v729_v33, %v729_v33  ;;  %v728_v47 = vadd.f32 %v618_v29, %v583_v35  ;;  %1254 = vrot.lane.b32.xlu0 %v1081_v41, %s3077_s18  ;;  %v801_v54 = vmax.f32 %v3362_v38, 0.0  ;;  %v2957_v33 = vld [vmem:[%s4921_s1 + $0x10] sm:$0xff]  }
  0x68   : > { %v730_v53 = vadd.f32 %v623_v37, %v585_v39  ;;  %v864_v56 = vshrl.u32 %v3335_v13, 16  ;;  %v866_v57 = vshll.u32 %v3335_v13, 16  ;;  %v3391_v1 = vpack.c.bf16 %v800_v50, %v799_v43  ;;  %v2958_v39 = vld [vmem:[%s4921_s1 + $0x58] sm:$0xff]  }
  0x69   : > { %v2517_v61 = vsel %vm183_vm0, %v2485_v46, 0.0  ;;  %v2415_v62 = vsel %vm183_vm0, %v728_v47, 0.0  ;;  %v2484_v63 = vmul.f32 %v728_v47, %v728_v47  ;;  %v3395_v7 = vpack.c.bf16 %v801_v54, %v801_v54 }
  0x6a   : > { %v2417_v2 = vadd.f32 %v2416_v45, %v2415_v62  ;;  %v2418_v3 = vsel %vm183_vm0, %v730_v53, 0.0  ;;  %v2486_v6 = vmul.f32 %v730_v53, %v730_v53  ;;  %1192 = vrot.lane.b32.xlu1 %v1081_v41, %s3076_s12  ;;  %v1115_v17 = vrot.slane %v3391_v1, 1 }
  0x6b   : > { %v2516_v14 = vsel %vm183_vm0, %v2484_v63, 0.0  ;;  %1256 = vrot.lane.b32.xlu0 %v3368_v42, %s3077_s18  ;;  %v868_v18 = vrot.slane %v866_v57, 1  ;;  %v871_v19 = vshll.u32 %v3331_v9, 16  ;;  %v1116_v24 = vrot.slane %v3395_v7, 1  ;;  %v2956_v9 = vld [vmem:[%s4921_s1 + $0x50] sm:$0xff]  }
  0x6c   : > { %v3410_v21 = vadd.f32 %v2418_v3, %v2417_v2  ;;  %v2518_v22 = vadd.f32 %v2517_v61, %v2516_v14  ;;  %v2519_v23 = vsel %vm183_vm0, %v2486_v6, 0.0  ;;  %v876_v30 = vshrl.u32 %v3316_v59, 16  ;;  %2721 = vmatprep.subr.bf16.mxu0 %v2956_v9  ;;  %2885 = vmatprep.subr.bf16.mxu1 %v2956_v9  ;;  %v3482_v9 = vld [vmem:[#allocation2 + $0x150] sm:$0xff] }
  0x6d   : > { %v869_v28 = vor.u32 %v868_v18, %v864_v56  ;;  %v873_v29 = vrot.slane %v871_v19, 1  ;;  %v878_v31 = vshll.u32 %v3316_v59, 16  ;;  %v3429_v35 = vsel %vm470_vm2, %v1115_v17, %v1116_v24  ;;  %2722 = vmatpush3.bf16.msra.mxu0 %v2957_v33  ;;  %2893 = vmatpush3.bf16.msra.mxu1 %v2957_v33  ;;  %v165_v17 = vld [vmem:[%s3182_s23 + $0x70] sm:$0xff]  ;;  %v166_v18 = vld [vmem:[%s3182_s23 + $0x78] sm:$0xff] }
  0x6e   : > { %v3426_v34 = vadd.f32 %v2519_v23, %v2518_v22  ;;  %4962 = vst [vmem:[#allocation10_spill] sm:$0xff] %v3429_v35  ;;  %v883_v37 = vshll.u32 %v3333_v10, 16  ;;  %v796_v44 = vmax.f32 %v3397_v5, 0.0  ;;  %v797_v45 = vmax.f32 %v3414_v25, 0.0  ;;  %v2959_v10 = vld [vmem:[%s4921_s1 + $0x18] sm:$0xff]   ;;  %2723 = vmatprep.subr.bf16.mxu0 %v2958_v39  ;;  %2886 = vmatprep.subr.bf16.mxu1 %v2958_v39  ;;  %254 = vst.msk [vmem:[#allocation2 + $0xc1] sm:$0xff] %vm183_vm0, %v165_v17 }
  0x6f   : > { %1278 = vrot.lane.b32.xlu0 %v3429_v35, %s3077_s18  ;;  %v3438_v41 = vsel %vm850_vm3, %v869_v28, %v873_v29  ;;  %v880_v43 = vrot.slane %v878_v31, 1  ;;  %v798_v47 = vmax.f32 %v3406_v20, 0.0  ;;  %v3450_v50 = vadd.f32 %v3416_v26, %v3291_v36  ;;  %255 = vst.msk [vmem:[#allocation2 + $0xc9] sm:$0xff] %vm183_vm0, %v166_v18  ;;  %v2962_v39 = vld [vmem:[%s4921_s1 + $0x68] sm:$0xff]  }
  0x70   : > { %1160 = vrot.lane.b32.xlu1 %v3438_v41, %s3077_s18  ;;  %v885_v46 = vrot.slane %v883_v37, 1  ;;  %v379_v51 = vadd.f32 %v3298_v40, %v3416_v26  ;;  %v3454_v53 = vpack.c.bf16 %v797_v45, %v796_v44  ;;  %v771_v54 = vmax.f32 %v3416_v26, 0.0  ;;  %v2960_v40 = vld [vmem:[%s4921_s1 + $0x60] sm:$0xff]   ;;  %v3498_v44 = vld [vmem:[#allocation2 + $0x158] sm:$0xff] }
  0x71   : > { %v881_v52 = vor.u32 %v880_v43, %v876_v30  ;;  %v888_v56 = vshrl.u32 %v3323_v0, 16  ;;  %v839_v57 = vpack.c.bf16 %v798_v47, %v798_v47  ;;  %v890_v36 = vshll.u32 %v3323_v0, 16  ;;  %2724 = vmatpush3.bf16.msra.mxu0 %v2959_v10  ;;  %2894 = vmatpush3.bf16.msra.mxu1 %v2959_v10  ;;  %v2963_v47 = vld [vmem:[%s4921_s1 + $0x28] sm:$0xff]  }
  0x72   : > { %v479_v58 = vrot.slane %v379_v51, 1  ;;  %v624_v61 = vrot.slane %v379_v51, 2  ;;  %v996_v63 = vshrl.u32 %v3454_v53, 16  ;;  %v998_v2 = vshll.u32 %v3454_v53, 16  ;;  %2725 = vmatprep.subr.bf16.mxu0 %v2960_v40  ;;  %2887 = vmatprep.subr.bf16.mxu1 %v2960_v40 }
  0x73   : > { %v3463_v62 = vsel %vm850_vm3, %v881_v52, %v885_v46  ;;  %v3467_v3 = vpack.c.bf16 %v771_v54, %v771_v54  ;;  %v1003_v6 = vshll.u32 %v839_v57, 16  ;;  %v892_v14 = vrot.slane %v890_v36, 1  ;;  %v3524_v54 = vld [vmem:[#allocation2 + $0x160] sm:$0x3] }
  0x74   : > { %1318 = vrot.lane.b32.xlu0 %v3463_v62, %s3078_s24  ;;  %v480_v11 = vsel %vm470_vm2, %v477_v15, %v479_v58  ;;  %v625_v12 = vsel %vm615_vm4, %v622_v4, %v624_v61  ;;  %v1000_v19 = vrot.slane %v998_v2, 1  ;;  %v1112_v24 = vrot.slane %v3454_v53, 1  ;;  %v2961_v15 = vld [vmem:[%s4921_s1 + $0x20] sm:$0xff]  }
  0x75   : > { %v586_v22 = vadd.f32 %v480_v11, %v3329_v8  ;;  %v895_v23 = vshll.u32 %v3467_v3, 16  ;;  %v1005_v4 = vrot.slane %v1003_v6, 1  ;;  %v893_v28 = vor.u32 %v892_v14, %v888_v56  ;;  %2726 = vmatpush3.bf16.msra.mxu0 %v2961_v15  ;;  %2895 = vmatpush3.bf16.msra.mxu1 %v2961_v15  ;;  %v2964_v56 = vld [vmem:[%s4921_s1 + $0x70] sm:$0xff]   ;;  %v3541_v6 = vld [vmem:[#allocation2 + $0x60] sm:$0xff] }
  0x76   : > { %v1113_v29 = vrot.slane %v839_v57, 1  ;;  %v362_v8 = vadd.f32 %v3348_v27, %v3397_v5  ;;  %v1001_v30 = vor.u32 %v1000_v19, %v996_v63  ;;  %v363_v37 = vadd.f32 %v3354_v32, %v3414_v25  ;;  %2727 = vmatprep.subr.bf16.mxu0 %v2962_v39  ;;  %2888 = vmatprep.subr.bf16.mxu1 %v2962_v39  ;;  %v2965_v11 = vld [vmem:[%s4921_s1 + $0x30] sm:$0xff]   ;;  %v3554_v19 = vld [vmem:[#allocation2 + $0x68] sm:$0xff] }
  0x77   : > { %v731_v31 = vadd.f32 %v625_v12, %v586_v22  ;;  %v897_v33 = vrot.slane %v895_v23, 1  ;;  %v364_v43 = vadd.f32 %v3362_v38, %v3406_v20  ;;  %v802_v61 = vmax.f32 %v3482_v9, 0.0  ;;  %v2966_v12 = vld [vmem:[%s4921_s1 + $0x78] sm:$0xff]   ;;  %v167_v22 = vld [vmem:[%s3182_s23 + $0x80] sm:$0xff] }
  0x78   : > { %v3501_v45 = vadd.f32 %v362_v8, %v3482_v9  ;;  %v3504_v5 = vsel %vm850_vm3, %v1001_v30, %v1005_v4  ;;  %v3521_v51 = vadd.f32 %v363_v37, %v3498_v44  ;;  %v3531_v58 = vsel %vm470_vm2, %v1112_v24, %v1113_v29  ;;  %v168_v23 = vld [vmem:[%s3182_s23 + $0x88] sm:$0xff]  ;;  %v169_v24 = vld [vmem:[%s3182_s23 + $0x90] sm:$0xff]  ;;  %256 = vst.msk [vmem:[#allocation2 + $0xd9] sm:$0xff] %vm183_vm0, %v167_v22  ;;  %v170_v29 = vld [vmem:[%s3182_s23 + $0x98] sm:$0xff] }
  0x79   : > { %v3507_v10 = vsel %vm850_vm3, %v893_v28, %v897_v33  ;;  %v2420_v25 = vsel %vm183_vm0, %v731_v31, 0.0  ;;  %v2487_v46 = vmul.f32 %v731_v31, %v731_v31  ;;  %1182 = vrot.lane.b32.xlu1 %v3504_v5, %s3077_s18  ;;  %v412_v40 = vadd.f32 %v364_v43, %v3524_v54  ;;  %2728 = vmatpush3.bf16.msra.mxu0 %v2963_v47  ;;  %v171_v8 = vld [vmem:[%s3182_s23 + $0xa0] sm:$0xff]  ;;  %v172_v30 = vld [vmem:[%s3182_s23 + $0xa8] sm:$0xff] }
  0x7a   : > { %4963 = vst [vmem:[#allocation11_spill] sm:$0xff] %v3501_v45  ;;  %1320 = vrot.lane.b32.xlu0 %v3507_v10, %s3078_s24  ;;  %v3518_v20 = vadd.f32 %v2420_v25, %v3410_v21  ;;  %4964 = vst [vmem:[#allocation12_spill] sm:$0xff] %v3521_v51  ;;  %v531_v52 = vrot.slane %v3501_v45, 1  ;;  %v803_v21 = vmax.f32 %v3498_v44, 0.0  ;;  %v532_v63 = vrot.slane %v3521_v51, 1  ;;  %2896 = vmatpush3.bf16.msra.mxu1 %v2963_v47 }
  0x7b   : > { %v2521_v57 = vsel %vm183_vm0, %v2487_v46, 0.0  ;;  %v4925_v2 = vrot.slane %v3521_v51, 2  ;;  %v1085_v17 = vrot.slane %v3323_v0, 1  ;;  %v1086_v18 = vrot.slane %v3467_v3, 1  ;;  %2729 = vmatprep.subr.bf16.mxu0 %v2964_v56  ;;  %257 = vst.msk [vmem:[#allocation2 + $0xe1] sm:$0xff] %vm183_vm0, %v168_v23  ;;  %258 = vst.msk [vmem:[#allocation2 + $0xf1] sm:$0xff] %vm183_vm0, %v169_v24  ;;  %2889 = vmatprep.subr.bf16.mxu1 %v2964_v56 }
  0x7c   : > { %v3536_v36 = vadd.f32 %v2521_v57, %v3426_v34  ;;  %v3549_v14 = vpack.c.bf16 %v803_v21, %v802_v61  ;;  %v804_v34 = vmax.f32 %v3524_v54, 0.0  ;;  %v3562_v15 = vsel %vm470_vm2, %v531_v52, %v532_v63  ;;  %259 = vst.msk [vmem:[#allocation2 + $0xf9] sm:$0xff] %vm183_vm0, %v170_v29  ;;  %260 = vst.msk [vmem:[#allocation2 + $0x109] sm:$0xff] %vm183_vm0, %v171_v8  ;;  %v2967_v61 = vld [vmem:[%s4921_s1 + $0x38] sm:$0xff]  }
  0x7d   : > { %1214 = vrot.lane.b32.xlu1 %v3531_v58, %s3076_s12  ;;  %4965 = vst [vmem:[#allocation13_spill] sm:$0xff] %v3562_v15  ;;  %v534_v4 = vrot.slane %v412_v40, 1  ;;  %v679_v28 = vrot.slane %v412_v40, 2  ;;  %v3566_v3 = vadd.f32 %v3541_v6, %v3302_v48  ;;  %v3581_v37 = vsel %vm470_vm2, %v1085_v17, %v1086_v18  ;;  %261 = vst.msk [vmem:[#allocation2 + $0x111] sm:$0xff] %vm183_vm0, %v172_v30 }
  0x7e   : > { %1310 = vrot.lane.b32.xlu0 %v3549_v14, %s3076_s12  ;;  %v3576_v31 = vpack.c.bf16 %v804_v34, %v804_v34  ;;  %v1020_v33 = vshrl.u32 %v3549_v14, 16  ;;  %v1022_v48 = vshll.u32 %v3549_v14, 16  ;;  %4966 = vst [vmem:[#allocation14_spill] sm:$0xff] %v3581_v37  ;;  %v3592_v25 = vadd.f32 %v3554_v19, %v3304_v49  ;;  %2730 = vmatpush3.bf16.msra.mxu0 %v2965_v11 }
  0x7f   : > { %v535_v39 = vsel %vm470_vm2, %v532_v63, %v534_v4  ;;  %v680_v43 = vsel %vm615_vm4, %v4925_v2, %v679_v28  ;;  %v380_v46 = vadd.f32 %v3313_v55, %v3541_v6  ;;  %v381_v57 = vadd.f32 %v3319_v60, %v3554_v19  ;;  %2897 = vmatpush3.bf16.msra.mxu1 %v2965_v11  ;;  %v3605_v63 = vld [vmem:[#allocation2 + $0x70] sm:$0x3] }
  0x80   : > { %v608_v47 = vadd.f32 %v535_v39, %v3521_v51  ;;  %v1024_v52 = vrot.slane %v1022_v48, 1  ;;  %v1027_v56 = vshll.u32 %v3576_v31, 16  ;;  %v772_v40 = vmax.f32 %v3541_v6, 0.0  ;;  %2731 = vmatprep.subr.bf16.mxu0 %v2966_v12  ;;  %2890 = vmatprep.subr.bf16.mxu1 %v2966_v12 }
  0x81   : > { %v481_v21 = vrot.slane %v380_v46, 1  ;;  %v626_v49 = vrot.slane %v380_v46, 2  ;;  %v773_v55 = vmax.f32 %v3554_v19, 0.0  ;;  %v3613_v11 = vadd.f32 %v3605_v63, %v3416_v26 }
  0x82   : > { %v3607_v34 = vadd.f32 %v680_v43, %v608_v47  ;;  %v1025_v17 = vor.u32 %v1024_v52, %v1020_v33  ;;  %v1029_v60 = vrot.slane %v1027_v56, 1  ;;  %1258 = vrot.lane.b32.xlu0 %v3581_v37, %s3077_s18  ;;  %v382_v22 = vadd.f32 %v3450_v50, %v3605_v63  ;;  %2732 = vmatpush3.bf16.msra.mxu0 %v2967_v61 }
  0x83   : > { %v3615_v18 = vpack.c.bf16 %v773_v55, %v772_v40  ;;  %v482_v23 = vrot.slane %v381_v57, 1  ;;  %v627_v24 = vrot.slane %v381_v57, 2  ;;  %v365_v12 = vadd.f32 %v3482_v9, %v3348_v27  ;;  %2898 = vmatpush3.bf16.msra.mxu1 %v2967_v61 }
  0x84   : > { %4967 = vst [vmem:[#allocation15_spill] sm:$0xff] %v3607_v34  ;;  %v3622_v4 = vsel %vm850_vm3, %v1025_v17, %v1029_v60  ;;  %v774_v28 = vmax.f32 %v3605_v63, 0.0  ;;  %v484_v29 = vrot.slane %v382_v22, 1  ;;  %v629_v8 = vrot.slane %v382_v22, 2 }
  0x85   : > { %4968 = vst [vmem:[#allocation16_spill] sm:$0xff] %v3615_v18  ;;  %1342 = vrot.lane.b32.xlu1 %v3622_v4, %s3078_s24  ;;  %v483_v26 = vsel %vm470_vm2, %v481_v21, %v482_v23  ;;  %v628_v50 = vsel %vm615_vm4, %v626_v49, %v627_v24  ;;  %v366_v30 = vadd.f32 %v3498_v44, %v3354_v32  ;;  %v900_v47 = vshrl.u32 %v3615_v18, 16 }
  0x86   : > { %v367_v27 = vadd.f32 %v3524_v54, %v3362_v38  ;;  %1162 = vrot.lane.b32.xlu0 %v3463_v62, %s3077_s18  ;;  %v587_v33 = vadd.f32 %v483_v26, %v380_v46  ;;  %v3635_v48 = vpack.c.bf16 %v774_v28, %v774_v28  ;;  %v485_v39 = vsel %vm470_vm2, %v482_v23, %v484_v29  ;;  %v3653_v26 = vld [vmem:[#allocation2 + $0x168] sm:$0xff] }
  0x87   : > { %v630_v43 = vsel %vm615_vm4, %v627_v24, %v629_v8  ;;  %v902_v52 = vshll.u32 %v3615_v18, 16  ;;  %v588_v56 = vadd.f32 %v485_v39, %v381_v57  ;;  %v1010_v38 = vshll.u32 %v3391_v1, 16 }
  0x88   : > { %v732_v61 = vadd.f32 %v628_v50, %v587_v33  ;;  %v907_v32 = vshll.u32 %v3635_v48, 16  ;;  %v1008_v21 = vshrl.u32 %v3391_v1, 16  ;;  %v1015_v49 = vshll.u32 %v3395_v7, 16  ;;  %v3657_v33 = vld [vmem:[#allocation2 + $0x170] sm:$0xff] }
  0x89   : > { %1246 = vrot.lane.b32.xlu1 %v3391_v1, %s3078_s24  ;;  %v904_v46 = vrot.slane %v902_v52, 1  ;;  %v1118_v40 = vrot.slane %v3549_v14, 1  ;;  %v733_v55 = vadd.f32 %v630_v43, %v588_v56  ;;  %v1012_v24 = vrot.slane %v1010_v38, 1 }
  0x8a   : > { %1290 = vrot.lane.b32.xlu0 %v3615_v18, %s3076_s12  ;;  %v909_v57 = vrot.slane %v907_v32, 1  ;;  %v2422_v17 = vsel %vm183_vm0, %v732_v61, 0.0  ;;  %v2488_v60 = vmul.f32 %v732_v61, %v732_v61  ;;  %v1119_v28 = vrot.slane %v3576_v31, 1  ;;  %v3677_v32 = vld [vmem:[#allocation2 + $0x178] sm:$0x3] }
  0x8b   : > { %v905_v22 = vor.u32 %v904_v46, %v900_v47  ;;  %v2423_v23 = vadd.f32 %v2422_v17, %v3518_v20  ;;  %v2424_v7 = vsel %vm183_vm0, %v733_v55, 0.0  ;;  %v2489_v29 = vmul.f32 %v733_v55, %v733_v55 }
  0x8c   : > { %v2523_v50 = vsel %vm183_vm0, %v2488_v60, 0.0  ;;  %v1017_v8 = vrot.slane %v1015_v49, 1  ;;  %v1013_v43 = vor.u32 %v1012_v24, %v1008_v21  ;;  %v3671_v52 = vadd.f32 %v365_v12, %v3653_v26  ;;  %v3696_v60 = vld [vmem:[#allocation2 + $0x78] sm:$0xff] }
  0x8d   : > { %1194 = vrot.lane.b32.xlu1 %v3368_v42, %s3076_s12  ;;  %v3662_v39 = vsel %vm850_vm3, %v905_v22, %v909_v57  ;;  %v3664_v20 = vadd.f32 %v2424_v7, %v2423_v23  ;;  %v2524_v31 = vadd.f32 %v2523_v50, %v3536_v36  ;;  %v2525_v47 = vsel %vm183_vm0, %v2489_v29, 0.0  ;;  %v3698_v22 = vld [vmem:[#allocation2 + $0x80] sm:$0xff] }
  0x8e   : > { %1322 = vrot.lane.b32.xlu0 %v3662_v39, %s3078_s24  ;;  %4969 = vst [vmem:[#allocation17_spill] sm:$0xff] %v3671_v52  ;;  %v3674_v56 = vadd.f32 %v366_v30, %v3657_v33  ;;  %v805_v61 = vmax.f32 %v3653_v26, 0.0  ;;  %v3682_v36 = vsel %vm470_vm2, %v1118_v40, %v1119_v28  ;;  %v806_v46 = vmax.f32 %v3657_v33, 0.0  ;;  %v3856_v52 = vld [vmem:[#allocation2 + $0xa0] sm:$0x3] }
  0x8f   : > { %v3679_v38 = vadd.f32 %v2525_v47, %v2524_v31  ;;  %4971 = vst [vmem:[#allocation19_spill] sm:$0xff] %v3682_v36  ;;  %v415_v21 = vadd.f32 %v367_v27, %v3677_v32  ;;  %v3687_v49 = vsel %vm850_vm3, %v1013_v43, %v1017_v8  ;;  %v807_v40 = vmax.f32 %v3677_v32, 0.0 }
  0x90   : > { %4970 = vst [vmem:[#allocation18_spill] sm:$0xff] %v3674_v56  ;;  %v4924_v12 = vrot.slane %v3674_v56, 1  ;;  %v4923_v30 = vrot.slane %v3674_v56, 2  ;;  %v3693_v55 = vpack.c.bf16 %v806_v46, %v805_v61  ;;  %v1088_v27 = vrot.slane %v3615_v18, 1 }
  0x91   : > { %1226 = vrot.lane.b32.xlu1 %v3323_v0, %s3078_s24  ;;  %v539_v57 = vrot.slane %v415_v21, 1  ;;  %v684_v17 = vrot.slane %v415_v21, 2  ;;  %v1089_v23 = vrot.slane %v3635_v48, 1  ;;  %v3706_v24 = vadd.f32 %v3696_v60, %v3541_v6 }
  0x92   : > { %1280 = vrot.lane.b32.xlu0 %v3682_v36, %s3077_s18  ;;  %v3710_v28 = vadd.f32 %v3698_v22, %v3554_v19  ;;  %v3718_v50 = vpack.c.bf16 %v807_v40, %v807_v40  ;;  %v1032_v48 = vshrl.u32 %v3693_v55, 16  ;;  %v1034_v6 = vshll.u32 %v3693_v55, 16  ;;  %v3739_v40 = vld [vmem:[#allocation2 + $0x88] sm:$0x3] }
  0x93   : > { %v540_v7 = vsel %vm470_vm2, %v4924_v12, %v539_v57  ;;  %v685_v29 = vsel %vm615_vm4, %v4923_v30, %v684_v17  ;;  %v3724_v31 = vsel %vm470_vm2, %v1088_v27, %v1089_v23  ;;  %v383_v19 = vadd.f32 %v3566_v3, %v3696_v60 }
  0x94   : > { %v610_v8 = vadd.f32 %v540_v7, %v3674_v56  ;;  %4972 = vst [vmem:[#allocation20_spill] sm:$0xff] %v3724_v31  ;;  %v1039_v43 = vshll.u32 %v3718_v50, 16  ;;  %v384_v47 = vadd.f32 %v3592_v25, %v3698_v22  ;;  %v775_v61 = vmax.f32 %v3696_v60, 0.0 }
  0x95   : > { %1184 = vrot.lane.b32.xlu1 %v3687_v49, %s3077_s18  ;;  %v776_v46 = vmax.f32 %v3698_v22, 0.0  ;;  %v1036_v57 = vrot.slane %v1034_v6, 1  ;;  %v486_v17 = vrot.slane %v383_v19, 1  ;;  %v631_v3 = vrot.slane %v383_v19, 2 }
  0x96   : > { %1312 = vrot.lane.b32.xlu0 %v3693_v55, %s3076_s12  ;;  %v3737_v21 = vadd.f32 %v685_v29, %v610_v8  ;;  %v1041_v27 = vrot.slane %v1039_v43, 1  ;;  %v3745_v25 = vadd.f32 %v3739_v40, %v3605_v63  ;;  %v385_v7 = vadd.f32 %v3613_v11, %v3739_v40 }
  0x97   : > { %v3741_v23 = vpack.c.bf16 %v776_v46, %v775_v61  ;;  %v1037_v30 = vor.u32 %v1036_v57, %v1032_v48  ;;  %v487_v12 = vrot.slane %v384_v47, 1  ;;  %v632_v2 = vrot.slane %v384_v47, 2 }
  0x98   : > { %4973 = vst [vmem:[#allocation21_spill] sm:$0xff] %v3737_v21  ;;  %v489_v29 = vrot.slane %v385_v7, 1  ;;  %v634_v8 = vrot.slane %v385_v7, 2  ;;  %v777_v6 = vmax.f32 %v3739_v40, 0.0 }
  0x99   : > { %4974 = vst [vmem:[#allocation22_spill] sm:$0xff] %v3741_v23  ;;  %1216 = vrot.lane.b32.xlu1 %v3429_v35, %s3076_s12  ;;  %v912_v43 = vshrl.u32 %v3741_v23, 16  ;;  %v3754_v61 = vsel %vm850_vm3, %v1037_v30, %v1041_v27  ;;  %v488_v63 = vsel %vm470_vm2, %v486_v17, %v487_v12  ;;  %v633_v11 = vsel %vm615_vm4, %v631_v3, %v632_v2 }
  0x9a   : > { %1260 = vrot.lane.b32.xlu0 %v3724_v31, %s3077_s18  ;;  %v914_v48 = vshll.u32 %v3741_v23, 16  ;;  %v490_v46 = vsel %vm470_vm2, %v487_v12, %v489_v29  ;;  %v589_v57 = vadd.f32 %v488_v63, %v383_v19  ;;  %v635_v7 = vsel %vm615_vm4, %v632_v2, %v634_v8  ;;  %v3776_v29 = vld [vmem:[#allocation2 + $0x180] sm:$0xff] }
  0x9b   : > { %v3763_v56 = vpack.c.bf16 %v777_v6, %v777_v6  ;;  %v590_v51 = vadd.f32 %v490_v46, %v384_v47  ;;  %v368_v17 = vadd.f32 %v3653_v26, %v3482_v9  ;;  %v369_v3 = vadd.f32 %v3657_v33, %v3498_v44 }
  0x9c   : > { %v916_v15 = vrot.slane %v914_v48, 1  ;;  %v734_v30 = vadd.f32 %v633_v11, %v589_v57  ;;  %v1121_v19 = vrot.slane %v3693_v55, 1  ;;  %v1122_v47 = vrot.slane %v3718_v50, 1  ;;  %v3779_v11 = vld [vmem:[#allocation2 + $0x188] sm:$0xff]  ;;  %v3789_v50 = vld [vmem:[#allocation2 + $0x190] sm:$0x3] }
  0x9d   : > { %1344 = vrot.lane.b32.xlu1 %v3754_v61, %s3078_s24  ;;  %v919_v27 = vshll.u32 %v3763_v56, 16  ;;  %v735_v2 = vadd.f32 %v635_v7, %v590_v51  ;;  %v3782_v9 = vadd.f32 %v368_v17, %v3776_v29  ;;  %v808_v57 = vmax.f32 %v3776_v29, 0.0 }
  0x9e   : > { %1164 = vrot.lane.b32.xlu0 %v3507_v10, %s3077_s18  ;;  %v917_v12 = vor.u32 %v916_v15, %v912_v43  ;;  %v2426_v6 = vsel %vm183_vm0, %v734_v30, 0.0  ;;  %v2490_v63 = vmul.f32 %v734_v30, %v734_v30  ;;  %v3787_v15 = vadd.f32 %v369_v3, %v3779_v11 }
  0x9f   : > { %v921_v8 = vrot.slane %v919_v27, 1  ;;  %4975 = vst [vmem:[#allocation23_spill] sm:$0xff] %v3782_v9  ;;  %v2428_v44 = vsel %vm183_vm0, %v735_v2, 0.0  ;;  %v2491_v48 = vmul.f32 %v735_v2, %v735_v2  ;;  %v2427_v51 = vadd.f32 %v2426_v6, %v3664_v20 }
  0xa0   : > { %4976 = vst [vmem:[#allocation24_spill] sm:$0xff] %v3787_v15  ;;  %v2527_v43 = vsel %vm183_vm0, %v2490_v63, 0.0  ;;  %v541_v46 = vrot.slane %v3782_v9, 1  ;;  %v542_v27 = vrot.slane %v3787_v15, 1  ;;  %v809_v3 = vmax.f32 %v3779_v11, 0.0 }
  0xa1   : > { %1248 = vrot.lane.b32.xlu1 %v3549_v14, %s3078_s24  ;;  %v2529_v7 = vsel %vm183_vm0, %v2491_v48, 0.0  ;;  %v3799_v20 = vadd.f32 %v2428_v44, %v2427_v51  ;;  %v2528_v30 = vadd.f32 %v2527_v43, %v3679_v38  ;;  %v3804_v17 = vsel %vm850_vm3, %v917_v12, %v921_v8  ;;  %v3827_v43 = vld [vmem:[#allocation2 + $0x90] sm:$0xff] }
  0xa2   : > { %1292 = vrot.lane.b32.xlu0 %v3741_v23, %s3076_s12  ;;  %v370_v2 = vadd.f32 %v3677_v32, %v3524_v54  ;;  %v810_v6 = vmax.f32 %v3789_v50, 0.0  ;;  %v3813_v48 = vsel %vm470_vm2, %v1121_v19, %v1122_v47  ;;  %v543_v44 = vsel %vm470_vm2, %v541_v46, %v542_v27  ;;  %v3829_v19 = vld [vmem:[#allocation2 + $0x98] sm:$0xff] }
  0xa3   : > { %v3810_v63 = vadd.f32 %v2529_v7, %v2528_v30  ;;  %4977 = vst [vmem:[#allocation25_spill] sm:$0xff] %v3813_v48  ;;  %v3820_v12 = vadd.f32 %v543_v44, %v3782_v9  ;;  %v3822_v8 = vpack.c.bf16 %v809_v3, %v808_v57  ;;  %v1091_v47 = vrot.slane %v3741_v23, 1 }
  0xa4   : > { %v418_v54 = vadd.f32 %v370_v2, %v3789_v50  ;;  %v3825_v51 = vpack.c.bf16 %v810_v6, %v810_v6  ;;  %v3836_v46 = vadd.f32 %v3827_v43, %v3696_v60  ;;  %v3840_v57 = vadd.f32 %v3829_v19, %v3698_v22 }
  0xa5   : > { %1196 = vrot.lane.b32.xlu1 %v3581_v37, %s3076_s12  ;;  %4978 = vst [vmem:[#allocation26_spill] sm:$0xff] %v3820_v12  ;;  %v386_v7 = vadd.f32 %v3706_v24, %v3827_v43  ;;  %v1125_v2 = vshrl.u32 %v3822_v8, 16  ;;  %v1127_v6 = vshll.u32 %v3822_v8, 16  ;;  %v387_v38 = vadd.f32 %v3710_v28, %v3829_v19 }
  0xa6   : > { %1324 = vrot.lane.b32.xlu0 %v3804_v17, %s3078_s24  ;;  %v544_v30 = vrot.slane %v418_v54, 1  ;;  %v689_v3 = vrot.slane %v418_v54, 2  ;;  %v1132_v44 = vshll.u32 %v3825_v51, 16  ;;  %v4979_v24 = vrot.slane %v3787_v15, 2 }
  0xa7   : > { %v491_v60 = vrot.slane %v386_v7, 1  ;;  %v636_v12 = vrot.slane %v386_v7, 2  ;;  %v1129_v9 = vrot.slane %v1127_v6, 1  ;;  %v778_v21 = vmax.f32 %v3827_v43, 0.0 }
  0xa8   : > { %v545_v22 = vsel %vm470_vm2, %v542_v27, %v544_v30  ;;  %v690_v54 = vsel %vm615_vm4, %v4979_v24, %v689_v3  ;;  %v1092_v45 = vrot.slane %v3763_v56, 1  ;;  %v779_v34 = vmax.f32 %v3829_v19, 0.0 }
  0xa9   : > { %1228 = vrot.lane.b32.xlu1 %v3615_v18, %s3078_s24  ;;  %v612_v28 = vadd.f32 %v545_v22, %v3787_v15  ;;  %v3865_v27 = vadd.f32 %v3856_v52, %v3739_v40  ;;  %v388_v30 = vadd.f32 %v3745_v25, %v3856_v52  ;;  %v492_v3 = vrot.slane %v387_v38, 1 }
  0xaa   : > { %1282 = vrot.lane.b32.xlu0 %v3813_v48, %s3077_s18  ;;  %v637_v6 = vrot.slane %v387_v38, 2  ;;  %v1134_v35 = vrot.slane %v1132_v44, 1  ;;  %v3871_v37 = vpack.c.bf16 %v779_v34, %v778_v21  ;;  %v780_v22 = vmax.f32 %v3856_v52, 0.0 }
  0xab   : > { %v3869_v24 = vadd.f32 %v690_v54, %v612_v28  ;;  %v1130_v56 = vor.u32 %v1129_v9, %v1125_v2  ;;  %v493_v15 = vsel %vm470_vm2, %v491_v60, %v492_v3  ;;  %v494_v40 = vrot.slane %v388_v30, 1 }
  0xac   : > { %4981 = vst [vmem:[#allocation28_spill] sm:$0xff] %v3871_v37  ;;  %v638_v42 = vsel %vm615_vm4, %v636_v12, %v637_v6  ;;  %v3881_v25 = vsel %vm470_vm2, %v1091_v47, %v1092_v45  ;;  %v591_v44 = vadd.f32 %v493_v15, %v386_v7  ;;  %v639_v34 = vrot.slane %v388_v30, 2 }
  0xad   : > { %4980 = vst [vmem:[#allocation27_spill] sm:$0xff] %v3869_v24  ;;  %1186 = vrot.lane.b32.xlu1 %v3622_v4, %s3077_s18  ;;  %4982 = vst [vmem:[#allocation29_spill] sm:$0xff] %v3881_v25  ;;  %v3883_v21 = vpack.c.bf16 %v780_v22, %v780_v22  ;;  %v495_v54 = vsel %vm470_vm2, %v492_v3, %v494_v40  ;;  %v924_v28 = vshrl.u32 %v3871_v37, 16  ;;  %v926_v9 = vshll.u32 %v3871_v37, 16  ;;  %v324_v22 = vld [vmem:[#allocation2 + $0x1a0] sm:$0xff] }
  0xae   : > { %1314 = vrot.lane.b32.xlu0 %v3822_v8, %s3076_s12  ;;  %v1138_v2 = vrot.slane %v3822_v8, 1  ;;  %v592_v60 = vadd.f32 %v495_v54, %v387_v38  ;;  %v640_v12 = vsel %vm615_vm4, %v637_v6, %v639_v34  ;;  %v736_v24 = vadd.f32 %v638_v42, %v591_v44  ;;  %v323_v6 = vld [vmem:[#allocation2 + $0x198] sm:$0xff]  ;;  %v325_v34 = vld [vmem:[#allocation2 + $0x1a8] sm:$0x3] }
  0xaf   : > { %v931_v18 = vshll.u32 %v3883_v21, 16  ;;  %v3894_v45 = vsel %vm850_vm3, %v1130_v56, %v1134_v35  ;;  %v928_v15 = vrot.slane %v926_v9, 1  ;;  %v371_v47 = vadd.f32 %v3776_v29, %v3653_v26 }
  0xb0   : > { %v372_v7 = vadd.f32 %v3779_v11, %v3657_v33  ;;  %v737_v38 = vadd.f32 %v640_v12, %v592_v60  ;;  %v2430_v42 = vsel %vm183_vm0, %v736_v24, 0.0  ;;  %v2492_v30 = vmul.f32 %v736_v24, %v736_v24 }
  0xb1   : > { %1218 = vrot.lane.b32.xlu1 %v3682_v36, %s3076_s12  ;;  %v1139_v3 = vrot.slane %v3825_v51, 1  ;;  %v933_v35 = vrot.slane %v931_v18, 1  ;;  %v2431_v56 = vadd.f32 %v2430_v42, %v3799_v20  ;;  %v419_v40 = vadd.f32 %v371_v47, %v323_v6 }
  0xb2   : > { %1262 = vrot.lane.b32.xlu0 %v3881_v25, %s3077_s18  ;;  %v420_v44 = vadd.f32 %v372_v7, %v324_v22  ;;  %v929_v26 = vor.u32 %v928_v15, %v924_v28  ;;  %v2432_v29 = vsel %vm183_vm0, %v737_v38, 0.0  ;;  %v2493_v33 = vmul.f32 %v737_v38, %v737_v38 }
  0xb3   : > { %v2531_v11 = vsel %vm183_vm0, %v2492_v30, 0.0  ;;  %v3909_v24 = vadd.f32 %v2432_v29, %v2431_v56  ;;  %v546_v54 = vrot.slane %v419_v40, 1  ;;  %v811_v18 = vmax.f32 %v323_v6, 0.0 }
  0xb4   : > { %v2532_v51 = vadd.f32 %v2531_v11, %v3810_v63  ;;  %v2533_v20 = vsel %vm183_vm0, %v2493_v33, 0.0  ;;  %v547_v28 = vrot.slane %v420_v44, 1  ;;  %v691_v9 = vrot.slane %v419_v40, 2 }
  0xb5   : > { %1346 = vrot.lane.b32.xlu1 %v3894_v45, %s3078_s24  ;;  %v692_v60 = vrot.slane %v420_v44, 2  ;;  %v812_v15 = vmax.f32 %v324_v22, 0.0  ;;  %v373_v47 = vadd.f32 %v3789_v50, %v3677_v32  ;;  %v813_v7 = vmax.f32 %v325_v34, 0.0  ;;  %v293_v32 = vld [vmem:[#allocation2 + $0xa8] sm:$0xff]  ;;  %v294_v50 = vld [vmem:[#allocation2 + $0xb0] sm:$0xff] }
  0xb6   : > { %1166 = vrot.lane.b32.xlu0 %v3662_v39, %s3077_s18  ;;  %v3915_v12 = vadd.f32 %v2533_v20, %v2532_v51  ;;  %v3920_v38 = vsel %vm850_vm3, %v929_v26, %v933_v35  ;;  %v3923_v63 = vsel %vm470_vm2, %v1138_v2, %v1139_v3  ;;  %v548_v42 = vsel %vm470_vm2, %v546_v54, %v547_v28 }
  0xb7   : > { %4983 = vst [vmem:[#allocation30_spill] sm:$0xff] %v3923_v63  ;;  %v693_v30 = vsel %vm615_vm4, %v691_v9, %v692_v60  ;;  %v613_v6 = vadd.f32 %v548_v42, %v419_v40  ;;  %v3929_v56 = vpack.c.bf16 %v812_v15, %v811_v18  ;;  %v421_v22 = vadd.f32 %v373_v47, %v325_v34  ;;  %v3954_v15 = vld [vmem:[#allocation2 + $0xb8] sm:$0x3] }
  0xb8   : > { %v3931_v29 = vpack.c.bf16 %v813_v7, %v813_v7  ;;  %v1094_v2 = vrot.slane %v3871_v37, 1  ;;  %v344_v3 = vadd.f32 %v293_v32, %v3827_v43  ;;  %v3938_v35 = vadd.f32 %v294_v50, %v3829_v19 }
  0xb9   : > { %1250 = vrot.lane.b32.xlu1 %v3693_v55, %s3078_s24  ;;  %4984 = vst [vmem:[#allocation31_spill] sm:$0xff] %v3929_v56  ;;  %v389_v26 = vadd.f32 %v3836_v46, %v293_v32  ;;  %v3941_v40 = vadd.f32 %v693_v30, %v613_v6  ;;  %v549_v33 = vrot.slane %v421_v22, 1  ;;  %v694_v11 = vrot.slane %v421_v22, 2  ;;  %v3964_v6 = vld [vmem:[#allocation2 + $0xc0] sm:$0xff] }
  0xba   : > { %4985 = vst [vmem:[#allocation32_spill] sm:$0xff] %v3931_v29  ;;  %1294 = vrot.lane.b32.xlu0 %v3871_v37, %s3076_s12  ;;  %v1095_v34 = vrot.slane %v3883_v21, 1  ;;  %v1142_v51 = vshrl.u32 %v3929_v56, 16  ;;  %v1144_v54 = vshll.u32 %v3929_v56, 16  ;;  %v1149_v18 = vshll.u32 %v3931_v29, 16 }
  0xbb   : > { %4986 = vst [vmem:[#allocation33_spill] sm:$0xff] %v3941_v40  ;;  %v390_v20 = vadd.f32 %v3840_v57, %v294_v50  ;;  %v550_v43 = vsel %vm470_vm2, %v547_v28, %v549_v33  ;;  %v3952_v19 = vsel %vm615_vm4, %v692_v60, %v694_v11  ;;  %v496_v46 = vrot.slane %v389_v26, 1 }
  0xbc   : > { %4987 = vst [vmem:[#allocation34_spill] sm:$0xff] %v3952_v19  ;;  %v641_v9 = vrot.slane %v389_v26, 2  ;;  %v3958_v21 = vadd.f32 %v550_v43, %v420_v44  ;;  %v1146_v47 = vrot.slane %v1144_v54, 1  ;;  %v1151_v7 = vrot.slane %v1149_v18, 1 }
  0xbd   : > { %1198 = vrot.lane.b32.xlu1 %v3724_v31, %s3076_s12  ;;  %v781_v57 = vmax.f32 %v293_v32, 0.0  ;;  %v782_v42 = vmax.f32 %v294_v50, 0.0  ;;  %v346_v30 = vadd.f32 %v3954_v15, %v3856_v52  ;;  %v391_v28 = vadd.f32 %v3865_v27, %v3954_v15 }
  0xbe   : > { %1326 = vrot.lane.b32.xlu0 %v3920_v38, %s3078_s24  ;;  %4988 = vst [vmem:[#allocation35_spill] sm:$0xff] %v3958_v21  ;;  %v497_v60 = vrot.slane %v390_v20, 1  ;;  %v1147_v22 = vor.u32 %v1146_v47, %v1142_v51  ;;  %v642_v33 = vrot.slane %v390_v20, 2  ;;  %v783_v11 = vmax.f32 %v3954_v15, 0.0  ;;  %v4010_v21 = vld [vmem:[#allocation2 + $0xd0] sm:$0x3] }
  0xbf   : > { %v3968_v44 = vadd.f32 %v3964_v6, %v293_v32  ;;  %v3972_v54 = vpack.c.bf16 %v782_v42, %v781_v57  ;;  %v499_v18 = vrot.slane %v391_v28, 1  ;;  %v644_v43 = vrot.slane %v391_v28, 2 }
  0xc0   : > { %v498_v52 = vsel %vm470_vm2, %v496_v46, %v497_v60  ;;  %v643_v51 = vsel %vm615_vm4, %v641_v9, %v642_v33  ;;  %v3978_v47 = vpack.c.bf16 %v783_v11, %v783_v11  ;;  %v3981_v32 = vsel %vm470_vm2, %v1094_v2, %v1095_v34  ;;  %v3989_v46 = vld [vmem:[%s4921_s1 + $0x80] sm:$0xff]  }
  0xc1   : > { %1230 = vrot.lane.b32.xlu1 %v3741_v23, %s3078_s24  ;;  %4989 = vst [vmem:[#allocation36_spill] sm:$0xff] %v3972_v54  ;;  %v593_v27 = vadd.f32 %v498_v52, %v389_v26  ;;  %4990 = vst [vmem:[#allocation37_spill] sm:$0xff] %v3981_v32  ;;  %v500_v40 = vsel %vm470_vm2, %v497_v60, %v499_v18  ;;  %v645_v57 = vsel %vm615_vm4, %v642_v33, %v644_v43  ;;  %v297_v52 = vld [vmem:[#allocation2 + $0xc8] sm:$0xff] }
  0xc2   : > { %1284 = vrot.lane.b32.xlu0 %v3923_v63, %s3077_s18  ;;  %v938_v42 = vshll.u32 %v3972_v54, 16  ;;  %v594_v28 = vadd.f32 %v500_v40, %v390_v20  ;;  %v936_v9 = vshrl.u32 %v3972_v54, 16  ;;  %v943_v11 = vshll.u32 %v3978_v47, 16  ;;  %2847 = vmatprep.subr.bf16.mxu1 %v3989_v46 }
  0xc3   : > { %v738_v26 = vadd.f32 %v643_v51, %v593_v27  ;;  %v1152_v2 = vsel %vm850_vm3, %v1147_v22, %v1151_v7  ;;  %v348_v60 = vadd.f32 %v297_v52, %v294_v50  ;;  %v392_v33 = vadd.f32 %v344_v3, %v3964_v6 }
  0xc4   : > { %v940_v34 = vrot.slane %v938_v42, 1  ;;  %v739_v40 = vadd.f32 %v645_v57, %v594_v28  ;;  %v1097_v43 = vrot.slane %v3972_v54, 1  ;;  %v945_v27 = vrot.slane %v943_v11, 1 }
  0xc5   : > { %1188 = vrot.lane.b32.xlu1 %v3754_v61, %s3077_s18  ;;  %v2434_v20 = vsel %vm183_vm0, %v738_v26, 0.0  ;;  %v2494_v18 = vmul.f32 %v738_v26, %v738_v26  ;;  %v1098_v7 = vrot.slane %v3978_v47, 1  ;;  %v393_v50 = vadd.f32 %v3938_v35, %v297_v52 }
  0xc6   : > { %1316 = vrot.lane.b32.xlu0 %v3929_v56, %s3076_s12  ;;  %v2435_v51 = vadd.f32 %v2434_v20, %v3909_v24  ;;  %v941_v22 = vor.u32 %v940_v34, %v936_v9  ;;  %v2436_v3 = vsel %vm183_vm0, %v739_v40, 0.0  ;;  %v2495_v42 = vmul.f32 %v739_v40, %v739_v40  ;;  %v4014_v24 = vpop.permute.xlu1 %1190 }
  0xc7   : > { %v2535_v19 = vsel %vm183_vm0, %v2494_v18, 0.0  ;;  %v501_v26 = vrot.slane %v392_v33, 1  ;;  %v646_v11 = vrot.slane %v392_v33, 2  ;;  %v784_v47 = vmax.f32 %v3964_v6, 0.0  ;;  %v4023_v18 = vld [vmem:[#allocation2 + $0xd8] sm:$0xff] }
  0xc8   : > { %v2437_v57 = vadd.f32 %v2436_v3, %v2435_v51  ;;  %v2536_v28 = vadd.f32 %v2535_v19, %v3915_v12  ;;  %v2537_v35 = vsel %vm183_vm0, %v2495_v42, 0.0  ;;  %v785_v9 = vmax.f32 %v297_v52, 0.0  ;;  %v4025_v51 = vld [vmem:[#allocation2 + $0xe0] sm:$0xff] }
  0xc9   : > { %1220 = vrot.lane.b32.xlu1 %v3813_v48, %s3076_s12  ;;  %v4020_v34 = vadd.f32 %v4010_v21, %v3954_v15  ;;  %v394_v12 = vadd.f32 %v346_v30, %v4010_v21  ;;  %v502_v19 = vrot.slane %v393_v50, 1  ;;  %v647_v20 = vrot.slane %v393_v50, 2 }
  0xca   : > { %1264 = vrot.lane.b32.xlu0 %v3981_v32, %s3077_s18  ;;  %v2538_v40 = vadd.f32 %v2537_v35, %v2536_v28  ;;  %v4027_v3 = vpack.c.bf16 %v785_v9, %v784_v47  ;;  %v786_v42 = vmax.f32 %v4010_v21, 0.0  ;;  %v4032_v29 = vadd.f32 %v4023_v18, %v3964_v6  ;;  %v1159_v47 = vpop.permute.xlu0 %1158 }
  0xcb   : > { %v4035_v15 = vadd.f32 %v4025_v51, %v297_v52  ;;  %v503_v30 = vsel %vm470_vm2, %v501_v26, %v502_v19  ;;  %v504_v28 = vrot.slane %v394_v12, 1  ;;  %v648_v35 = vsel %vm615_vm4, %v646_v11, %v647_v20 }
  0xcc   : > { %4991 = vst [vmem:[#allocation38_spill] sm:$0xff] %v4027_v3  ;;  %v649_v56 = vrot.slane %v394_v12, 2  ;;  %v595_v9 = vadd.f32 %v503_v30, %v392_v33  ;;  %v831_v63 = vpack.c.bf16 %v786_v42, %v786_v42  ;;  %v948_v6 = vshrl.u32 %v4027_v3, 16 }
  0xcd   : > { %1348 = vrot.lane.b32.xlu1 %v1152_v2, %s3078_s24  ;;  %v950_v48 = vshll.u32 %v4027_v3, 16  ;;  %v4047_v2 = vsel %vm470_vm2, %v1097_v43, %v1098_v7  ;;  %v505_v26 = vsel %vm470_vm2, %v502_v19, %v504_v28  ;;  %v1100_v12 = vrot.slane %v4027_v3, 1 }
  0xce   : > { %1168 = vrot.lane.b32.xlu0 %v3804_v17, %s3077_s18  ;;  %4992 = vst [vmem:[#allocation39_spill] sm:$0xff] %v4047_v2  ;;  %v650_v11 = vsel %vm615_vm4, %v647_v20, %v649_v56  ;;  %v596_v36 = vadd.f32 %v505_v26, %v393_v50  ;;  %v740_v31 = vadd.f32 %v648_v35, %v595_v9  ;;  %v955_v33 = vshll.u32 %v831_v63, 16 }
  0xcf   : > { %v952_v23 = vrot.slane %v950_v48, 1  ;;  %v4055_v42 = vsel %vm850_vm3, %v941_v22, %v945_v27  ;;  %v1101_v30 = vrot.slane %v831_v63, 1  ;;  %v395_v43 = vadd.f32 %v3968_v44, %v4023_v18 }
  0xd0   : > { %v4044_v52 = vpop.permute.xlu1 %1286  ;;  %4993 = vst [vmem:[#allocation40_spill] sm:$0xff] %v4055_v42  ;;  %v396_v7 = vadd.f32 %v348_v60, %v4025_v51  ;;  %v741_v50 = vadd.f32 %v650_v11, %v596_v36  ;;  %v957_v19 = vrot.slane %v955_v33, 1  ;;  %v2438_v20 = vsel %vm183_vm0, %v740_v31, 0.0 }
  0xd1   : > { %1252 = vrot.lane.b32.xlu1 %v3822_v8, %s3078_s24  ;;  %v4062_v56 = vpop.permute.xlu0 %1288  ;;  %v953_v48 = vor.u32 %v952_v23, %v948_v6  ;;  %v1351_v8 = vsel %vm183_vm0, %v3263_v16, %v1159_v47  ;;  %v2496_v63 = vmul.f32 %v740_v31, %v740_v31  ;;  %v2439_v22 = vadd.f32 %v2438_v20, %v2437_v57  ;;  %v4079_v57 = vld [vmem:[#allocation2 + $0xe8] sm:$0x3] }
  0xd2   : > { %1296 = vrot.lane.b32.xlu0 %v3972_v54, %s3076_s12  ;;  %v787_v44 = vmax.f32 %v4023_v18, 0.0  ;;  %v2440_v60 = vsel %vm183_vm0, %v741_v50, 0.0  ;;  %v2497_v28 = vmul.f32 %v741_v50, %v741_v50  ;;  %v4070_v35 = vsel %vm470_vm2, %v1100_v12, %v1101_v30 }
  0xd3   : > { %v506_v9 = vrot.slane %v395_v43, 1  ;;  %v4075_v36 = vsel %vm850_vm3, %v953_v48, %v957_v19  ;;  %v2539_v16 = vsel %vm183_vm0, %v2496_v63, 0.0  ;;  %v2441_v23 = vadd.f32 %v2440_v60, %v2439_v22 }
  0xd4   : > { %v1223_v27 = vpop.permute.xlu1 %1222  ;;  %4994 = vst [vmem:[#allocation41_spill] sm:$0xff] %v4075_v36  ;;  %v788_v31 = vmax.f32 %v4025_v51, 0.0  ;;  %v2541_v47 = vsel %vm183_vm0, %v2497_v28, 0.0  ;;  %v2540_v6 = vadd.f32 %v2539_v16, %v2538_v40  ;;  %v651_v26 = vrot.slane %v395_v43, 2 }
  0xd5   : > { %1200 = vrot.lane.b32.xlu1 %v3881_v25, %s3076_s12  ;;  %v4090_v33 = vadd.f32 %v4079_v57, %v4010_v21  ;;  %v397_v30 = vadd.f32 %v4020_v34, %v4079_v57  ;;  %v507_v19 = vrot.slane %v396_v7, 1  ;;  %v652_v20 = vrot.slane %v396_v7, 2 }
  0xd6   : > { %1328 = vrot.lane.b32.xlu0 %v4055_v42, %s3078_s24  ;;  %v4086_v12 = vpack.c.bf16 %v788_v31, %v787_v44  ;;  %v2542_v48 = vadd.f32 %v2541_v47, %v2540_v6  ;;  %v789_v40 = vmax.f32 %v4079_v57, 0.0  ;;  %v1384_v22 = vsel %vm1382_vm5, %v1351_v8, %v4014_v24 }
  0xd7   : > { %v509_v21 = vrot.slane %v397_v30, 1  ;;  %v654_v44 = vrot.slane %v397_v30, 2  ;;  %v508_v34 = vsel %vm470_vm2, %v506_v9, %v507_v19  ;;  %v653_v60 = vsel %vm615_vm4, %v651_v26, %v652_v20 }
  0xd8   : > { %v4084_v11 = vpop.permute.xlu1 %1224  ;;  %v833_v28 = vpack.c.bf16 %v789_v40, %v789_v40  ;;  %v960_v16 = vshrl.u32 %v4086_v12, 16  ;;  %v962_v24 = vshll.u32 %v4086_v12, 16  ;;  %v4112_v30 = vsel %vm1415_vm6, %v1384_v22, %v1223_v27  ;;  %v302_v40 = vld [vmem:[#allocation2 + $0xf0] sm:$0xff] }
  0xd9   : > { %v1255_v50 = vpop.permute.xlu0 %1254  ;;  %1232 = vrot.lane.b32.xlu1 %v3871_v37, %s3078_s24  ;;  %v510_v47 = vsel %vm470_vm2, %v507_v19, %v509_v21  ;;  %v655_v6 = vsel %vm615_vm4, %v652_v20, %v654_v44  ;;  %v1103_v26 = vrot.slane %v4086_v12, 1  ;;  %v303_v21 = vld [vmem:[#allocation2 + $0xf8] sm:$0xff] }
  0xda   : > { %v1466_v63 = vsel %vm183_vm0, %v3438_v41, %v1255_v50  ;;  %1266 = vrot.lane.b32.xlu0 %v4047_v2, %s3077_s18  ;;  %v597_v41 = vadd.f32 %v508_v34, %v395_v43  ;;  %v598_v50 = vadd.f32 %v510_v47, %v396_v7  ;;  %v967_v9 = vshll.u32 %v833_v28, 16 }
  0xdb   : > { %v964_v37 = vrot.slane %v962_v24, 1  ;;  %v1104_v19 = vrot.slane %v833_v28, 1  ;;  %v4118_v43 = vadd.f32 %v302_v40, %v4023_v18  ;;  %v1513_v7 = vsel %vm1382_vm5, %v1466_v63, %v4044_v52 }
  0xdc   : > { %v4106_v31 = vpop.permute.xlu1 %1192  ;;  %v742_v25 = vadd.f32 %v653_v60, %v597_v41  ;;  %v743_v20 = vadd.f32 %v655_v6, %v598_v50  ;;  %v969_v22 = vrot.slane %v967_v9, 1  ;;  %v4128_v28 = vadd.f32 %v303_v21, %v4025_v51 }
  0xdd   : > { %v1257_v8 = vpop.permute.xlu0 %1256  ;;  %1170 = vrot.lane.b32.xlu1 %v3920_v38, %s3077_s18  ;;  %v965_v44 = vor.u32 %v964_v37, %v960_v16  ;;  %v399_v51 = vadd.f32 %v4035_v15, %v303_v21  ;;  %v790_v15 = vmax.f32 %v302_v40, 0.0 }
  0xde   : > { %1298 = vrot.lane.b32.xlu0 %v4027_v3, %s3076_s12  ;;  %v1469_v27 = vsel %vm183_vm0, %v3463_v62, %v1257_v8  ;;  %v2442_v34 = vsel %vm183_vm0, %v742_v25, 0.0  ;;  %v2498_v60 = vmul.f32 %v742_v25, %v742_v25  ;;  %v2444_v47 = vsel %vm183_vm0, %v743_v20, 0.0  ;;  %v4150_v8 = vld [vmem:[#allocation2 + $0x100] sm:$0x3] }
  0xdf   : > { %v2499_v41 = vmul.f32 %v743_v20, %v743_v20  ;;  %v2443_v24 = vadd.f32 %v2442_v34, %v2441_v23  ;;  %v398_v62 = vadd.f32 %v4032_v29, %v302_v40  ;;  %v1515_v37 = vsel %vm1382_vm5, %v1469_v27, %v4062_v56 }
  0xe0   : > { %v2543_v63 = vsel %vm183_vm0, %v2498_v60, 0.0  ;;  %v4138_v25 = vsel %vm470_vm2, %v1103_v26, %v1104_v19  ;;  %v4153_v56 = vsel %vm850_vm3, %v965_v44, %v969_v22  ;;  %v791_v27 = vmax.f32 %v303_v21, 0.0 }
  0xe1   : > { %v1279_v18 = vpop.permute.xlu0 %1278  ;;  %1202 = vrot.lane.b32.xlu1 %v3981_v32, %s3076_s12  ;;  %v2545_v23 = vsel %vm183_vm0, %v2499_v41, 0.0  ;;  %v4148_v16 = vadd.f32 %v2444_v47, %v2443_v24  ;;  %v2544_v6 = vadd.f32 %v2543_v63, %v2542_v48  ;;  %v511_v50 = vrot.slane %v398_v62, 1 }
  0xe2   : > { %v1161_v52 = vpop.permute.xlu1 %1160  ;;  %1330 = vrot.lane.b32.xlu0 %v4075_v36, %s3078_s24  ;;  %v4145_v29 = vsel %vm183_vm0, %v3687_v49, %v1279_v18  ;;  %v656_v9 = vrot.slane %v398_v62, 2  ;;  %v4161_v20 = vadd.f32 %v4150_v8, %v4079_v57  ;;  %v400_v22 = vadd.f32 %v4090_v33, %v4150_v8  ;;  %v4168_v18 = vld [vmem:[#allocation2 + $0x108] sm:$0xff] }
  0xe3   : > { %v1353_v26 = vsel %vm183_vm0, %v3335_v13, %v1161_v52  ;;  %v4157_v19 = vadd.f32 %v2545_v23, %v2544_v6  ;;  %v512_v44 = vrot.slane %v399_v51, 1  ;;  %v657_v34 = vrot.slane %v399_v51, 2  ;;  %v4170_v13 = vld [vmem:[#allocation2 + $0x110] sm:$0xff] }
  0xe4   : > { %v792_v60 = vmax.f32 %v4150_v8, 0.0  ;;  %v4175_v47 = vpack.c.bf16 %v791_v27, %v790_v15  ;;  %v356_v41 = vadd.f32 %v4168_v18, %v302_v40  ;;  %v357_v24 = vadd.f32 %v4170_v13, %v303_v21 }
  0xe5   : > { %1234 = vrot.lane.b32.xlu1 %v3972_v54, %s3078_s24  ;;  %v513_v33 = vsel %vm470_vm2, %v511_v50, %v512_v44  ;;  %v514_v52 = vrot.slane %v400_v22, 1  ;;  %v658_v63 = vsel %vm615_vm4, %v656_v9, %v657_v34  ;;  %v659_v23 = vrot.slane %v400_v22, 2 }
  0xe6   : > { %v1319_v48 = vpop.permute.xlu0 %1318  ;;  %1268 = vrot.lane.b32.xlu0 %v4070_v35, %s3077_s18  ;;  %v1386_v6 = vsel %vm1382_vm5, %v1353_v26, %v4106_v31  ;;  %v599_v54 = vadd.f32 %v513_v33, %v398_v62  ;;  %v974_v15 = vshll.u32 %v4175_v47, 16  ;;  %v972_v50 = vshrl.u32 %v4175_v47, 16 }
  0xe7   : > { %v1545_v57 = vsel %vm1415_vm6, %v1513_v7, %v1319_v48  ;;  %v835_v7 = vpack.c.bf16 %v792_v60, %v792_v60  ;;  %v515_v40 = vsel %vm470_vm2, %v512_v44, %v514_v52  ;;  %v660_v21 = vsel %vm615_vm4, %v657_v34, %v659_v23  ;;  %v2970_v60 = vld [vmem:[#allocation2 + $0x120] sm:$0xff]  ;;  %v2971_v52 = vld [vmem:[#allocation2 + $0x128] sm:$0xff] }
  0xe8   : > { %1816 = vmatprep.mubr.bf16.mxu0 %v1545_v57  ;;  %v1106_v9 = vrot.slane %v4175_v47, 1  ;;  %v744_v31 = vadd.f32 %v658_v63, %v599_v54  ;;  %v976_v62 = vrot.slane %v974_v15, 1  ;;  %v359_v57 = vadd.f32 %v2970_v60, %v4168_v18 }
  0xe9   : > { %1817 = vmatmul.mubr.bf16.vlgmr.msra.gmra.mrb[0].mxu0 %v4112_v30  ;;  %1172 = vrot.lane.b32.xlu1 %v4055_v42, %s3077_s18  ;;  %v600_v30 = vadd.f32 %v515_v40, %v399_v51  ;;  %v979_v26 = vshll.u32 %v835_v7, 16  ;;  %v1107_v22 = vrot.slane %v835_v7, 1  ;;  %v4196_v44 = vadd.f32 %v4118_v43, %v4168_v18 }
  0xea   : > { %1300 = vrot.lane.b32.xlu0 %v4086_v12, %s3076_s12  ;;  %v4200_v34 = vadd.f32 %v4128_v28, %v4170_v13  ;;  %v360_v63 = vadd.f32 %v2971_v52, %v4170_v13  ;;  %v977_v23 = vor.u32 %v976_v62, %v972_v50  ;;  %v2446_v7 = vsel %vm183_vm0, %v744_v31, 0.0  ;;  %v2972_v62 = vld [vmem:[#allocation2 + $0x138] sm:$0xff] }
  0xeb   : > { %v1183_v27 = vpop.permute.xlu1 %1182  ;;  %v745_v33 = vadd.f32 %v660_v21, %v600_v30  ;;  %v981_v43 = vrot.slane %v979_v26, 1  ;;  %v2500_v15 = vmul.f32 %v744_v31, %v744_v31  ;;  %v4213_v21 = vadd.f32 %v2970_v60, %v356_v41 }
  0xec   : > { %v1321_v48 = vpop.permute.xlu0 %1320  ;;  %v1375_v51 = vsel %vm183_vm0, %v3454_v53, %v1183_v27  ;;  %v1420_v30 = vsel %vm1415_vm6, %v1386_v6, %v4084_v11  ;;  %v4219_v50 = vsel %vm470_vm2, %v1106_v9, %v1107_v22  ;;  %v4221_v31 = vadd.f32 %v2972_v62, %v359_v57  ;;  %v2973_v22 = vld [vmem:[#allocation2 + $0x140] sm:$0xff] }
  0xed   : > { %v1548_v54 = vsel %vm1415_vm6, %v1515_v37, %v1321_v48  ;;  %1204 = vrot.lane.b32.xlu1 %v4047_v2, %s3076_s12  ;;  %v2448_v28 = vsel %vm183_vm0, %v745_v33, 0.0  ;;  %v2501_v40 = vmul.f32 %v745_v33, %v745_v33  ;;  %v2447_v37 = vadd.f32 %v2446_v7, %v4148_v16 }
  0xee   : > { %1824 = vmatprep.mubr.bf16.mxu0 %v1548_v54  ;;  %1332 = vrot.lane.b32.xlu0 %v4153_v56, %s3078_s24  ;;  %v2547_v27 = vsel %vm183_vm0, %v2500_v15, 0.0  ;;  %v4227_v41 = vadd.f32 %v2971_v52, %v357_v24  ;;  %v4235_v9 = vsel %vm850_vm3, %v977_v23, %v981_v43  ;;  %v4237_v60 = vadd.f32 %v2973_v22, %v360_v63  ;;  %v4246_v52 = vld [vmem:[#allocation2 + $0x118] sm:$0x3]  ;;  %v2974_v15 = vld [vmem:[#allocation2 + $0x130] sm:$0x3] }
  0xef   : > { %v1215_v26 = vpop.permute.xlu1 %1214  ;;  %v2549_v54 = vsel %vm183_vm0, %v2501_v40, 0.0  ;;  %v4224_v33 = vadd.f32 %v2448_v28, %v2447_v37  ;;  %v2548_v16 = vadd.f32 %v2547_v27, %v4157_v19  ;;  %v516_v24 = vrot.slane %v4196_v44, 1 }
  0xf0   : > { %v1311_v48 = vpop.permute.xlu0 %1310  ;;  %v1408_v11 = vsel %vm1382_vm5, %v1375_v51, %v1215_v26  ;;  %v521_v57 = vrot.slane %v4213_v21, 1  ;;  %v526_v51 = vrot.slane %v4221_v31, 1  ;;  %v666_v23 = vrot.slane %v4213_v21, 2 }
  0xf1   : > { %1825 = vmatmul.mubr.bf16.gmra.mrb[4].mxu0 %v1420_v30  ;;  %1236 = vrot.lane.b32.xlu1 %v4027_v3, %s3078_s24  ;;  %v1537_v6 = vsel %vm1382_vm5, %v4145_v29, %v1311_v48  ;;  %v4241_v19 = vadd.f32 %v2549_v54, %v2548_v16  ;;  %v661_v29 = vrot.slane %v4196_v44, 2  ;;  %v671_v63 = vrot.slane %v4221_v31, 2  ;;  %v2975_v48 = vld [vmem:[#allocation2 + $0x148] sm:$0x3] }
  0xf2   : > { %1270 = vrot.lane.b32.xlu0 %v4138_v25, %s3077_s18  ;;  %v358_v43 = vadd.f32 %v4246_v52, %v4150_v8  ;;  %v361_v28 = vadd.f32 %v2974_v15, %v4246_v52  ;;  %v403_v40 = vadd.f32 %v4161_v20, %v4246_v52  ;;  %v517_v37 = vrot.slane %v4200_v34, 1 }
  0xf3   : > { %v522_v30 = vrot.slane %v4227_v41, 1  ;;  %v793_v27 = vmax.f32 %v4168_v18, 0.0  ;;  %v794_v62 = vmax.f32 %v4170_v13, 0.0  ;;  %v527_v8 = vrot.slane %v4237_v60, 1 }
  0xf4   : > { %v1259_v7 = vpop.permute.xlu0 %1258  ;;  %v406_v26 = vadd.f32 %v2974_v15, %v358_v43  ;;  %v409_v54 = vadd.f32 %v2975_v48, %v361_v28  ;;  %v518_v20 = vsel %vm470_vm2, %v516_v24, %v517_v37  ;;  %v519_v16 = vrot.slane %v403_v40, 1 }
  0xf5   : > { %1174 = vrot.lane.b32.xlu1 %v4075_v36, %s3077_s18  ;;  %v523_v22 = vsel %vm470_vm2, %v521_v57, %v522_v30  ;;  %v528_v36 = vsel %vm470_vm2, %v526_v51, %v527_v8  ;;  %v601_v18 = vadd.f32 %v518_v20, %v4196_v44  ;;  %v4275_v24 = vpack.c.bf16 %v794_v62, %v793_v27 }
  0xf6   : > { %1302 = vrot.lane.b32.xlu0 %v4175_v47, %s3076_s12  ;;  %v524_v2 = vrot.slane %v406_v26, 1  ;;  %v603_v13 = vadd.f32 %v523_v22, %v4213_v21  ;;  %v520_v32 = vsel %vm470_vm2, %v517_v37, %v519_v16  ;;  %v529_v42 = vrot.slane %v409_v54, 1 }
  0xf7   : > { %v1343_v3 = vpop.permute.xlu1 %1342  ;;  %v605_v28 = vadd.f32 %v528_v36, %v4221_v31  ;;  %v602_v44 = vadd.f32 %v520_v32, %v4200_v34  ;;  %v662_v21 = vrot.slane %v4200_v34, 2  ;;  %v664_v36 = vrot.slane %v403_v40, 2 }
  0xf8   : > { %v1581_v43 = vsel %vm1415_vm6, %v1537_v6, %v1343_v3  ;;  %v1163_v15 = vpop.permute.xlu0 %1162  ;;  %v525_v57 = vsel %vm470_vm2, %v522_v30, %v524_v2  ;;  %v530_v3 = vsel %vm470_vm2, %v527_v8, %v529_v42  ;;  %v667_v31 = vrot.slane %v4227_v41, 2 }
  0xf9   : > { %1206 = vrot.lane.b32.xlu1 %v4070_v35, %s3076_s12  ;;  %1912 = vmatprep.mubr.bf16.mxu1 %v1581_v43  ;;  %v604_v6 = vadd.f32 %v525_v57, %v4227_v41  ;;  %v606_v37 = vadd.f32 %v530_v3, %v4237_v60  ;;  %v663_v27 = vsel %vm615_vm4, %v661_v29, %v662_v21  ;;  %v669_v2 = vrot.slane %v406_v26, 2  ;;  %v2969_v41 = vld [vmem:[%s4921_s1 + $0x88] sm:$0xff]  }
  0xfa   : > { %1334 = vrot.lane.b32.xlu0 %v4235_v9, %s3078_s24  ;;  %v672_v32 = vrot.slane %v4237_v60, 2  ;;  %v665_v62 = vsel %vm615_vm4, %v662_v21, %v664_v36  ;;  %v668_v42 = vsel %vm615_vm4, %v666_v23, %v667_v31  ;;  %v674_v8 = vrot.slane %v409_v54, 2 }
  0xfb   : > { %v1247_v51 = vpop.permute.xlu1 %1246  ;;  %v1472_v40 = vsel %vm183_vm0, %v3507_v10, %v1259_v7  ;;  %v670_v60 = vsel %vm615_vm4, %v667_v31, %v669_v2  ;;  %v795_v29 = vmax.f32 %v4246_v52, 0.0  ;;  %v746_v26 = vadd.f32 %v663_v27, %v601_v18 }
  0xfc   : > { %v1453_v34 = vsel %vm1415_vm6, %v1408_v11, %v1247_v51  ;;  %v1291_v30 = vpop.permute.xlu0 %1290  ;;  %v673_v11 = vsel %vm615_vm4, %v671_v63, %v672_v32  ;;  %v675_v23 = vsel %vm615_vm4, %v672_v32, %v674_v8  ;;  %v747_v48 = vadd.f32 %v665_v62, %v602_v44 }
  0xfd   : > { %1238 = vrot.lane.b32.xlu1 %v4086_v12, %s3078_s24  ;;  %1913 = vmatmul.mubr.bf16.vlgmr.msra.gmra.mrb[0].mxu1 %v1453_v34  ;;  %v748_v54 = vadd.f32 %v668_v42, %v603_v13  ;;  %v749_v10 = vadd.f32 %v670_v60, %v604_v6  ;;  %v750_v7 = vadd.f32 %v673_v11, %v605_v28  ;;  %v984_v57 = vshrl.u32 %v4275_v24, 16 }
  0xfe   : > { %1272 = vrot.lane.b32.xlu0 %v4219_v50, %s3077_s18  ;;  %v4304_v16 = vadd.f32 %v675_v23, %v606_v37  ;;  %v837_v22 = vpack.c.bf16 %v795_v29, %v795_v29  ;;  %2848 = vmatpush3.bf16.msra.mxu1 %v3989_v46  ;;  %v1355_v63 = vsel %vm183_vm0, %v3316_v59, %v1163_v15  ;;  %v986_v18 = vshll.u32 %v4275_v24, 16 }
  0xff   : > { %v1195_v20 = vpop.permute.xlu1 %1194  ;;  %v1517_v52 = vsel %vm1382_vm5, %v1472_v40, %v1291_v30  ;;  %2849 = vmatprep.subr.bf16.mxu1 %v2969_v41  ;;  %v2502_v21 = vmul.f32 %v746_v26, %v746_v26  ;;  %v2503_v3 = vmul.f32 %v747_v48, %v747_v48  ;;  %v2450_v51 = vsel %vm183_vm0, %v746_v26, 0.0 }
 0x100   : > { %v1323_v43 = vpop.permute.xlu0 %1322  ;;  %v991_v28 = vshll.u32 %v837_v22, 16  ;;  %v988_v46 = vrot.slane %v986_v18, 1  ;;  %v1388_v59 = vsel %vm1382_vm5, %v1355_v63, %v1195_v20  ;;  %v2504_v37 = vmul.f32 %v748_v54, %v748_v54 }
 0x101   : > { %1176 = vrot.lane.b32.xlu1 %v4153_v56, %s3077_s18  ;;  %v1551_v13 = vsel %vm1415_vm6, %v1517_v52, %v1323_v43  ;;  %v2551_v27 = vsel %vm183_vm0, %v2502_v21, 0.0  ;;  %v2452_v32 = vsel %vm183_vm0, %v747_v48, 0.0  ;;  %v2505_v34 = vmul.f32 %v749_v10, %v749_v10 }
 0x102   : > { %1304 = vrot.lane.b32.xlu0 %v4275_v24, %s3076_s12  ;;  %1832 = vmatprep.mubr.bf16.mxu0 %v1551_v13  ;;  %v993_v44 = vrot.slane %v991_v28, 1  ;;  %v989_v31 = vor.u32 %v988_v46, %v984_v57  ;;  %v2553_v30 = vsel %vm183_vm0, %v2503_v3, 0.0  ;;  %v2451_v42 = vadd.f32 %v2450_v51, %v4224_v33 }
 0x103   : > { %v1227_v15 = vpop.permute.xlu1 %1226  ;;  %2850 = vmatpush3.bf16.msra.mxu1 %v2969_v41  ;;  %v2552_v8 = vadd.f32 %v2551_v27, %v4241_v19  ;;  %v1109_v41 = vrot.slane %v4275_v24, 1  ;;  %v2454_v40 = vsel %vm183_vm0, %v748_v54, 0.0  ;;  %v2506_v60 = vmul.f32 %v750_v7, %v750_v7 }
 0x104   : > { %v1423_v6 = vsel %vm1415_vm6, %v1388_v59, %v1227_v15  ;;  %v1281_v36 = vpop.permute.xlu0 %1280  ;;  %v4324_v2 = vsel %vm850_vm3, %v989_v31, %v993_v44  ;;  %v2555_v11 = vsel %vm183_vm0, %v2504_v37, 0.0  ;;  %v1110_v23 = vrot.slane %v837_v22, 1 }
 0x105   : > { %1208 = vrot.lane.b32.xlu1 %v4138_v25, %s3076_s12  ;;  %1833 = vmatmul.mubr.bf16.gmra.mrb[8].mxu0 %v1423_v6  ;;  %v2453_v26 = vadd.f32 %v2452_v32, %v2451_v42  ;;  %v2554_v48 = vadd.f32 %v2553_v30, %v2552_v8  ;;  %v2456_v20 = vsel %vm183_vm0, %v749_v10, 0.0  ;;  %v2507_v33 = vmul.f32 %v4304_v16, %v4304_v16 }
 0x106   : > { %1336 = vrot.lane.b32.xlu0 %v4324_v2, %s3078_s24  ;;  %v2557_v19 = vsel %vm183_vm0, %v2505_v34, 0.0  ;;  %v4342_v63 = vsel %vm470_vm2, %v1109_v41, %v1110_v23  ;;  %v1505_v22 = vsel %vm183_vm0, %v3622_v4, %v1281_v36  ;;  %v2458_v57 = vsel %vm183_vm0, %v750_v7, 0.0 }
 0x107   : > { %v1185_v62 = vpop.permute.xlu1 %1184  ;;  %v2455_v52 = vadd.f32 %v2454_v40, %v2453_v26  ;;  %v2556_v43 = vadd.f32 %v2555_v11, %v2554_v48  ;;  %v2559_v10 = vsel %vm183_vm0, %v2506_v60, 0.0  ;;  %v2460_v59 = vsel %vm183_vm0, %v4304_v16, 0.0 }
 0x108   : > { %v1313_v29 = vpop.permute.xlu0 %1312  ;;  %v2561_v15 = vsel %vm183_vm0, %v2507_v33, 0.0  ;;  %v1377_v7 = vsel %vm183_vm0, %v3391_v1, %v1185_v62 }
 0x109   : > { %1240 = vrot.lane.b32.xlu1 %v4175_v47, %s3078_s24  ;;  %v2457_v13 = vadd.f32 %v2456_v20, %v2455_v52  ;;  %v2558_v28 = vadd.f32 %v2557_v19, %v2556_v43  ;;  %v1539_v46 = vsel %vm1382_vm5, %v1505_v22, %v1313_v29  ;;  %v4995_v22 = vld [vmem:[#allocation16_spill] sm:$0xff] }
 0x10a   : > { %1274 = vrot.lane.b32.xlu0 %v4342_v63, %s3077_s18 }
 0x10b   : > { %v1217_v54 = vpop.permute.xlu1 %1216  ;;  %v2459_v44 = vadd.f32 %v2458_v57, %v2457_v13  ;;  %v2560_v21 = vadd.f32 %v2559_v10, %v2558_v28 }
 0x10c   : > { %v1261_v18 = vpop.permute.xlu0 %1260  ;;  %v1410_v16 = vsel %vm1382_vm5, %v1377_v7, %v1217_v54 }
 0x10d   : > { %1178 = vrot.lane.b32.xlu1 %v4235_v9, %s3077_s18  ;;  %v4361_v36 = vadd.f32 %v2460_v59, %v2459_v44  ;;  %v4363_v31 = vadd.f32 %v2561_v15, %v2560_v21  ;;  %v1475_v32 = vsel %vm183_vm0, %v3662_v39, %v1261_v18 }
 0x10e   : > { %1306 = vrot.lane.b32.xlu0 %v3454_v53, %s3076_s12 }
 0x10f   : > { %v1345_v4 = vpop.permute.xlu1 %1344 }
 0x110   : > { %v1584_v3 = vsel %vm1415_vm6, %v1539_v46, %v1345_v4  ;;  %v1165_v6 = vpop.permute.xlu0 %1164 }
 0x111   : > { %1210 = vrot.lane.b32.xlu1 %v4219_v50, %s3076_s12  ;;  %1920 = vmatprep.mubr.bf16.mxu1 %v1584_v3  ;;  %v1357_v30 = vsel %vm183_vm0, %v3323_v0, %v1165_v6 }
 0x112   : > { %1338 = vrot.lane.b32.xlu0 %v3504_v5, %s3078_s24 }
 0x113   : > { %v1249_v51 = vpop.permute.xlu1 %1248 }
 0x114   : > { %v1456_v37 = vsel %vm1415_vm6, %v1410_v16, %v1249_v51  ;;  %v1293_v27 = vpop.permute.xlu0 %1292 }
 0x115   : > { %1242 = vrot.lane.b32.xlu1 %v4275_v24, %s3078_s24  ;;  %1921 = vmatmul.mubr.bf16.gmra.mrb[4].mxu1 %v1456_v37  ;;  %v1519_v62 = vsel %vm1382_vm5, %v1475_v32, %v1293_v27 }
 0x116   : > { %1276 = vrot.lane.b32.xlu0 %v3531_v58, %s3077_s18 }
 0x117   : > { %v1197_v34 = vpop.permute.xlu1 %1196 }
 0x118   : > { %v1325_v42 = vpop.permute.xlu0 %1324  ;;  %v1390_v41 = vsel %vm1382_vm5, %v1357_v30, %v1197_v34  ;;  %v4996_v30 = vld [vmem:[#allocation9_spill] sm:$0xff] }
 0x119   : > { %1180 = vrot.lane.b32.xlu1 %v4324_v2, %s3077_s18  ;;  %v1554_v8 = vsel %vm1415_vm6, %v1519_v62, %v1325_v42  ;;  %v4997_v42 = vld [vmem:[#allocation22_spill] sm:$0xff] }
 0x11a   : > { %1840 = vmatprep.mubr.bf16.mxu0 %v1554_v8  ;;  %1308 = vrot.lane.b32.xlu0 %v3391_v1, %s3076_s12 }
 0x11b   : > { %v1229_v40 = vpop.permute.xlu1 %1228 }
 0x11c   : > { %v1426_v39 = vsel %vm1415_vm6, %v1390_v41, %v1229_v40  ;;  %v1283_v60 = vpop.permute.xlu0 %1282 }
 0x11d   : > { %1212 = vrot.lane.b32.xlu1 %v4342_v63, %s3076_s12  ;;  %1841 = vmatmul.mubr.bf16.gmra.mrb[12].mxu0 %v1426_v39  ;;  %v1508_v23 = vsel %vm183_vm0, %v3754_v61, %v1283_v60 }
 0x11e   : > { %1340 = vrot.lane.b32.xlu0 %v3687_v49, %s3078_s24 }
 0x11f   : > { %v1187_v0 = vpop.permute.xlu1 %1186 }
 0x120   : > { %v1315_v11 = vpop.permute.xlu0 %1314  ;;  %v1379_v20 = vsel %vm183_vm0, %v3549_v14, %v1187_v0 }
 0x121   : > { %1244 = vrot.lane.b32.xlu1 %v3454_v53, %s3078_s24  ;;  %v1541_v26 = vsel %vm1382_vm5, %v1508_v23, %v1315_v11 }
 0x123   : > { %v1219_v29 = vpop.permute.xlu1 %1218 }
 0x124   : > { %v1263_v1 = vpop.permute.xlu0 %1262  ;;  %v1412_v49 = vsel %vm1382_vm5, %v1379_v20, %v1219_v29  ;;  %v4998_v29 = vld [vmem:[#allocation14_spill] sm:$0xff]  ;;  %v5001_v20 = vld [vmem:[#allocation40_spill] sm:$0xff] }
 0x125   : > { %v1478_v61 = vsel %vm183_vm0, %v3804_v17, %v1263_v1 }
 0x127   : > { %v1347_v48 = vpop.permute.xlu1 %1346 }
 0x128   : > { %v1587_v33 = vsel %vm1415_vm6, %v1541_v26, %v1347_v48  ;;  %v1167_v19 = vpop.permute.xlu0 %1166  ;;  %v5000_v26 = vld [vmem:[#allocation28_spill] sm:$0xff] }
 0x129   : > { %1928 = vmatprep.mubr.bf16.mxu1 %v1587_v33  ;;  %v1359_v57 = vsel %vm183_vm0, %v4995_v22, %v1167_v19 }
 0x12b   : > { %v1251_v54 = vpop.permute.xlu1 %1250 }
 0x12c   : > { %v1459_v53 = vsel %vm1415_vm6, %v1412_v49, %v1251_v54  ;;  %v1295_v52 = vpop.permute.xlu0 %1294 }
 0x12d   : > { %1929 = vmatmul.mubr.bf16.gmra.mrb[8].mxu1 %v1459_v53  ;;  %v1521_v14 = vsel %vm1382_vm5, %v1478_v61, %v1295_v52  ;;  %v5002_v52 = vld [vmem:[#allocation29_spill] sm:$0xff] }
 0x12f   : > { %v1199_v43 = vpop.permute.xlu1 %1198 }
 0x130   : > { %v1327_v10 = vpop.permute.xlu0 %1326  ;;  %v1392_v13 = vsel %vm1382_vm5, %v1359_v57, %v1199_v43  ;;  %v5003_v43 = vld [vmem:[#allocation37_spill] sm:$0xff] }
 0x131   : > { %v1557_v18 = vsel %vm1415_vm6, %v1521_v14, %v1327_v10 }
 0x132   : > { %1848 = vmatprep.mubr.bf16.mxu0 %v1557_v18 }
 0x133   : > { %v1231_v28 = vpop.permute.xlu1 %1230 }
 0x134   : > { %v1429_v46 = vsel %vm1415_vm6, %v1392_v13, %v1231_v28  ;;  %v1285_v59 = vpop.permute.xlu0 %1284  ;;  %v5004_v13 = vld [vmem:[#allocation39_spill] sm:$0xff]  ;;  %v5005_v28 = vld [vmem:[#allocation36_spill] sm:$0xff] }
 0x135   : > { %1849 = vmatmul.mubr.bf16.gmra.mrb[16].mxu0 %v1429_v46  ;;  %v1511_v21 = vsel %vm183_vm0, %v3894_v45, %v1285_v59  ;;  %v5006_v59 = vld [vmem:[#allocation41_spill] sm:$0xff] }
 0x137   : > { %v1189_v15 = vpop.permute.xlu1 %1188 }
 0x138   : > { %v1317_v44 = vpop.permute.xlu0 %1316  ;;  %v1381_v6 = vsel %vm183_vm0, %v3693_v55, %v1189_v15 }
 0x139   : > { %v1543_v7 = vsel %vm1382_vm5, %v1511_v21, %v1317_v44 }
 0x13b   : > { %v1221_v17 = vpop.permute.xlu1 %1220 }
 0x13c   : > { %v1265_v4 = vpop.permute.xlu0 %1264  ;;  %v1414_v37 = vsel %vm1382_vm5, %v1381_v6, %v1221_v17 }
 0x13d   : > { %v1481_v45 = vsel %vm183_vm0, %v3920_v38, %v1265_v4  ;;  %v4999_v38 = vld [vmem:[#allocation20_spill] sm:$0xff] }
 0x13f   : > { %v1349_v3 = vpop.permute.xlu1 %1348 }
 0x140   : > { %v1590_v16 = vsel %vm1415_vm6, %v1543_v7, %v1349_v3  ;;  %v1169_v51 = vpop.permute.xlu0 %1168 }
 0x141   : > { %1936 = vmatprep.mubr.bf16.mxu1 %v1590_v16  ;;  %v1361_v55 = vsel %vm183_vm0, %v4997_v42, %v1169_v51 }
 0x143   : > { %v1253_v27 = vpop.permute.xlu1 %1252 }
 0x144   : > { %v1462_v32 = vsel %vm1415_vm6, %v1414_v37, %v1253_v27  ;;  %v1297_v34 = vpop.permute.xlu0 %1296  ;;  %v5007_v37 = vld [vmem:[#allocation38_spill] sm:$0xff] }
 0x145   : > { %1937 = vmatmul.mubr.bf16.gmra.mrb[12].mxu1 %v1462_v32  ;;  %v1523_v8 = vsel %vm1382_vm5, %v1481_v45, %v1297_v34 }
 0x146   : > { %2851 = vmatprep.mubr.msk.bf16.mxu1 %vm183_vm0, %v4996_v30 }
 0x147   : > { %v1201_v62 = vpop.permute.xlu1 %1200 }
 0x148   : > { %v1329_v41 = vpop.permute.xlu0 %1328  ;;  %v1394_v39 = vsel %vm1382_vm5, %v1361_v55, %v1201_v62 }
 0x149   : > { %v1560_v40 = vsel %vm1415_vm6, %v1523_v8, %v1329_v41  ;;  %v5008_v41 = vld [vmem:[#allocation10_spill] sm:$0xff] }
 0x14a   : > { %1856 = vmatprep.mubr.bf16.mxu0 %v1560_v40 }
 0x14b   : > { %v1233_v60 = vpop.permute.xlu1 %1232 }
 0x14c   : > { %v1432_v0 = vsel %vm1415_vm6, %v1394_v39, %v1233_v60  ;;  %v1267_v11 = vpop.permute.xlu0 %1266 }
 0x14d   : > { %2852 = vmatmul.mubr.msk.bf16.vlgmr.msra.gmra.mrb[16].mxu1 %vm183_vm0, %v4998_v29  ;;  %1857 = vmatmul.mubr.bf16.gmra.mrb[20].mxu0 %v1432_v0  ;;  %v1484_v33 = vsel %vm183_vm0, %v5001_v20, %v1267_v11  ;;  %v5013_v20 = vld [vmem:[#allocation32_spill] sm:$0xff] }
 0x14e   : > { %2855 = vmatprep.mubr.msk.bf16.mxu1 %vm183_vm0, %v4999_v38 }
 0x14f   : > { %v1171_v23 = vpop.permute.xlu1 %1170 }
 0x150   : > { %v1299_v1 = vpop.permute.xlu0 %1298  ;;  %v1363_v48 = vsel %vm183_vm0, %v5000_v26, %v1171_v23  ;;  %v5011_v26 = vld [vmem:[#allocation30_spill] sm:$0xff] }
 0x151   : > { %v1525_v49 = vsel %vm1382_vm5, %v1484_v33, %v1299_v1  ;;  %v5010_v1 = vld [vmem:[#allocation25_spill] sm:$0xff]  ;;  %v1156_v33 = vrot.slane %v5013_v20, 1 }
 0x153   : > { %v1203_v19 = vpop.permute.xlu1 %1202 }
 0x154   : > { %v1331_v54 = vpop.permute.xlu0 %1330  ;;  %v1396_v53 = vsel %vm1382_vm5, %v1363_v48, %v1203_v19 }
 0x155   : > { %2856 = vmatmul.mubr.msk.bf16.gmra.mrb[20].mxu1 %vm183_vm0, %v5002_v52  ;;  %v1563_v61 = vsel %vm1415_vm6, %v1525_v49, %v1331_v54 }
 0x156   : > { %2859 = vmatprep.mubr.msk.bf16.mxu1 %vm183_vm0, %v5003_v43  ;;  %1864 = vmatprep.mubr.bf16.mxu0 %v1563_v61 }
 0x157   : > { %v1235_v22 = vpop.permute.xlu1 %1234 }
 0x158   : > { %v1435_v57 = vsel %vm1415_vm6, %v1396_v53, %v1235_v22  ;;  %v1269_v14 = vpop.permute.xlu0 %1268 }
 0x159   : > { %1865 = vmatmul.mubr.bf16.gmra.mrb[24].mxu0 %v1435_v57  ;;  %v1487_v15 = vsel %vm183_vm0, %v5006_v59, %v1269_v14 }
 0x15b   : > { %v1173_v10 = vpop.permute.xlu1 %1172 }
 0x15c   : > { %v1301_v18 = vpop.permute.xlu0 %1300  ;;  %v1365_v46 = vsel %vm183_vm0, %v5005_v28, %v1173_v10 }
 0x15d   : > { %2860 = vmatmul.mubr.msk.bf16.gmra.mrb[24].mxu1 %vm183_vm0, %v5004_v13  ;;  %v1527_v17 = vsel %vm1382_vm5, %v1487_v15, %v1301_v18 }
 0x15e   : > { %2863 = vmatprep.mubr.msk.bf16.mxu1 %vm183_vm0, %v4070_v35 }
 0x15f   : > { %v1205_v44 = vpop.permute.xlu1 %1204 }
 0x160   : > { %v1333_v21 = vpop.permute.xlu0 %1332  ;;  %v1398_v4 = vsel %vm1382_vm5, %v1365_v46, %v1205_v44 }
 0x161   : > { %v1566_v7 = vsel %vm1415_vm6, %v1527_v17, %v1333_v21 }
 0x162   : > { %1872 = vmatprep.mubr.bf16.mxu0 %v1566_v7 }
 0x163   : > { %v1237_v3 = vpop.permute.xlu1 %1236 }
 0x164   : > { %v1438_v6 = vsel %vm1415_vm6, %v1398_v4, %v1237_v3  ;;  %v1271_v16 = vpop.permute.xlu0 %1270 }
 0x165   : > { %2864 = vmatmul.mubr.msk.bf16.gmra.mrb[28].mxu1 %vm183_vm0, %v4138_v25  ;;  %1873 = vmatmul.mubr.bf16.gmra.mrb[28].mxu0 %v1438_v6  ;;  %v1490_v32 = vsel %vm183_vm0, %v4153_v56, %v1271_v16 }
 0x166   : > { %2867 = vmatprep.mubr.msk.bf16.mxu1 %vm183_vm0, %v4219_v50 }
 0x167   : > { %v1175_v35 = vpop.permute.xlu1 %1174 }
 0x168   : > { %v1303_v51 = vpop.permute.xlu0 %1302  ;;  %v1367_v27 = vsel %vm183_vm0, %v5007_v37, %v1175_v35 }
 0x169   : > { %v1529_v30 = vsel %vm1382_vm5, %v1490_v32, %v1303_v51 }
 0x16b   : > { %v1207_v34 = vpop.permute.xlu1 %1206 }
 0x16c   : > { %v1335_v45 = vpop.permute.xlu0 %1334  ;;  %v1400_v62 = vsel %vm1382_vm5, %v1367_v27, %v1207_v34 }
 0x16d   : > { %2868 = vmatmul.mubr.msk.bf16.gmra.mrb[32].mxu1 %vm183_vm0, %v4342_v63  ;;  %v1569_v25 = vsel %vm1415_vm6, %v1529_v30, %v1335_v45  ;;  %v5009_v63 = vld [vmem:[#allocation19_spill] sm:$0xff] }
 0x16e   : > { %2871 = vmatprep.mubr.msk.bf16.mxu1 %vm183_vm0, %v3531_v58  ;;  %1880 = vmatprep.mubr.bf16.mxu0 %v1569_v25 }
 0x16f   : > { %v1239_v50 = vpop.permute.xlu1 %1238 }
 0x170   : > { %v1441_v42 = vsel %vm1415_vm6, %v1400_v62, %v1239_v50  ;;  %v1273_v55 = vpop.permute.xlu0 %1272 }
 0x171   : > { %1881 = vmatmul.mubr.bf16.gmra.mrb[32].mxu0 %v1441_v42  ;;  %v1493_v58 = vsel %vm183_vm0, %v4235_v9, %v1273_v55  ;;  %v5012_v9 = vld [vmem:[#allocation31_spill] sm:$0xff] }
 0x172   : > { %v1155_v48 = vrot.slane %v5012_v9, 1 }
 0x173   : > { %v1177_v56 = vpop.permute.xlu1 %1176 }
 0x174   : > { %v1305_v8 = vpop.permute.xlu0 %1304  ;;  %v1369_v40 = vsel %vm183_vm0, %v4086_v12, %v1177_v56  ;;  %v1157_v53 = vsel %vm470_vm2, %v1155_v48, %v1156_v33 }
 0x175   : > { %2872 = vmatmul.mubr.msk.bf16.gmra.mrb[36].mxu1 %vm183_vm0, %v5008_v41  ;;  %v1531_v0 = vsel %vm1382_vm5, %v1493_v58, %v1305_v8 }
 0x176   : > { %2875 = vmatprep.mubr.msk.bf16.mxu1 %vm183_vm0, %v5009_v63 }
 0x177   : > { %v1209_v39 = vpop.permute.xlu1 %1208 }
 0x178   : > { %v1402_v60 = vsel %vm1382_vm5, %v1369_v40, %v1209_v39  ;;  %v1337_v11 = vpop.permute.xlu0 %1336 }
 0x179   : > { %v1572_v29 = vsel %vm1415_vm6, %v1531_v0, %v1337_v11 }
 0x17a   : > { %1888 = vmatprep.mubr.bf16.mxu0 %v1572_v29 }
 0x17b   : > { %v1241_v38 = vpop.permute.xlu1 %1240 }
 0x17c   : > { %v1444_v23 = vsel %vm1415_vm6, %v1402_v60, %v1241_v38  ;;  %v1275_v12 = vpop.permute.xlu0 %1274 }
 0x17d   : > { %2876 = vmatmul.mubr.msk.bf16.gmra.mrb[40].mxu1 %vm183_vm0, %v5010_v1  ;;  %1889 = vmatmul.mubr.bf16.gmra.mrb[36].mxu0 %v1444_v23  ;;  %v1496_v61 = vsel %vm183_vm0, %v4324_v2, %v1275_v12 }
 0x17e   : > { %2879 = vmatprep.mubr.msk.bf16.mxu1 %vm183_vm0, %v5011_v26 }
 0x17f   : > { %v1179_v19 = vpop.permute.xlu1 %1178 }
 0x180   : > { %v1307_v49 = vpop.permute.xlu0 %1306  ;;  %v1371_v54 = vsel %vm183_vm0, %v4175_v47, %v1179_v19 }
 0x181   : > { %v1533_v22 = vsel %vm1382_vm5, %v1496_v61, %v1307_v49 }
 0x183   : > { %v1211_v52 = vpop.permute.xlu1 %1210 }
 0x184   : > { %v1404_v43 = vsel %vm1382_vm5, %v1371_v54, %v1211_v52  ;;  %v1339_v57 = vpop.permute.xlu0 %1338 }
 0x185   : > { %2880 = vmatmul.mubr.msk.bf16.gmra.mrb[44].mxu1 %vm183_vm0, %v1157_v53  ;;  %v1575_v14 = vsel %vm1415_vm6, %v1533_v22, %v1339_v57 }
 0x186   : > { %1896 = vmatprep.mubr.bf16.mxu0 %v1575_v14 }
 0x187   : > { %v1243_v10 = vpop.permute.xlu1 %1242 }
 0x188   : > { %v1447_v18 = vsel %vm1415_vm6, %v1404_v43, %v1243_v10  ;;  %v1277_v47 = vpop.permute.xlu0 %1276 }
 0x189   : > { %1897 = vmatmul.mubr.bf16.gmra.mrb[40].mxu0 %v1447_v18  ;;  %v1499_v59 = vsel %vm183_vm0, %v3504_v5, %v1277_v47 }
 0x18b   : > { %v1181_v13 = vpop.permute.xlu1 %1180 }
 0x18c   : > { %v1309_v28 = vpop.permute.xlu0 %1308  ;;  %v1373_v2 = vsel %vm183_vm0, %v4275_v24, %v1181_v13 }
 0x18d   : > { %v1535_v44 = vsel %vm1382_vm5, %v1499_v59, %v1309_v28 }
 0x18f   : > { %v1213_v46 = vpop.permute.xlu1 %1212 }
 0x190   : > { %v1406_v15 = vsel %vm1382_vm5, %v1373_v2, %v1213_v46  ;;  %v1341_v17 = vpop.permute.xlu0 %1340 }
 0x191   : > { %v1578_v21 = vsel %vm1415_vm6, %v1535_v44, %v1341_v17 }
 0x192   : > { %1904 = vmatprep.mubr.bf16.mxu0 %v1578_v21 }
 0x193   : > { %v1245_v4 = vpop.permute.xlu1 %1244 }
 0x194   : > { %v1450_v7 = vsel %vm1415_vm6, %v1406_v15, %v1245_v4 }
 0x195   : > { %1905 = vmatmul.mubr.bf16.gmra.mrb[44].mxu0 %v1450_v7 }
 0x1bc   : > { %v2733_v3 = vpop.f32.mrb[0].mxu0 }
 0x1bd   : > { %v2734_v6 = vpop.f32.mrb[1].mxu0 }
 0x1be   : > { %v2735_v16 = vadd.f32 %v2734_v6, %v2733_v3  ;;  %v2736_v24 = vpop.f32.mrb[2].mxu0 }
 0x1bf   : > { %v2737_v35 = vpop.f32.mrb[3].mxu0 }
 0x1c0   : > { %v4507_v51 = vadd.f32 %v2737_v35, %v2736_v24 }
 0x1c4   : > { %v2739_v5 = vpop.f32.mrb[4].mxu0 }
 0x1c5   : > { %v2740_v37 = vpop.f32.mrb[5].mxu0 }
 0x1c6   : > { %v2741_v27 = vadd.f32 %v2740_v37, %v2739_v5  ;;  %v2742_v32 = vpop.f32.mrb[6].mxu0 }
 0x1c7   : > { %v2743_v34 = vpop.f32.mrb[7].mxu0 }
 0x1c8   : > { %v2744_v30 = vadd.f32 %v2743_v34, %v2742_v32 }
 0x1d0   : > { %v2805_v45 = vpop.f32.mrb[0].mxu1 }
 0x1d1   : > { %v2806_v62 = vpop.f32.mrb[1].mxu1 }
 0x1d2   : > { %v4509_v25 = vadd.f32 %v2806_v62, %v2805_v45  ;;  %v2808_v50 = vpop.f32.mrb[2].mxu1 }
 0x1d3   : > { %v2809_v42 = vpop.f32.mrb[3].mxu1 }
 0x1d4   : > { %v4511_v55 = vadd.f32 %v2809_v42, %v2808_v50 }
 0x1d8   : > { %v2745_v56 = vpop.f32.mrb[8].mxu0 }
 0x1d9   : > { %v2746_v8 = vpop.f32.mrb[9].mxu0 }
 0x1da   : > { %v4513_v41 = vadd.f32 %v2746_v8, %v2745_v56  ;;  %v2748_v40 = vpop.f32.mrb[10].mxu0 }
 0x1db   : > { %v2749_v63 = vpop.f32.mrb[11].mxu0 }
 0x1dc   : > { %v4515_v39 = vadd.f32 %v2749_v63, %v2748_v40 }
 0x1e8   : > { %v2811_v58 = vpop.f32.mrb[4].mxu1 }
 0x1e9   : > { %v2812_v60 = vpop.f32.mrb[5].mxu1 }
 0x1ea   : > { %v4517_v0 = vadd.f32 %v2812_v60, %v2811_v58  ;;  %v2814_v11 = vpop.f32.mrb[6].mxu1 }
 0x1eb   : > { %v2815_v29 = vpop.f32.mrb[7].mxu1 }
 0x1ec   : > { %v4519_v38 = vadd.f32 %v2815_v29, %v2814_v11 }
 0x1f0   : > { %v2751_v23 = vpop.f32.mrb[12].mxu0 }
 0x1f1   : > { %v2752_v1 = vpop.f32.mrb[13].mxu0 }
 0x1f2   : > { %v4521_v12 = vadd.f32 %v2752_v1, %v2751_v23  ;;  %v2754_v26 = vpop.f32.mrb[14].mxu0 }
 0x1f3   : > { %v2755_v9 = vpop.f32.mrb[15].mxu0 }
 0x1f4   : > { %v4523_v48 = vadd.f32 %v2755_v9, %v2754_v26 }
 0x200   : > { %v2817_v20 = vpop.f32.mrb[8].mxu1 }
 0x201   : > { %v2818_v33 = vpop.f32.mrb[9].mxu1 }
 0x202   : > { %v4525_v19 = vadd.f32 %v2818_v33, %v2817_v20  ;;  %v2820_v49 = vpop.f32.mrb[10].mxu1 }
 0x203   : > { %v2821_v54 = vpop.f32.mrb[11].mxu1 }
 0x204   : > { %v4527_v53 = vadd.f32 %v2821_v54, %v2820_v49 }
 0x208   : > { %v2757_v52 = vpop.f32.mrb[16].mxu0 }
 0x209   : > { %v2758_v61 = vpop.f32.mrb[17].mxu0 }
 0x20a   : > { %v4529_v43 = vadd.f32 %v2758_v61, %v2757_v52  ;;  %v2760_v22 = vpop.f32.mrb[18].mxu0 }
 0x20b   : > { %v2761_v57 = vpop.f32.mrb[19].mxu0 }
 0x20c   : > { %v4531_v14 = vadd.f32 %v2761_v57, %v2760_v22 }
 0x218   : > { %v2823_v10 = vpop.f32.mrb[12].mxu1 }
 0x219   : > { %v2824_v18 = vpop.f32.mrb[13].mxu1 }
 0x21a   : > { %v4533_v47 = vadd.f32 %v2824_v18, %v2823_v10  ;;  %v2826_v13 = vpop.f32.mrb[14].mxu1 }
 0x21b   : > { %v2827_v28 = vpop.f32.mrb[15].mxu1 }
 0x21c   : > { %v4535_v2 = vadd.f32 %v2827_v28, %v2826_v13 }
 0x220   : > { %v2853_v46 = vpop.f32.mrb[16].mxu1  ;;  %v2763_v59 = vpop.f32.mrb[20].mxu0 }
 0x221   : > { %v1988_v15 = vadd.f32 %v2853_v46, %v2741_v27  ;;  %v1979_v44 = vpop.f32.mrb[17].mxu1  ;;  %v2764_v17 = vpop.f32.mrb[21].mxu0 }
 0x222   : > { %v1980_v21 = vadd.f32 %v2735_v16, %v1979_v44  ;;  %v2854_v4 = vpop.f32.mrb[18].mxu1  ;;  %v4537_v7 = vadd.f32 %v2764_v17, %v2763_v59  ;;  %v2766_v3 = vpop.f32.mrb[22].mxu0 }
 0x223   : > { %v2177_v6 = vmul.f32 %v1988_v15, %v1988_v15  ;;  %v1991_v24 = vadd.f32 %v2854_v4, %v2744_v30  ;;  %v1982_v35 = vpop.f32.mrb[19].mxu1  ;;  %v2767_v5 = vpop.f32.mrb[23].mxu0  ;;  %v2109_v37 = vsel %vm183_vm0, %v1988_v15, 0.0  ;;  %v2280_v45 = vsel %vm2276_vm7, %v1988_v15, 0.0 }
 0x224   : > { %v2175_v32 = vmul.f32 %v1980_v21, %v1980_v21  ;;  %v1983_v34 = vadd.f32 %v4507_v51, %v1982_v35  ;;  %v2106_v27 = vsel %vm183_vm0, %v1980_v21, 0.0  ;;  %v2277_v62 = vsel %vm2276_vm7, %v1980_v21, 0.0 }
 0x225   : > { %v2178_v16 = vmul.f32 %v1991_v24, %v1991_v24  ;;  %v2210_v50 = vsel %vm183_vm0, %v2177_v6, 0.0  ;;  %v2349_v42 = vsel %vm2276_vm7, %v2177_v6, 0.0  ;;  %v2111_v30 = vsel %vm183_vm0, %v1991_v24, 0.0 }
 0x226   : > { %v2107_v56 = vsel %vm183_vm0, %v1983_v34, 0.0  ;;  %v2207_v8 = vsel %vm183_vm0, %v2175_v32, 0.0  ;;  %v2346_v40 = vsel %vm2276_vm7, %v2175_v32, 0.0  ;;  %v2176_v63 = vmul.f32 %v1983_v34, %v1983_v34 }
 0x227   : > { %v2108_v51 = vadd.f32 %v2107_v56, %v2106_v27  ;;  %v2212_v58 = vsel %vm183_vm0, %v2178_v16, 0.0  ;;  %v2282_v60 = vsel %vm2276_vm7, %v1991_v24, 0.0  ;;  %v2278_v11 = vsel %vm2276_vm7, %v1983_v34, 0.0 }
 0x228   : > { %v4553_v29 = vadd.f32 %v2767_v5, %v2766_v3  ;;  %v2857_v23 = vpop.f32.mrb[20].mxu1  ;;  %v2208_v26 = vsel %vm183_vm0, %v2176_v63, 0.0  ;;  %v2279_v9 = vadd.f32 %v2278_v11, %v2277_v62  ;;  %v2347_v20 = vsel %vm2276_vm7, %v2176_v63, 0.0 }
 0x229   : > { %v2110_v1 = vadd.f32 %v2109_v37, %v2108_v51  ;;  %v1995_v33 = vpop.f32.mrb[21].mxu1  ;;  %v2209_v49 = vadd.f32 %v2208_v26, %v2207_v8  ;;  %v2348_v54 = vadd.f32 %v2347_v20, %v2346_v40  ;;  %v2004_v52 = vadd.f32 %v2857_v23, %v4521_v12 }
 0x22a   : > { %v1996_v61 = vadd.f32 %v4513_v41, %v1995_v33  ;;  %v2858_v22 = vpop.f32.mrb[22].mxu1  ;;  %v2351_v57 = vsel %vm2276_vm7, %v2178_v16, 0.0  ;;  %v2281_v10 = vadd.f32 %v2280_v45, %v2279_v9 }
 0x22b   : > { %v2112_v18 = vadd.f32 %v2111_v30, %v2110_v1  ;;  %v2007_v13 = vadd.f32 %v2858_v22, %v4523_v48  ;;  %v1998_v28 = vpop.f32.mrb[23].mxu1  ;;  %v2211_v46 = vadd.f32 %v2210_v50, %v2209_v49  ;;  %v2350_v59 = vadd.f32 %v2349_v42, %v2348_v54 }
 0x22c   : > { %v2117_v15 = vsel %vm183_vm0, %v2004_v52, 0.0  ;;  %v2181_v44 = vmul.f32 %v2004_v52, %v2004_v52  ;;  %v2769_v17 = vpop.f32.mrb[24].mxu0  ;;  %v2288_v21 = vsel %vm2276_vm7, %v2004_v52, 0.0  ;;  %v2113_v12 = vsel %vm183_vm0, %v1996_v61, 0.0 }
 0x22d   : > { %v2179_v4 = vmul.f32 %v1996_v61, %v1996_v61  ;;  %v2283_v41 = vadd.f32 %v2282_v60, %v2281_v10  ;;  %v2770_v3 = vpop.f32.mrb[25].mxu0  ;;  %v2114_v35 = vadd.f32 %v2113_v12, %v2112_v18  ;;  %v2213_v48 = vadd.f32 %v2212_v58, %v2211_v46 }
 0x22e   : > { %v2218_v6 = vsel %vm183_vm0, %v2181_v44, 0.0  ;;  %v2357_v24 = vsel %vm2276_vm7, %v2181_v44, 0.0  ;;  %v2772_v5 = vpop.f32.mrb[26].mxu0  ;;  %v2284_v32 = vsel %vm2276_vm7, %v1996_v61, 0.0  ;;  %v2352_v34 = vadd.f32 %v2351_v57, %v2350_v59 }
 0x22f   : > { %v2214_v37 = vsel %vm183_vm0, %v2179_v4, 0.0  ;;  %v2353_v45 = vsel %vm2276_vm7, %v2179_v4, 0.0  ;;  %v2773_v27 = vpop.f32.mrb[27].mxu0  ;;  %v2285_v16 = vadd.f32 %v2284_v32, %v2283_v41  ;;  %v2119_v50 = vsel %vm183_vm0, %v2007_v13, 0.0 }
 0x230   : > { %v2215_v62 = vadd.f32 %v2214_v37, %v2213_v48  ;;  %v2182_v42 = vmul.f32 %v2007_v13, %v2007_v13  ;;  %v2861_v30 = vpop.f32.mrb[24].mxu1  ;;  %v2354_v56 = vadd.f32 %v2353_v45, %v2352_v34  ;;  %v2290_v8 = vsel %vm2276_vm7, %v2007_v13, 0.0 }
 0x231   : > { %v1999_v40 = vadd.f32 %v4515_v39, %v1998_v28  ;;  %v2020_v51 = vadd.f32 %v2861_v30, %v4537_v7  ;;  %v2011_v63 = vpop.f32.mrb[25].mxu1  ;;  %v2771_v23 = vadd.f32 %v2770_v3, %v2769_v17  ;;  %v2774_v32 = vadd.f32 %v2773_v27, %v2772_v5 }
 0x232   : > { %v2220_v58 = vsel %vm183_vm0, %v2182_v42, 0.0  ;;  %v2359_v60 = vsel %vm2276_vm7, %v2182_v42, 0.0  ;;  %v2012_v11 = vadd.f32 %v4529_v43, %v2011_v63  ;;  %v2862_v1 = vpop.f32.mrb[26].mxu1 }
 0x233   : > { %v2115_v26 = vsel %vm183_vm0, %v1999_v40, 0.0  ;;  %v2180_v9 = vmul.f32 %v1999_v40, %v1999_v40  ;;  %v2286_v20 = vsel %vm2276_vm7, %v1999_v40, 0.0  ;;  %v2125_v33 = vsel %vm183_vm0, %v2020_v51, 0.0  ;;  %v2014_v49 = vpop.f32.mrb[27].mxu1 }
 0x234   : > { %v2116_v39 = vadd.f32 %v2115_v26, %v2114_v35  ;;  %v2287_v54 = vadd.f32 %v2286_v20, %v2285_v16  ;;  %v2185_v7 = vmul.f32 %v2020_v51, %v2020_v51  ;;  %v2296_v52 = vsel %vm2276_vm7, %v2020_v51, 0.0 }
 0x235   : > { %v2216_v61 = vsel %vm183_vm0, %v2180_v9, 0.0  ;;  %v2355_v22 = vsel %vm2276_vm7, %v2180_v9, 0.0  ;;  %v2121_v43 = vsel %vm183_vm0, %v2012_v11, 0.0  ;;  %v2183_v57 = vmul.f32 %v2012_v11, %v2012_v11 }
 0x236   : > { %v2118_v10 = vadd.f32 %v2117_v15, %v2116_v39  ;;  %v2217_v18 = vadd.f32 %v2216_v61, %v2215_v62  ;;  %v2289_v13 = vadd.f32 %v2288_v21, %v2287_v54  ;;  %v2356_v28 = vadd.f32 %v2355_v22, %v2354_v56 }
 0x237   : > { %v2226_v46 = vsel %vm183_vm0, %v2185_v7, 0.0  ;;  %v2365_v59 = vsel %vm2276_vm7, %v2185_v7, 0.0  ;;  %v2222_v44 = vsel %vm183_vm0, %v2183_v57, 0.0  ;;  %v2292_v17 = vsel %vm2276_vm7, %v2012_v11, 0.0 }
 0x238   : > { %v2219_v12 = vadd.f32 %v2218_v6, %v2217_v18  ;;  %v2358_v4 = vadd.f32 %v2357_v24, %v2356_v28  ;;  %v2120_v41 = vadd.f32 %v2119_v50, %v2118_v10  ;;  %v2291_v3 = vadd.f32 %v2290_v8, %v2289_v13  ;;  %v4587_v35 = vpop.f32.mrb[28].mxu1  ;;  %v2775_v48 = vpop.f32.mrb[28].mxu0 }
 0x239   : > { %v2361_v15 = vsel %vm2276_vm7, %v2183_v57, 0.0  ;;  %v2023_v21 = vadd.f32 %v2862_v1, %v4553_v29  ;;  %v2015_v37 = vadd.f32 %v4531_v14, %v2014_v49  ;;  %v2027_v34 = vpop.f32.mrb[29].mxu1  ;;  %v2776_v45 = vpop.f32.mrb[29].mxu0 }
 0x23a   : > { %v2122_v62 = vadd.f32 %v2121_v43, %v2120_v41  ;;  %v2221_v16 = vadd.f32 %v2220_v58, %v2219_v12  ;;  %v2293_v42 = vadd.f32 %v2292_v17, %v2291_v3  ;;  %v2360_v30 = vadd.f32 %v2359_v60, %v2358_v4  ;;  %v4592_v6 = vpop.f32.mrb[30].mxu1  ;;  %v2778_v24 = vpop.f32.mrb[30].mxu0 }
 0x23b   : > { %v2127_v50 = vsel %vm183_vm0, %v2023_v21, 0.0  ;;  %v2186_v56 = vmul.f32 %v2023_v21, %v2023_v21  ;;  %v2298_v8 = vsel %vm2276_vm7, %v2023_v21, 0.0  ;;  %v2123_v40 = vsel %vm183_vm0, %v2015_v37, 0.0  ;;  %v2030_v29 = vpop.f32.mrb[31].mxu1  ;;  %v2779_v51 = vpop.f32.mrb[31].mxu0 }
 0x23c   : > { %v2223_v14 = vadd.f32 %v2222_v44, %v2221_v16  ;;  %v2362_v5 = vadd.f32 %v2361_v15, %v2360_v30  ;;  %v2124_v27 = vadd.f32 %v2123_v40, %v2122_v62  ;;  %v2184_v63 = vmul.f32 %v2015_v37, %v2015_v37 }
 0x23d   : > { %v2228_v58 = vsel %vm183_vm0, %v2186_v56, 0.0  ;;  %v2367_v60 = vsel %vm2276_vm7, %v2186_v56, 0.0  ;;  %v2294_v11 = vsel %vm2276_vm7, %v2015_v37, 0.0  ;;  %v2028_v1 = vadd.f32 %v2771_v23, %v2027_v34 }
 0x23e   : > { %v2126_v26 = vadd.f32 %v2125_v33, %v2124_v27  ;;  %v2224_v9 = vsel %vm183_vm0, %v2184_v63, 0.0  ;;  %v2295_v20 = vadd.f32 %v2294_v11, %v2293_v42  ;;  %v2363_v49 = vsel %vm2276_vm7, %v2184_v63, 0.0 }
 0x23f   : > { %v2225_v39 = vadd.f32 %v2224_v9, %v2223_v14  ;;  %v2364_v54 = vadd.f32 %v2363_v49, %v2362_v5  ;;  %v2129_v7 = vsel %vm183_vm0, %v2028_v1, 0.0  ;;  %v2187_v61 = vmul.f32 %v2028_v1, %v2028_v1 }
 0x240   : > { %v2297_v22 = vadd.f32 %v2296_v52, %v2295_v20  ;;  %v2128_v43 = vadd.f32 %v2127_v50, %v2126_v26  ;;  %v2300_v57 = vsel %vm2276_vm7, %v2028_v1, 0.0  ;;  %v2031_v10 = vadd.f32 %v2774_v32, %v2030_v29  ;;  %v4604_v18 = vpop.f32.mrb[32].mxu1 }
 0x241   : > { %v2227_v13 = vadd.f32 %v2226_v46, %v2225_v39  ;;  %v2366_v23 = vadd.f32 %v2365_v59, %v2364_v54  ;;  %v2230_v33 = vsel %vm183_vm0, %v2187_v61, 0.0  ;;  %v2369_v28 = vsel %vm2276_vm7, %v2187_v61, 0.0  ;;  %v2043_v44 = vpop.f32.mrb[33].mxu1 }
 0x242   : > { %v2130_v17 = vadd.f32 %v2129_v7, %v2128_v43  ;;  %v2299_v12 = vadd.f32 %v2298_v8, %v2297_v22  ;;  %v2131_v4 = vsel %vm183_vm0, %v2031_v10, 0.0  ;;  %v2188_v41 = vmul.f32 %v2031_v10, %v2031_v10  ;;  %v4609_v3 = vpop.f32.mrb[34].mxu1 }
 0x243   : > { %v2229_v52 = vadd.f32 %v2228_v58, %v2227_v13  ;;  %v2368_v15 = vadd.f32 %v2367_v60, %v2366_v23  ;;  %v2302_v21 = vsel %vm2276_vm7, %v2031_v10, 0.0  ;;  %v2777_v37 = vadd.f32 %v2776_v45, %v2775_v48  ;;  %v2046_v32 = vpop.f32.mrb[35].mxu1 }
 0x244   : > { %v2301_v46 = vadd.f32 %v2300_v57, %v2299_v12  ;;  %v2132_v59 = vadd.f32 %v2131_v4, %v2130_v17  ;;  %v2232_v34 = vsel %vm183_vm0, %v2188_v41, 0.0  ;;  %v2371_v62 = vsel %vm2276_vm7, %v2188_v41, 0.0  ;;  %v2781_v16 = vpop.f32.mrb[32].mxu0 }
 0x245   : > { %v2231_v42 = vadd.f32 %v2230_v33, %v2229_v52  ;;  %v2370_v30 = vadd.f32 %v2369_v28, %v2368_v15  ;;  %v2036_v50 = vadd.f32 %v4587_v35, %v2777_v37  ;;  %v2780_v56 = vadd.f32 %v2779_v51, %v2778_v24  ;;  %v2782_v8 = vpop.f32.mrb[33].mxu0 }
 0x246   : > { %v2303_v40 = vadd.f32 %v2302_v21, %v2301_v46  ;;  %v2783_v29 = vadd.f32 %v2782_v8, %v2781_v16  ;;  %v2784_v14 = vpop.f32.mrb[34].mxu0 }
 0x247   : > { %v2233_v5 = vadd.f32 %v2232_v34, %v2231_v42  ;;  %v2372_v27 = vadd.f32 %v2371_v62, %v2370_v30  ;;  %v2133_v48 = vsel %vm183_vm0, %v2036_v50, 0.0  ;;  %v2189_v45 = vmul.f32 %v2036_v50, %v2036_v50  ;;  %v2785_v63 = vpop.f32.mrb[35].mxu0 }
 0x248   : > { %v2134_v58 = vadd.f32 %v2133_v48, %v2132_v59  ;;  %v2304_v60 = vsel %vm2276_vm7, %v2036_v50, 0.0  ;;  %v2039_v11 = vadd.f32 %v4592_v6, %v2780_v56  ;;  %v2044_v1 = vadd.f32 %v2783_v29, %v2043_v44  ;;  %v4618_v26 = vpop.f32.mrb[36].mxu1 }
 0x249   : > { %v2234_v35 = vsel %vm183_vm0, %v2189_v45, 0.0  ;;  %v2305_v24 = vadd.f32 %v2304_v60, %v2303_v40  ;;  %v2373_v51 = vsel %vm2276_vm7, %v2189_v45, 0.0  ;;  %v2786_v9 = vadd.f32 %v2785_v63, %v2784_v14  ;;  %v4622_v20 = vpop.f32.mrb[37].mxu1 }
 0x24a   : > { %v2235_v49 = vadd.f32 %v2234_v35, %v2233_v5  ;;  %v2374_v39 = vadd.f32 %v2373_v51, %v2372_v27  ;;  %v2135_v54 = vsel %vm183_vm0, %v2039_v11, 0.0  ;;  %v2190_v7 = vmul.f32 %v2039_v11, %v2039_v11  ;;  %v4625_v61 = vpop.f32.mrb[38].mxu1 }
 0x24b   : > { %v2136_v22 = vadd.f32 %v2135_v54, %v2134_v58  ;;  %v2306_v6 = vsel %vm2276_vm7, %v2039_v11, 0.0  ;;  %v2137_v43 = vsel %vm183_vm0, %v2044_v1, 0.0  ;;  %v2191_v57 = vmul.f32 %v2044_v1, %v2044_v1  ;;  %v4629_v10 = vpop.f32.mrb[39].mxu1 }
 0x24c   : > { %v2236_v13 = vsel %vm183_vm0, %v2190_v7, 0.0  ;;  %v2307_v23 = vadd.f32 %v2306_v6, %v2305_v24  ;;  %v2375_v33 = vsel %vm2276_vm7, %v2190_v7, 0.0  ;;  %v2308_v28 = vsel %vm2276_vm7, %v2044_v1, 0.0  ;;  %v5015_v7 = vld [vmem:[#allocation11_spill] sm:$0xff] }
 0x24d   : > { %v2237_v44 = vadd.f32 %v2236_v13, %v2235_v49  ;;  %v2376_v17 = vadd.f32 %v2375_v33, %v2374_v39  ;;  %v2138_v12 = vadd.f32 %v2137_v43, %v2136_v22  ;;  %v2238_v4 = vsel %vm183_vm0, %v2191_v57, 0.0 }
 0x24e   : > { %v2309_v41 = vadd.f32 %v2308_v28, %v2307_v23  ;;  %v2377_v52 = vsel %vm2276_vm7, %v2191_v57, 0.0  ;;  %v2047_v15 = vadd.f32 %v2786_v9, %v2046_v32  ;;  %v5014_v9 = vld [vmem:[#allocation15_spill] sm:$0xff]  ;;  %v676_v22 = vrot.slane %v5015_v7, 2 }
 0x24f   : > { %v2239_v21 = vadd.f32 %v2238_v4, %v2237_v44  ;;  %v2378_v37 = vadd.f32 %v2377_v52, %v2376_v17 }
 0x250   : > { %v2139_v46 = vsel %vm183_vm0, %v2047_v15, 0.0  ;;  %v2192_v59 = vmul.f32 %v2047_v15, %v2047_v15  ;;  %v2310_v34 = vsel %vm2276_vm7, %v2047_v15, 0.0  ;;  %v2877_v62 = vpop.f32.mrb[40].mxu1  ;;  %v2787_v16 = vpop.f32.mrb[36].mxu0 }
 0x251   : > { %v2140_v42 = vadd.f32 %v2139_v46, %v2138_v12  ;;  %v2311_v30 = vadd.f32 %v2310_v34, %v2309_v41  ;;  %v2084_v50 = vadd.f32 %v2877_v62, %v4517_v0  ;;  %v2075_v56 = vpop.f32.mrb[41].mxu1  ;;  %v2788_v8 = vpop.f32.mrb[37].mxu0 }
 0x252   : > { %v2240_v40 = vsel %vm183_vm0, %v2192_v59, 0.0  ;;  %v2379_v29 = vsel %vm2276_vm7, %v2192_v59, 0.0  ;;  %v2076_v32 = vadd.f32 %v4509_v25, %v2075_v56  ;;  %v2878_v14 = vpop.f32.mrb[42].mxu1  ;;  %v2789_v5 = vadd.f32 %v2788_v8, %v2787_v16  ;;  %v2790_v27 = vpop.f32.mrb[38].mxu0  ;;  %v5018_v8 = vld [vmem:[#allocation23_spill] sm:$0xff] }
 0x253   : > { %v2241_v48 = vadd.f32 %v2240_v40, %v2239_v21  ;;  %v2380_v45 = vadd.f32 %v2379_v29, %v2378_v37  ;;  %v2078_v63 = vpop.f32.mrb[43].mxu1  ;;  %v2791_v58 = vpop.f32.mrb[39].mxu0  ;;  %v2087_v60 = vadd.f32 %v2878_v14, %v4519_v38  ;;  %v2509_v25 = vmul.f32 %v5014_v9, %v5014_v9  ;;  %v5016_v21 = vld [vmem:[#allocation17_spill] sm:$0xff] }
 0x254   : > { %v2079_v11 = vadd.f32 %v4511_v55, %v2078_v63  ;;  %v2052_v0 = vadd.f32 %v4604_v18, %v2789_v5  ;;  %v2792_v1 = vadd.f32 %v2791_v58, %v2790_v27  ;;  %v4652_v38 = vsel %vm183_vm0, %v5014_v9, 0.0  ;;  %v5019_v5 = vld [vmem:[#allocation27_spill] sm:$0xff] }
 0x255   : > { %v4670_v41 = vsel %vm183_vm0, %v2509_v25, 0.0  ;;  %v536_v37 = vrot.slane %v5016_v21, 1  ;;  %v4685_v27 = vmul.f32 %v5019_v5, %v5019_v5  ;;  %v2202_v63 = vmul.f32 %v2087_v60, %v2087_v60 }
 0x256   : > { %v2141_v35 = vsel %vm183_vm0, %v2052_v0, 0.0  ;;  %v2193_v24 = vmul.f32 %v2052_v0, %v2052_v0  ;;  %v2312_v39 = vsel %vm2276_vm7, %v2052_v0, 0.0  ;;  %v2055_v13 = vadd.f32 %v4609_v3, %v2792_v1 }
 0x257   : > { %v2142_v49 = vadd.f32 %v2141_v35, %v2140_v42  ;;  %v2313_v18 = vadd.f32 %v2312_v39, %v2311_v30  ;;  %v5017_v30 = vld [vmem:[#allocation21_spill] sm:$0xff]  ;;  %v4697_v0 = vsel %vm183_vm0, %v2076_v32, 0.0  ;;  %v4700_v1 = vsel %vm2276_vm7, %v2076_v32, 0.0 }
 0x258   : > { %v2881_v51 = vpop.f32.mrb[44].mxu1  ;;  %v2242_v55 = vsel %vm183_vm0, %v2193_v24, 0.0  ;;  %v2381_v57 = vsel %vm2276_vm7, %v2193_v24, 0.0  ;;  %v2143_v3 = vsel %vm183_vm0, %v2055_v13, 0.0  ;;  %v2194_v52 = vmul.f32 %v2055_v13, %v2055_v13 }
 0x259   : > { %v2091_v54 = vpop.f32.mrb[45].mxu1  ;;  %v2243_v43 = vadd.f32 %v2242_v55, %v2241_v48  ;;  %v4658_v23 = vadd.f32 %v2881_v51, %v4533_v47  ;;  %v2382_v28 = vadd.f32 %v2381_v57, %v2380_v45  ;;  %v2314_v47 = vsel %vm2276_vm7, %v2055_v13, 0.0 }
 0x25a   : > { %v2882_v6 = vpop.f32.mrb[46].mxu1  ;;  %v4661_v44 = vadd.f32 %v4525_v19, %v2091_v54  ;;  %v2201_v19 = vmul.f32 %v2084_v50, %v2084_v50  ;;  %v2144_v46 = vadd.f32 %v2143_v3, %v2142_v49  ;;  %v2315_v59 = vadd.f32 %v2314_v47, %v2313_v18 }
 0x25b   : > { %v2094_v33 = vpop.f32.mrb[47].mxu1  ;;  %v4664_v17 = vadd.f32 %v2882_v6, %v4535_v2  ;;  %v2244_v62 = vsel %vm183_vm0, %v2194_v52, 0.0  ;;  %v2383_v16 = vsel %vm2276_vm7, %v2194_v52, 0.0  ;;  %v4680_v56 = vmul.f32 %v5017_v30, %v5017_v30 }
 0x25c   : > { %v4667_v12 = vadd.f32 %v4527_v53, %v2094_v33  ;;  %v2793_v4 = vpop.f32.mrb[40].mxu0  ;;  %v2199_v53 = vmul.f32 %v2076_v32, %v2076_v32  ;;  %v2245_v29 = vadd.f32 %v2244_v62, %v2243_v43  ;;  %v2384_v14 = vadd.f32 %v2383_v16, %v2382_v28 }
 0x25d   : > { %v2794_v15 = vpop.f32.mrb[41].mxu0  ;;  %v4688_v48 = vsel %vm183_vm0, %v2084_v50, 0.0  ;;  %v4691_v45 = vsel %vm2276_vm7, %v2084_v50, 0.0  ;;  %v4694_v58 = vsel %vm183_vm0, %v2201_v19, 0.0  ;;  %v2200_v35 = vmul.f32 %v2079_v11, %v2079_v11 }
 0x25e   : > { %v2796_v2 = vpop.f32.mrb[42].mxu0  ;;  %v4703_v24 = vsel %vm2276_vm7, %v2201_v19, 0.0  ;;  %v4706_v51 = vsel %vm183_vm0, %v2199_v53, 0.0  ;;  %v2795_v9 = vadd.f32 %v2794_v15, %v2793_v4  ;;  %v4709_v25 = vsel %vm2276_vm7, %v2199_v53, 0.0 }
 0x25f   : > { %v2797_v42 = vpop.f32.mrb[43].mxu0  ;;  %v4712_v49 = vsel %vm183_vm0, %v2087_v60, 0.0  ;;  %v4715_v39 = vsel %vm2276_vm7, %v2087_v60, 0.0  ;;  %v4718_v32 = vsel %vm183_vm0, %v2079_v11, 0.0  ;;  %v4721_v54 = vsel %vm183_vm0, %v2202_v63, 0.0 }
 0x260   : > { %v2798_v50 = vadd.f32 %v2797_v42, %v2796_v2  ;;  %v4724_v55 = vsel %vm2276_vm7, %v2079_v11, 0.0  ;;  %v2060_v18 = vadd.f32 %v2795_v9, %v4622_v20  ;;  %v4729_v43 = vsel %vm2276_vm7, %v2202_v63, 0.0 }
 0x261   : > { %v4732_v57 = vsel %vm183_vm0, %v2200_v35, 0.0  ;;  %v4735_v60 = vsel %vm2276_vm7, %v2200_v35, 0.0  ;;  %v4739_v13 = vsel %vm183_vm0, %v4658_v23, 0.0  ;;  %v2205_v15 = vmul.f32 %v4658_v23, %v4658_v23 }
 0x262   : > { %v2063_v6 = vadd.f32 %v2798_v50, %v4629_v10  ;;  %v2145_v11 = vsel %vm183_vm0, %v2060_v18, 0.0  ;;  %v2195_v33 = vmul.f32 %v2060_v18, %v2060_v18  ;;  %v2316_v20 = vsel %vm2276_vm7, %v2060_v18, 0.0 }
 0x263   : > { %v2146_v28 = vadd.f32 %v2145_v11, %v2144_v46  ;;  %v2317_v4 = vadd.f32 %v2316_v20, %v2315_v59  ;;  %v2203_v19 = vmul.f32 %v4661_v44, %v4661_v44  ;;  %v4754_v35 = vsel %vm2276_vm7, %v4658_v23, 0.0 }
 0x264   : > { %v2147_v10 = vsel %vm183_vm0, %v2063_v6, 0.0  ;;  %v2196_v3 = vmul.f32 %v2063_v6, %v2063_v6  ;;  %v2318_v52 = vsel %vm2276_vm7, %v2063_v6, 0.0  ;;  %v2246_v2 = vsel %vm183_vm0, %v2195_v33, 0.0 }
 0x265   : > { %v2385_v53 = vsel %vm2276_vm7, %v2195_v33, 0.0  ;;  %v2247_v16 = vadd.f32 %v2246_v2, %v2245_v29  ;;  %v2148_v63 = vadd.f32 %v2147_v10, %v2146_v28  ;;  %v2319_v9 = vadd.f32 %v2318_v52, %v2317_v4 }
 0x266   : > { %v2386_v42 = vadd.f32 %v2385_v53, %v2384_v14  ;;  %v2248_v46 = vsel %vm183_vm0, %v2196_v3, 0.0  ;;  %v2387_v50 = vsel %vm2276_vm7, %v2196_v3, 0.0  ;;  %v4759_v11 = vsel %vm183_vm0, %v4661_v44, 0.0 }
 0x267   : > { %v2249_v33 = vadd.f32 %v2248_v46, %v2247_v16  ;;  %v4762_v20 = vsel %vm183_vm0, %v2205_v15, 0.0  ;;  %v4765_v10 = vsel %vm2276_vm7, %v2205_v15, 0.0  ;;  %v4768_v23 = vsel %vm183_vm0, %v2203_v19, 0.0 }
 0x268   : > { %v2799_v47 = vpop.f32.mrb[44].mxu0  ;;  %v2388_v29 = vadd.f32 %v2387_v50, %v2386_v42  ;;  %v2332_v4 = vsel %vm2276_vm7, %v4661_v44, 0.0  ;;  %v4774_v3 = vsel %vm2276_vm7, %v2203_v19, 0.0  ;;  %v4778_v52 = vsel %vm183_vm0, %v4664_v17, 0.0 }
 0x269   : > { %v2800_v62 = vpop.f32.mrb[45].mxu0 }
 0x26a   : > { %v2802_v59 = vpop.f32.mrb[46].mxu0  ;;  %v2801_v18 = vadd.f32 %v2800_v62, %v2799_v47  ;;  %v5020_v62 = vld [vmem:[#allocation13_spill] sm:$0xff] }
 0x26b   : > { %v2803_v6 = vpop.f32.mrb[47].mxu0 }
 0x26c   : > { %v2804_v14 = vadd.f32 %v2803_v6, %v2802_v59  ;;  %v2068_v28 = vadd.f32 %v4618_v26, %v2801_v18  ;;  %v607_v26 = vadd.f32 %v5020_v62, %v5015_v7 }
 0x26e   : > { %v2071_v47 = vadd.f32 %v4625_v61, %v2804_v14  ;;  %v2149_v15 = vsel %vm183_vm0, %v2068_v28, 0.0  ;;  %v2197_v2 = vmul.f32 %v2068_v28, %v2068_v28  ;;  %v2320_v53 = vsel %vm2276_vm7, %v2068_v28, 0.0  ;;  %v5021_v61 = vld [vmem:[#allocation12_spill] sm:$0xff] }
 0x26f   : > { %v2150_v16 = vadd.f32 %v2149_v15, %v2148_v63  ;;  %v2321_v42 = vadd.f32 %v2320_v53, %v2319_v9  ;;  %v5022_v18 = vrot.slane %v5021_v61, 2  ;;  %v5023_v53 = vld [vmem:[#allocation18_spill] sm:$0xff] }
 0x270   : > { %v2151_v44 = vsel %vm183_vm0, %v2071_v47, 0.0  ;;  %v2198_v19 = vmul.f32 %v2071_v47, %v2071_v47  ;;  %v2250_v46 = vsel %vm183_vm0, %v2197_v2, 0.0  ;;  %v2389_v59 = vsel %vm2276_vm7, %v2197_v2, 0.0 }
 0x271   : > { %v2322_v50 = vsel %vm2276_vm7, %v2071_v47, 0.0  ;;  %v678_v6 = vsel %vm615_vm4, %v676_v22, %v5022_v18  ;;  %v2251_v14 = vadd.f32 %v2250_v46, %v2249_v33  ;;  %v2390_v28 = vadd.f32 %v2389_v59, %v2388_v29 }
 0x272   : > { %v2152_v62 = vadd.f32 %v2151_v44, %v2150_v16  ;;  %v2252_v63 = vsel %vm183_vm0, %v2198_v19, 0.0  ;;  %v2323_v9 = vadd.f32 %v2322_v50, %v2321_v42  ;;  %v2391_v15 = vsel %vm2276_vm7, %v2198_v19, 0.0 }
 0x273   : > { %v5024_v40 = vrot.slane %v5023_v53, 1  ;;  %v752_v2 = vadd.f32 %v678_v6, %v607_v26  ;;  %v2253_v7 = vadd.f32 %v2252_v63, %v2251_v14  ;;  %v2392_v34 = vadd.f32 %v2391_v15, %v2390_v28  ;;  %v5030_v28 = vld [vmem:[#allocation26_spill] sm:$0xff] }
 0x274   : > { %v2154_v61 = vadd.f32 %v4697_v0, %v2152_v62  ;;  %v2325_v33 = vadd.f32 %v4700_v1, %v2323_v9  ;;  %v5025_v29 = vrot.slane %v5023_v53, 2  ;;  %v5026_v16 = vrot.slane %v5016_v21, 2 }
 0x275   : > { %v538_v47 = vsel %vm470_vm2, %v536_v37, %v5024_v40  ;;  %v2462_v44 = vsel %vm183_vm0, %v752_v2, 0.0  ;;  %v2508_v19 = vmul.f32 %v752_v2, %v752_v2  ;;  %v2255_v40 = vadd.f32 %v4706_v51, %v2253_v7  ;;  %v5027_v51 = vld [vmem:[#allocation24_spill] sm:$0xff] }
 0x276   : > { %v609_v22 = vadd.f32 %v538_v47, %v5016_v21  ;;  %v683_v42 = vsel %vm615_vm4, %v5026_v16, %v5025_v29  ;;  %v2156_v37 = vadd.f32 %v4718_v32, %v2154_v61  ;;  %v2394_v0 = vadd.f32 %v4709_v25, %v2392_v34 }
 0x277   : > { %v2206_v46 = vmul.f32 %v4664_v17, %v4664_v17  ;;  %v2204_v1 = vmul.f32 %v4667_v12, %v4667_v12  ;;  %v2327_v21 = vadd.f32 %v4724_v55, %v2325_v33  ;;  %v2463_v59 = vadd.f32 %v2462_v44, %v4361_v36 }
 0x278   : > { %v754_v26 = vadd.f32 %v683_v42, %v609_v22  ;;  %v2158_v50 = vadd.f32 %v4688_v48, %v2156_v37  ;;  %v2257_v18 = vadd.f32 %v4732_v57, %v2255_v40  ;;  %v2396_v32 = vadd.f32 %v4735_v60, %v2394_v0  ;;  %v5031_v22 = vld [vmem:[#allocation35_spill] sm:$0xff] }
 0x279   : > { %v5028_v6 = vrot.slane %v5027_v51, 2  ;;  %v5029_v34 = vrot.slane %v5018_v8, 2  ;;  %v2338_v14 = vsel %vm2276_vm7, %v4664_v17, 0.0  ;;  %v2163_v55 = vsel %vm183_vm0, %v4667_v12, 0.0 }
 0x27a   : > { %v2329_v36 = vadd.f32 %v4691_v45, %v2327_v21  ;;  %v2160_v57 = vadd.f32 %v4712_v49, %v2158_v50  ;;  %v2259_v60 = vadd.f32 %v4694_v58, %v2257_v18  ;;  %v2398_v62 = vadd.f32 %v4703_v24, %v2396_v32  ;;  %v5033_v50 = vld [vmem:[#allocation33_spill] sm:$0xff] }
 0x27b   : > { %v688_v25 = vsel %vm615_vm4, %v5029_v34, %v5028_v6  ;;  %v2563_v8 = vsel %vm183_vm0, %v2508_v19, 0.0  ;;  %v2268_v63 = vsel %vm183_vm0, %v2206_v46, 0.0  ;;  %v2264_v9 = vsel %vm183_vm0, %v2204_v1, 0.0 }
 0x27c   : > { %v756_v48 = vadd.f32 %v688_v25, %v5030_v28  ;;  %v2334_v17 = vsel %vm2276_vm7, %v4667_v12, 0.0  ;;  %v2331_v15 = vadd.f32 %v4715_v39, %v2329_v36  ;;  %v2162_v45 = vadd.f32 %v4759_v11, %v2160_v57 }
 0x27d   : > { %v2261_v53 = vadd.f32 %v4721_v54, %v2259_v60  ;;  %v2400_v49 = vadd.f32 %v4729_v43, %v2398_v62  ;;  %v2466_v58 = vsel %vm183_vm0, %v754_v26, 0.0  ;;  %v2403_v24 = vsel %vm2276_vm7, %v2204_v1, 0.0  ;;  %v5032_v43 = vld [vmem:[#allocation34_spill] sm:$0xff] }
 0x27e   : > { %v2333_v47 = vadd.f32 %v2332_v4, %v2331_v15  ;;  %v2465_v2 = vadd.f32 %v4652_v38, %v2463_v59  ;;  %v2564_v61 = vadd.f32 %v2563_v8, %v4363_v31  ;;  %v2164_v39 = vadd.f32 %v2163_v55, %v2162_v45 }
 0x27f   : > { %v2263_v7 = vadd.f32 %v4768_v23, %v2261_v53  ;;  %v2402_v12 = vadd.f32 %v4774_v3, %v2400_v49  ;;  %v2468_v11 = vsel %vm183_vm0, %v5017_v30, 0.0  ;;  %v759_v33 = vadd.f32 %v5032_v43, %v5031_v22 }
 0x280   : > { %v2335_v54 = vadd.f32 %v2334_v17, %v2333_v47  ;;  %v2510_v29 = vmul.f32 %v754_v26, %v754_v26  ;;  %v2467_v16 = vadd.f32 %v2466_v58, %v2465_v2  ;;  %v2166_v4 = vadd.f32 %v4739_v13, %v2164_v39 }
 0x281   : > { %v2404_v42 = vadd.f32 %v2403_v24, %v2402_v12  ;;  %v2265_v38 = vadd.f32 %v2264_v9, %v2263_v7  ;;  %v2470_v31 = vsel %vm183_vm0, %v756_v48, 0.0  ;;  %v2407_v23 = vsel %vm2276_vm7, %v2206_v46, 0.0 }
 0x282   : > { %v2337_v3 = vadd.f32 %v4754_v35, %v2335_v54  ;;  %v2512_v44 = vmul.f32 %v756_v48, %v756_v48  ;;  %v2469_v19 = vadd.f32 %v2468_v11, %v2467_v16  ;;  %v2168_v37 = vadd.f32 %v4778_v52, %v2166_v4 }
 0x283   : > { %v2406_v30 = vadd.f32 %v4765_v10, %v2404_v42  ;;  %v2267_v40 = vadd.f32 %v4762_v20, %v2265_v38  ;;  %v2472_v0 = vsel %vm183_vm0, %v5019_v5, 0.0  ;;  %v2567_v13 = vsel %vm183_vm0, %v2510_v29, 0.0 }
 0x284   : > { %v2339_v26 = vadd.f32 %v2338_v14, %v2337_v3  ;;  %v2471_v1 = vadd.f32 %v2470_v31, %v2469_v19  ;;  %v2566_v21 = vadd.f32 %v4670_v41, %v2564_v61  ;;  %v2169_v59 = vrot.slane %v2168_v37, 4 }
 0x285   : > { %v2408_v46 = vadd.f32 %v2407_v23, %v2406_v30  ;;  %v2269_v35 = vadd.f32 %v2268_v63, %v2267_v40  ;;  %v2474_v18 = vsel %vm183_vm0, %v5033_v50, 0.0  ;;  %v2476_v52 = vsel %vm183_vm0, %v759_v33, 0.0 }
 0x286   : > { %v2340_v10 = vrot.slane %v2339_v26, 4  ;;  %v2569_v20 = vsel %vm183_vm0, %v4680_v56, 0.0  ;;  %v2473_v32 = vadd.f32 %v2472_v0, %v2471_v1  ;;  %v2170_v51 = vadd.f32 %v2169_v59, %v2168_v37 }
 0x287   : > { %v2409_v5 = vrot.slane %v2408_v46, 4  ;;  %v2270_v6 = vrot.slane %v2269_v35, 4  ;;  %v2568_v34 = vadd.f32 %v2567_v13, %v2566_v21  ;;  %v2514_v41 = vmul.f32 %v5033_v50, %v5033_v50 }
 0x288   : > { %v2341_v25 = vadd.f32 %v2340_v10, %v2339_v26  ;;  %v2571_v14 = vsel %vm183_vm0, %v2512_v44, 0.0  ;;  %v2475_v55 = vadd.f32 %v2474_v18, %v2473_v32  ;;  %v2171_v28 = vrot.slane %v2170_v51, 2 }
 0x289   : > { %v2410_v36 = vadd.f32 %v2409_v5, %v2408_v46  ;;  %v2271_v48 = vadd.f32 %v2270_v6, %v2269_v35  ;;  %v2570_v57 = vadd.f32 %v2569_v20, %v2568_v34  ;;  %v2515_v62 = vmul.f32 %v759_v33, %v759_v33 }
 0x28a   : > { %v2342_v60 = vrot.slane %v2341_v25, 2  ;;  %v2573_v56 = vsel %vm183_vm0, %v4685_v27, 0.0  ;;  %v2477_v8 = vadd.f32 %v2476_v52, %v2475_v55  ;;  %v2172_v9 = vadd.f32 %v2171_v28, %v2170_v51 }
 0x28b   : > { %v2411_v63 = vrot.slane %v2410_v36, 2  ;;  %v2272_v17 = vrot.slane %v2271_v48, 2  ;;  %v2572_v15 = vadd.f32 %v2571_v14, %v2570_v57  ;;  %v2575_v53 = vsel %vm183_vm0, %v2514_v41, 0.0 }
 0x28c   : > { %v2343_v45 = vadd.f32 %v2342_v60, %v2341_v25  ;;  %v2173_v58 = vrot.slane %v2172_v9, 1  ;;  %v2577_v61 = vsel %vm183_vm0, %v2515_v62, 0.0  ;;  %v2478_v29 = vrot.slane %v2477_v8, 4 }
 0x28d   : > { %v2412_v49 = vadd.f32 %v2411_v63, %v2410_v36  ;;  %v2273_v24 = vadd.f32 %v2272_v17, %v2271_v48  ;;  %v2574_v47 = vadd.f32 %v2573_v56, %v2572_v15  ;;  %v3079_v59 = vmov (!%p2711_p7), 0.0  }
 0x28e   : > { %v2344_v2 = vrot.slane %v2343_v45, 1  ;;  %v2174_v54 = vadd.f32 %v2173_v58, %v2172_v9  ;;  %v2479_v42 = vadd.f32 %v2478_v29, %v2477_v8  ;;  %2608 = vst.msk [vmem:[#allocation6] sm:$0xff] (!%p2711_p7), %vm183_vm0, %v3079_v59 }
 0x28f   : > { %v2413_v7 = vrot.slane %v2412_v49, 1  ;;  %v2274_v12 = vrot.slane %v2273_v24, 1  ;;  %v2576_v39 = vadd.f32 %v2575_v53, %v2574_v47 }
 0x290   : > { %v2345_v11 = vadd.f32 %v2344_v2, %v2343_v45  ;;  %v2480_v38 = vrot.slane %v2479_v42, 2 }
 0x291   : > { %v2414_v27 = vadd.f32 %v2413_v7, %v2412_v49  ;;  %v2275_v22 = vadd.f32 %v2274_v12, %v2273_v24  ;;  %v2578_v43 = vadd.f32 %v2577_v61, %v2576_v39 }
 0x292   : > { %2586 = vrot.lane.b32.xlu0 %v2345_v11, %s3078_s24  ;;  %v2481_v23 = vadd.f32 %v2480_v38, %v2479_v42 }
 0x293   : > { %2590 = vrot.lane.b32.xlu1 %v2414_v27, %s3078_s24  ;;  %v2594_v33 = vsel %vm2593_vm8, %v2174_v54, %v2275_v22  ;;  %v2579_v16 = vrot.slane %v2578_v43, 4 }
 0x294   : > { %v2482_v44 = vrot.slane %v2481_v23, 1 }
 0x295   : > { %v2580_v4 = vadd.f32 %v2579_v16, %v2578_v43 }
 0x296   : > { %v2483_v30 = vadd.f32 %v2482_v44, %v2481_v23 }
 0x297   : > { %v2581_v31 = vrot.slane %v2580_v4, 2 }
 0x299   : > { %v2582_v3 = vadd.f32 %v2581_v31, %v2580_v4 }
 0x29b   : > { %v2583_v19 = vrot.slane %v2582_v3, 1 }
 0x29d   : > { %v2584_v40 = vadd.f32 %v2583_v19, %v2582_v3 }
 0x303   : > { %2607 = sbr.rel (%p2711_p7) target bundleno = 778 (0x30a), region = 36 }
 0x304   : > { %v2587_v37 = vpop.permute.xlu0 %2586 }
 0x305   : > { %v2596_v0 = vsel %vm2595_vm9, %v2594_v33, %v2587_v37  ;;  %v2591_v26 = vpop.permute.xlu1 %2590 }
 0x306   : > { %v2598_v13 = vsel %vm2597_vm10, %v2596_v0, %v2591_v26 }
 0x307   : > { %v2600_v1 = vsel %vm2599_vm11, %v2598_v13, %v2483_v30 }
 0x308   : > { %v2602_v21 = vsel %vm2601_vm12, %v2600_v1, %v2584_v40 }
 0x309   : > { %v2603_v46 = vsel %vm615_vm4, %v2602_v21, 0.0 }
 0x30a PF: > { %v2609_v35 = vld [vmem:[#allocation6] sm:$0xff]  ;;  %p2910_p8 = scmp.eq.s32.totalorder %s3115_s13, 1  ;;  %s3080_s12 = smov [#allocation6]  }
 0x30b   : > { %v2610_v50 = vadd.f32 %v2609_v35, %v2603_v46  ;;  %s2619_s18 = sshll.u32 %s3080_s12, 4  ;;  %s2620_s18 = int_to_ptr.vmem [resolvable:$true] %s2619_s18 }
 0x30c   : > { %s3006_s24 = scalar_lea.vmem %s2620_s18, 128  ;;  %p3013_p6 = scmp.lt.s32.totalorder %s2620_s18, %s2620_s18 }
 0x30d   : > { %2611 = vst.msk [vmem:[#allocation6] sm:$0xff] %vm183_vm0, %v2610_v50  ;;  %p3007_p9 = scmp.ne.s32.totalorder %s2620_s18, %s3006_s24  ;;  %p3014_p10 = scmp.lt.s32.totalorder %s3006_s24, %s3006_s24 }
 0x30f   : > { %p3008_p4 = pnand %p3007_p9, %p2910_p8  ;;  %p3015_p12 = por %p3014_p10, %p3013_p6 }
 0x311   : > { %p3009_p5 = pneg %p3008_p4 }
 0x313   : > { %p3016_p0 = pnand %p3015_p12, %p3009_p5 }
 0x315   : > { %3019 = shalt.err (!%p3016_p0)
}
 0x316   : > { %s3020_s22 = scalar_lea.hbm %s4922_s2, 128 }
 0x317   : > { %p3021_p1 = scmp.ne.s32.totalorder %s4922_s2, %s3020_s22  ;;  %p3026_p13 = scmp.lt.u32.totalorder %s3020_s22, %s4922_s2 }
 0x319   : > { %p3022_p2 = pnand %p3021_p1, %p2910_p8 }
 0x31b   : > { %p3023_p11 = pneg %p3022_p2 }
 0x31d   : > { %p3028_p3 = pnand %p3026_p13, %p3023_p11 }
 0x31f   : > { %3031 = shalt.err (!%p3028_p3)
}
 0x320   : > { %2902 = dma.vmem_to_hbm [thread:$0]  (%p2910_p8), %s2620_s18, 128, %s4922_s2, [#allocation5]  }
 0x321   : > { %3053 = dma.done.wait (%p2910_p8), [#allocation5], 128  }
 0x322   : > { %3055 = vsyncadd (%p2910_p8), [#allocation5], 4294967168 }
 0x323 PF: > { %p13_p7 = scmp.ge.s32.totalorder %s3118_s14, 4   ;;  %s5034_s9 = smov %s3062_s10 }
 0x324   : > { %s5035_s10 = smov %s3066_s11  ;;  %s5036_s11 = smov %s3128_s17 }
 0x325   : > { %s5037_s12 = smov %s3118_s14  ;;  %15 = sbr.rel (!%p13_p7) target bundleno = 4 (0x4), region = 70 }
 0x32c   :  { %2632 = vsyncpa [#allocation4], 1 }
 0x32d   :  { %2634 = vsyncpa [#allocation4 + $0x1], 1 }
 0x32e   :  { %2635 = vsyncpa [#allocation5], 1 }
 0x32f   :  { %2637 = vsyncpa [#allocation5 + $0x1], 1 }

</bundles_post_ra>
